<compile_context>
chip_gen: v7x
topology: tpu7x:2x2x1
jax: 0.10.0
libtpu: 0.0.40
codegen_flags: <defaults>
</compile_context>

<pallas_src>
import math
from functools import partial

import jax
import jax.numpy as jnp
from jax.experimental import pallas as pl
from jax.experimental.pallas import tpu as pltpu

_LANE = 128
_MASK_VALUE = -1e30  # large-negative finite mask (avoids inf - inf NaN risk)


def qkv_attention_kernel(qkv_ref, o_ref, *, heads, ch, valid_len):
    """One (batch-block, head-block) tile of QKV attention.

    qkv_ref: (block_b, 3*heads*ch, T_pad) -- head-major, [q|k|v] per head.
    o_ref:   (block_b, heads*ch, T_pad)
    """
    blk_b = qkv_ref.shape[0]
    t_pad = qkv_ref.shape[-1]

    # (block_b, 3*heads*ch, T) -> (block_b*heads, 3*ch, T): pure regroup of the
    # leading/sublane dims thanks to the head-major channel packing.
    qkv = qkv_ref[...].reshape(blk_b * heads, 3 * ch, t_pad)
    q = qkv[:, 0 * ch:1 * ch, :]          # (BH, C, T)
    k = qkv[:, 1 * ch:2 * ch, :]          # (BH, C, S)
    v = qkv[:, 2 * ch:3 * ch, :]          # (BH, C, S)

    # Fold both 1/ch**0.25 factors into q:  (q*s)^T (k*s) == (q*s*s)^T k.
    # Plain Python float stays weakly typed, so bf16 q is NOT promoted to f32
    # (keeps the logits matmul on the native bf16 MXU path).
    q = q * (1.0 / math.sqrt(ch))

    # Scores in (S, T) orientation:
    #   logits[b, s, t] = sum_c k[b, c, s] * q[b, c, t]
    # so the PV product below is a plain (C,S) @ (S,T) matmul -- no T x S
    # relayout/transpose of the big probability matrix.
    logits = jnp.einsum('bcs,bct->bst', k, q,
                        preferred_element_type=jnp.float32)      # (BH, S, T)

    if valid_len != t_pad:
        # Keys beyond the true sequence length are padding: mask before softmax.
        s_idx = jax.lax.broadcasted_iota(jnp.int32, logits.shape, 1)
        logits = jnp.where(s_idx < valid_len, logits, _MASK_VALUE)

    # Numerically-stable softmax statistics over the key axis, in f32.
    m = jnp.max(logits, axis=1, keepdims=True)                   # (BH, 1, T)
    p = jnp.exp(logits - m)                                      # (BH, S, T)
    denom = jnp.sum(p, axis=1, keepdims=True)                    # (BH, 1, T)

    # PV matmul on *unnormalized* probabilities (cast back to the value dtype,
    # mirroring torch's `.type(weight.dtype)`); normalization is deferred to
    # the (C, T) result with an exact divide (the approx reciprocal was the
    # source of the previous 3.4e-3 mismatch).
    a = jnp.einsum('bcs,bst->bct', v, p.astype(v.dtype),
                   preferred_element_type=jnp.float32)           # (BH, C, T)
    a = a / denom

    # (BH, C, T) -> (block_b, heads*ch, T): heads stay contiguous C-wide
    # chunks, matching torch's reshape(bs, -1, length).
    o_ref[...] = a.reshape(blk_b, heads * ch, t_pad).astype(o_ref.dtype)


def _vmem_capacity_bytes():
    # v7x has 64 MiB of VMEM per TensorCore (v5e/v6e: 128 MiB); fall back to
    # the most restrictive figure if the query is unavailable.
    try:
        return int(pltpu.get_tpu_info().vmem_capacity_bytes)
    except Exception:
        return 64 * 1024 * 1024


def _estimate_vmem_bytes(block_b, block_h, ch, t, itemsize):
    bh = block_b * block_h
    in_slab = block_b * 3 * block_h * ch * t * itemsize
    out_slab = block_b * block_h * ch * t * itemsize
    scores = 2 * bh * t * t * 4          # logits + exp(p), f32
    acc = bh * ch * t * 4                # f32 PV accumulator
    # Inputs/outputs are double-buffered by the pipeliner (default Buffered(2)).
    return 2 * (in_slab + out_slab) + scores + acc


def _divisors_desc(n):
    return [d for d in range(n, 0, -1) if n % d == 0]


def _pick_blocks(bs, num_heads, ch, t, itemsize, vmem_budget):
    """Largest (block_b, block_h) whose working set fits the VMEM budget."""
    def head_ok(bh):
        # Sublane alignment of the channel block (full extent is always legal).
        return bh == num_heads or (bh * ch) % 8 == 0

    candidates = [
        (bb, bh)
        for bh in _divisors_desc(num_heads) if head_ok(bh)
        for bb in _divisors_desc(bs)
    ]
    candidates.sort(key=lambda c: (c[0] * c[1], c[1]), reverse=True)

    block_b, block_h = candidates[-1]           # smallest legal tile (fallback)
    for bb, bh in candidates:
        if _estimate_vmem_bytes(bb, bh, ch, t, itemsize) <= vmem_budget:
            block_b, block_h = bb, bh
            break

    # v7x has two TensorCores: keep the "parallel" grid >= 2 when the problem
    # allows it so both cores get work (harmless on single-TC v5e/v6e).
    if (bs // block_b) * (num_heads // block_h) < 2:
        smaller_b = [d for d in _divisors_desc(bs) if d < block_b]
        smaller_h = [d for d in _divisors_desc(num_heads)
                     if d < block_h and head_ok(d)]
        if smaller_b:
            block_b = smaller_b[0]
        elif smaller_h:
            block_h = smaller_h[0]
    return block_b, block_h


def qkv_attention(qkv, *, num_heads, block_b=None, block_h=None):
    """Pallas forward of QKVAttention (encoder_kv=None path).

    Args:
      qkv: (B, 3*H*C, T) array, channels packed head-major as [q|k|v] per head.
      num_heads: number of attention heads H.
    Returns:
      (B, H*C, T) array.
    """
    bs, width, length = qkv.shape
    assert width % (3 * num_heads) == 0
    ch = width // (3 * num_heads)

    # Pad the time axis to a lane-dense multiple of 128 (masked in-kernel) so
    # output stores are unmasked and the MXU N dimension is full.
    t_pad = max(_LANE, ((length + _LANE - 1) // _LANE) * _LANE)
    if t_pad != length:
        qkv = jnp.pad(qkv, ((0, 0), (0, 0), (0, t_pad - length)))

    itemsize = jnp.dtype(qkv.dtype).itemsize
    vmem_cap = _vmem_capacity_bytes()
    if block_b is None or block_h is None:
        bb, bh = _pick_blocks(bs, num_heads, ch, t_pad, itemsize,
                              vmem_budget=vmem_cap // 2)
        block_b = bb if block_b is None else block_b
        block_h = bh if block_h is None else block_h
    assert bs % block_b == 0 and num_heads % block_h == 0

    est = _estimate_vmem_bytes(block_b, block_h, ch, t_pad, itemsize)
    vmem_limit = int(min(vmem_cap * 9 // 10,
                         max(2 * est, 32 * 1024 * 1024)))

    kernel = partial(qkv_attention_kernel, heads=block_h, ch=ch,
                     valid_len=length)

    out = pl.pallas_call(
        kernel,
        out_shape=jax.ShapeDtypeStruct((bs, num_heads * ch, t_pad), qkv.dtype),
        grid_spec=pltpu.PrefetchScalarGridSpec(
            num_scalar_prefetch=0,
            grid=(bs // block_b, num_heads // block_h),
            in_specs=[
                pl.BlockSpec((block_b, 3 * block_h * ch, t_pad),
                             lambda b, h: (b, h, 0)),
            ],
            out_specs=pl.BlockSpec((block_b, block_h * ch, t_pad),
                                   lambda b, h: (b, h, 0)),
        ),
        compiler_params=pltpu.CompilerParams(
            dimension_semantics=("parallel", "parallel"),
            vmem_limit_bytes=vmem_limit),
    )(qkv)

    if t_pad != length:
        out = out[:, :, :length]
    return out


def qkv_attention_ref(qkv, *, num_heads):
    """Pure-JAX mirror of the PyTorch forward (encoder_kv=None)."""
    bs, width, length = qkv.shape
    ch = width // (3 * num_heads)
    x = qkv.reshape(bs * num_heads, 3 * ch, length)
    q, k, v = x[:, :ch, :], x[:, ch:2 * ch, :], x[:, 2 * ch:, :]
    scale = 1.0 / math.sqrt(math.sqrt(ch))
    hp = jax.lax.Precision.HIGHEST
    w = jnp.einsum('bct,bcs->bts', q * scale, k * scale, precision=hp)
    w = jax.nn.softmax(w.astype(jnp.float32), axis=-1).astype(w.dtype)
    a = jnp.einsum('bts,bcs->bct', w, v, precision=hp)
    return a.reshape(bs, -1, length)


if __name__ == "__main__":
    # Keep f32 matmuls at full precision on every execution path (including
    # interpret-mode einsums) so kernel vs. reference is apples-to-apples.
    jax.config.update("jax_default_matmul_precision", "highest")

    # Small shapes consistent with the module: B=2, H=4, C=8, T=16
    # -> qkv width = 3*H*C = 96.
    bs, num_heads, ch, length = 2, 4, 8, 16
    width = 3 * num_heads * ch

    key = jax.random.PRNGKey(0)
    qkv = jax.random.normal(key, (bs, width, length), dtype=jnp.float32)

    out = jax.block_until_ready(qkv_attention(qkv, num_heads=num_heads))
    ref = jax.block_until_ready(qkv_attention_ref(qkv, num_heads=num_heads))

    assert out.shape == (bs, num_heads * ch, length), out.shape
    err = jnp.max(jnp.abs(out - ref))
    assert jnp.allclose(out, ref, rtol=1e-3, atol=1e-3), f"max abs err = {err}"

    print("KERNEL_OK")
</pallas_src>

<mosaic_0001>
module attributes {stable_mosaic.version = 11 : i64} {
  func.func @qkv_attention_kernel(%arg0: i32, %arg1: i32, %arg2: memref<1x96x128xf32, #tpu.memory_space<vmem>>, %arg3: memref<1x32x128xf32, #tpu.memory_space<vmem>>) attributes {dimension_semantics = [#tpu.dimension_semantics<parallel>, #tpu.dimension_semantics<parallel>], iteration_bounds = array<i64: 2, 1>, scalar_prefetch = 0 : i64, scratch_operands = 0 : i64, tpu.core_type = #tpu.core_type<tc>, window_params = [{transform_indices = @transform_0, window_bounds = array<i64: 1, 96, 128>}, {transform_indices = @transform_1, window_bounds = array<i64: 1, 32, 128>}]} {
    %c0 = arith.constant 0 : index
    %c0_0 = arith.constant 0 : index
    %c0_1 = arith.constant 0 : index
    %0 = vector.load %arg2[%c0, %c0_0, %c0_1] : memref<1x96x128xf32, #tpu.memory_space<vmem>>, vector<1x96x128xf32>
    %1 = vector.shape_cast %0 : vector<1x96x128xf32> to vector<4x24x128xf32>
    %2 = vector.extract_strided_slice %1 {offsets = [0, 0, 0], sizes = [4, 8, 128], strides = [1, 1, 1]} : vector<4x24x128xf32> to vector<4x8x128xf32>
    %3 = vector.extract_strided_slice %1 {offsets = [0, 8, 0], sizes = [4, 8, 128], strides = [1, 1, 1]} : vector<4x24x128xf32> to vector<4x8x128xf32>
    %4 = vector.extract_strided_slice %1 {offsets = [0, 16, 0], sizes = [4, 8, 128], strides = [1, 1, 1]} : vector<4x24x128xf32> to vector<4x8x128xf32>
    %cst = arith.constant 0.353553385 : f32
    %5 = vector.broadcast %cst : f32 to vector<4x8x128xf32>
    %6 = arith.mulf %2, %5 : vector<4x8x128xf32>
    "tpu.trace_start"() <{level = 10 : i32, message = "bcs,bct->bst"}> : () -> ()
    %cst_2 = arith.constant dense<0.000000e+00> : vector<4x128x128xf32>
    %7 = tpu.matmul %3, %6, %cst_2 {dimension_numbers = #tpu.dot_dimension_numbers<[1], [1], [2], [2], [0, 0, 0, 2, 1, 2], [0], [0]>, precision = #tpu.contract_precision<fp32>} : vector<4x8x128xf32>, vector<4x8x128xf32>, vector<4x128x128xf32> -> vector<4x128x128xf32>
    "tpu.trace_stop"() : () -> ()
    %8 = tpu.iota {dimensions = array<i32: 1>} : vector<4x128x128xi32>
    %c16_i32 = arith.constant 16 : i32
    %9 = vector.broadcast %c16_i32 : i32 to vector<4x128x128xi32>
    %10 = arith.cmpi slt, %8, %9 : vector<4x128x128xi32>
    %cst_3 = arith.constant -1.000000e+30 : f32
    %11 = vector.broadcast %cst_3 : f32 to vector<4x128x128xf32>
    %12 = arith.select %10, %7, %11 : vector<4x128x128xi1>, vector<4x128x128xf32>
    %cst_4 = arith.constant dense<0xFF800000> : vector<4x128xf32>
    %13 = vector.multi_reduction <maximumf>, %12, %cst_4 [1] : vector<4x128x128xf32> to vector<4x128xf32>
    %14 = vector.shape_cast %13 : vector<4x128xf32> to vector<4x1x128xf32>
    %15 = vector.broadcast %14 : vector<4x1x128xf32> to vector<4x128x128xf32>
    %16 = arith.subf %12, %15 : vector<4x128x128xf32>
    %17 = math.exp %16 : vector<4x128x128xf32>
    %cst_5 = arith.constant dense<0.000000e+00> : vector<4x128xf32>
    %18 = vector.multi_reduction <add>, %17, %cst_5 [1] : vector<4x128x128xf32> to vector<4x128xf32>
    %19 = vector.shape_cast %18 : vector<4x128xf32> to vector<4x1x128xf32>
    "tpu.trace_start"() <{level = 10 : i32, message = "bcs,bst->bct"}> : () -> ()
    %cst_6 = arith.constant dense<0.000000e+00> : vector<4x8x128xf32>
    %20 = tpu.matmul %4, %17, %cst_6 {dimension_numbers = #tpu.dot_dimension_numbers<[2], [1], [1], [2], [0, 0, 0, 1, 1, 2], [0], [0]>, precision = #tpu.contract_precision<fp32>} : vector<4x8x128xf32>, vector<4x128x128xf32>, vector<4x8x128xf32> -> vector<4x8x128xf32>
    "tpu.trace_stop"() : () -> ()
    %21 = vector.broadcast %19 : vector<4x1x128xf32> to vector<4x8x128xf32>
    %22 = arith.divf %20, %21 : vector<4x8x128xf32>
    %23 = vector.shape_cast %22 : vector<4x8x128xf32> to vector<1x32x128xf32>
    %c0_7 = arith.constant 0 : index
    %c0_8 = arith.constant 0 : index
    %c0_9 = arith.constant 0 : index
    %24 = vector.load %arg3[%c0_7, %c0_8, %c0_9] : memref<1x32x128xf32, #tpu.memory_space<vmem>>, vector<1x32x128xf32>
    tpu.vector_store %arg3[%c0_7, %c0_8, %c0_9], %23 {strides = array<i32>} : memref<1x32x128xf32, #tpu.memory_space<vmem>>, vector<1x32x128xf32>,
    return
  }
  func.func @transform_0(%arg0: i32, %arg1: i32) -> (i32, i32, i32) {
    %c0_i32 = arith.constant 0 : i32
    %c0_i32_0 = arith.constant 0 : i32
    return %arg0, %arg1, %c0_i32 : i32, i32, i32
  }
  func.func @transform_1(%arg0: i32, %arg1: i32) -> (i32, i32, i32) {
    %c0_i32 = arith.constant 0 : i32
    %c0_i32_0 = arith.constant 0 : i32
    return %arg0, %arg1, %c0_i32 : i32, i32, i32
  }
}

</mosaic_0001>

<bundles_post_ra>
// kernel: tpu_custom_call.1
= control target key start
LH: loop header
LB: loop body
LE: loop exit
PB: predicated region body
PF: predicated region fallthrough
CT: control target
= control target key end

     0   :  { %6 = vsyncpa [#allocation3], 0  ;;  %s13274_s0 = inlined_call_operand.hbm [shape: f32[2,96,128], index: 0, kind: input, shape index: {}]   ;;  %s13275_s1 = inlined_call_operand.hbm [shape: f32[2,32,128], index: 1, kind: output, shape index: {}]  }
   0x1   :  { %8 = vsyncpa [#allocation3 + $0x1], 0 }
   0x2   :  { %9 = vsyncpa [#allocation4], 0 }
   0x3   :  { %11 = vsyncpa [#allocation4 + $0x1], 0  ;;  %s11178_s6 = smov 0   ;;  %s11180_s7 = smov 0  }
   0x4   :  { %s11182_s8 = smov 0   ;;  %s11184_s9 = smov 0  }
   0x5   :  { %s11186_s10 = smov 0   ;;  %s11188_s11 = smov 0  }
   0x6 LB: > { %s7992_s12 = sadd.s32 4294967295, %s11157_s11   ;;  %s7993_s13 = sadd.s32 4294967294, %s11157_s11   ;;  %s11157_s11 = sphi %s11188_s11, %s17_s11   ;;  %s11153_s10 = sphi %s11186_s10, %s13604_s10   ;;  %s11149_s9 = sphi %s11184_s9, %s13603_s9   ;;  %s11145_s8 = sphi %s11182_s8, %s13602_s8   ;;  %s11141_s7 = sphi %s11180_s7, %s13601_s7   ;;  %s11137_s6 = sphi %s11178_s6, %s13600_s6  }
   0x7   : > { %s29_s14 = sadd.s32 1, %s11153_s10  ;;  %s38_s15 = sadd.s32 1, %s11145_s8 }
   0x8   : > { %p31_p0 = scmp.ge.s32.totalorder %s29_s14, 2  ;;  %p45_p1 = scmp.ne.s32.totalorder %s11145_s8, %s11141_s7 }
   0x9   : > { %p46_p2 = scmp.eq.s32.totalorder %s11157_s11, 0  ;;  %p51_p3 = scmp.ne.s32.totalorder %s11141_s7, %s11137_s6 }
   0xa   : > { %s13606_s14 = smov (%p31_p0, %s29_s14), 0  ;;  %p52_p5 = scmp.eq.s32.totalorder %s7992_s12, 0 }
   0xb   : > { %p11219_p4 = por %p46_p2, %p45_p1  ;;  %s33_s17 = ssub.s32 %s11153_s10, %s13606_s14 }
   0xc   : > { %p77_p6 = scmp.eq.s32.totalorder %s7992_s12, 1  ;;  %p36_p7 = scmp.eq.s32.totalorder %s33_s17, 0 }
   0xd   : > { %p11225_p8 = por %p52_p5, %p51_p3  ;;  %p83_p10 = scmp.eq.s32.totalorder %s7993_s13, 1 }
   0xe   : > { %p11229_p9 = por %p77_p6, %p45_p1  ;;  %p10956_p13 = scmp.lt.s32.totalorder %s11157_s11, 2 }
   0xf   : > { %s11234_s20 = scalar_select %p36_p7, %s11145_s8, %s38_s15  }
  0x10   : > { %s13418_s19 = scalar_select %p11229_p9, 1, 0 }
  0x11   : > { %p11236_p11 = por %p83_p10, %p51_p3  ;;  %s103_s22 = sand.u32 1, %s11145_s8  }
  0x12   : > { %s10941_s23 = smul.u32 96, %s103_s22  ;;  %p11246_p0 = pnand %p10956_p13, %p11219_p4 }
  0x13   : > { %s13419_s21 = scalar_select %p11236_p11, 1, 0 }
  0x14   : > { %s10942_s24 = smul.u32 1536, %s11153_s10  ;;  %s107_s29 = scalar_lea.vmem [#allocation2], %s10941_s23 }
  0x15   : > { %s116_s30 = sshll.u32 %s107_s29, 4  ;;  %s11258_s2 = scalar_lea.sflag [#allocation3], %s103_s22  ;;  %s11255_s30 = int_to_ptr.vmem [resolvable:$true] %s116_s30 }
  0x16   : > { %s11253_s28 = scalar_lea.hbm %s13274_s0, %s10942_s24  ;;  %p11047_p3 = pneg %p11246_p0 }
  0x17   : > { %s11045_s3 = scalar_lea.hbm %s11253_s28, 1536  ;;  %s11050_s12 = scalar_lea.hbm %s13274_s0, 3072 }
  0x18   : > { %p11046_p2 = scmp.ne.s32.totalorder %s11253_s28, %s11045_s3  ;;  %p11051_p6 = scmp.lt.u32.totalorder %s11253_s28, %s13274_s0 }
  0x19   : > { %p11052_p7 = scmp.lt.u32.totalorder %s11050_s12, %s11045_s3  ;;  %p11054_p13 = scmp.lt.u32.totalorder %s11045_s3, %s11253_s28 }
  0x1a   : > { %p11048_p4 = pnand %p11047_p3, %p11046_p2 }
  0x1b   : > { %p11053_p10 = por %p11052_p7, %p11051_p6 }
  0x1c   : > { %p11049_p5 = pneg %p11048_p4 }
  0x1d   : > { %p11055_p12 = por %p11054_p13, %p11053_p10 }
  0x1f   : > { %p11056_p1 = pnand %p11055_p12, %p11049_p5 }
  0x21   : > { %11059 = shalt.err (!%p11056_p1)
}
  0x22   : > { %s11060_s16 = scalar_lea.vmem %s11255_s30, 1536  ;;  %s11159_s17 = smov [#allocation2]  }
  0x23   : > { %p11061_p2 = scmp.ne.s32.totalorder %s11255_s30, %s11060_s16  ;;  %s11065_s22 = sshll.u32 %s11159_s17, 4  ;;  %s11066_s22 = int_to_ptr.vmem [resolvable:$false] %s11065_s22 }
  0x24   : > { %s11067_s23 = scalar_lea.vmem %s11066_s22, 3072  ;;  %p11068_p9 = scmp.lt.s32.totalorder %s11255_s30, %s11066_s22 }
  0x25   : > { %p11063_p4 = pnand %p11061_p2, %p11047_p3  ;;  %p11069_p6 = scmp.lt.s32.totalorder %s11067_s23, %s11060_s16 }
  0x27   : > { %p11064_p11 = pneg %p11063_p4  ;;  %p11070_p7 = por %p11069_p6, %p11068_p9 }
  0x29   : > { %p11071_p10 = pnand %p11070_p7, %p11064_p11 }
  0x2b   : > { %11074 = shalt.err (!%p11071_p10)
}
  0x2c   : > { %s11160_s24 = smov 128   ;;  %s11161_s26 = smov 8  }
  0x2d   : > { %10951 = dma.hbm_to_vmem [thread:$0]  (!%p11246_p0), %s11253_s28, 1536, %s11255_s30, %s11258_s2, %s11160_s24, %s11160_s24, %s11161_s26  }
  0x2e   : > { %p124_p12 = scmp.lt.s32.totalorder %s11157_s11, 3  ;;  %p13421_p1 = scmp.ge.s32.totalorder %s11157_s11, 1 }
  0x30   : > { %p125_p3 = pnand %p13421_p1, %p124_p12 }
  0x32   : > { %128 = sbr.rel (%p125_p3) target bundleno = 1346 (0x542), region = 24 }
  0x39   : > { %s11290_s27 = sand.u32 1, %s11141_s7  }
  0x3a   : > { %s10943_s29 = smul.u32 96, %s11290_s27  ;;  %s131_s3 = scalar_lea.sflag [#allocation3], %s11290_s27 }
  0x3c   : > { %s11294_s4 = scalar_lea.vmem [#allocation2], %s10943_s29 }
  0x3d   : > { %11128 = dma.done.wait (%p11225_p8), %s131_s3, 1536  }
  0x3e   : > { %11130 = vsyncadd (%p11225_p8), %s131_s3, 4294965760  ;;  %v156_v0 = vld [vmem:[%s11294_s4 + $0x8] sm:$0xff]  ;;  %v155_v1 = vld [vmem:[%s11294_s4] sm:$0xff]  ;;  %vm203_vm0 = vcmask 64512   ;;  %vm11163_vm1 = vmmov 0   ;;  %s7998_s18 = sshll.u32 %s11290_s27, 5 }
  0x3f   : > { %171 = vxpose.xlu0.b32.start.end [1/1] (short) %v156_v0, 128  ;;  %v167_v2 = vmul.f32 0.35355338, %v155_v1  ;;  %v159_v4 = vld [vmem:[%s11294_s4 + $0x20] sm:$0xff]  ;;  %v162_v5 = vld [vmem:[%s11294_s4 + $0x38] sm:$0xff]  ;;  %v165_v17 = vld [vmem:[%s11294_s4 + $0x50] sm:$0xff]  ;;  %s13184_s25 = scalar_lea.vmem [#allocation5], %s7998_s18 }
  0x40   : > { %2514 = vxpose.xlu1.b32.start.end [1/1] (short) %v162_v5, 128  ;;  %v158_v10 = vld [vmem:[%s11294_s4 + $0x18] sm:$0xff]  ;;  %s7905_s28 = sshll.u32 %s13184_s25, 4  ;;  %s8004_s30 = sshll.u32 %s11149_s9, 9  ;;  %s13219_s28 = int_to_ptr.vmem [resolvable:$true] %s7905_s28 }
  0x41   : > { %v11302_v3 = vand.u32 4294901760, %v167_v2  ;;  %v168_v11 = vmul.f32 0.35355338, %v158_v10  ;;  %s13224_s12 = scalar_lea.hbm %s13275_s1, %s8004_s30  ;;  %s7890_s13 = scalar_lea.sflag [#allocation4], %s11290_s27 }
  0x42   : > { %s11075_s15 = scalar_lea.vmem %s13219_s28, 512  ;;  %p13597_p9 = scmp.ne.s32.totalorder %s13418_s19, 0 }
  0x43   : > { %8821 = vmatprep.subr.mxu0 %v11302_v3  ;;  %v11309_v6 = vsub.f32 %v167_v2, %v11302_v3  ;;  %v11317_v12 = vand.u32 4294901760, %v168_v11  ;;  %p11076_p8 = scmp.ne.s32.totalorder %s13219_s28, %s11075_s15  ;;  %s11165_s9 = smov [#allocation5]  }
  0x44   : > { %8822 = vmatpush3.msra.mxu0 %v11302_v3  ;;  %s11079_s16 = sshll.u32 %s11165_s9, 4  ;;  %s11080_s16 = int_to_ptr.vmem [resolvable:$false] %s11079_s16 }
  0x45   : > { %v11312_v7 = vand.u32 4294901760, %v11309_v6  ;;  %8977 = vmatprep.subr.mxu1 %v11317_v12  ;;  %v11322_v13 = vsub.f32 %v168_v11, %v11317_v12  ;;  %p11077_p11 = pnand %p11076_p8, %p13597_p9  ;;  %s11081_s17 = scalar_lea.vmem %s11080_s16, 1024 }
  0x46   : > { %8978 = vmatpush3.msra.mxu1 %v11317_v12  ;;  %p11082_p5 = scmp.lt.s32.totalorder %s13219_s28, %s11080_s16  ;;  %p11083_p13 = scmp.lt.s32.totalorder %s11081_s17, %s11075_s15 }
  0x47   : > { %v482_v8 = vsub.f32 %v11309_v6, %v11312_v7  ;;  %v11325_v14 = vand.u32 4294901760, %v11322_v13  ;;  %p11078_p0 = pneg %p11077_p11 }
  0x48   : > { %p11084_p2 = por %p11083_p13, %p11082_p5 }
  0x49   : > { %v483_v9 = vand.u32 4294901760, %v482_v8  ;;  %v1653_v15 = vsub.f32 %v11322_v13, %v11325_v14 }
  0x4a   : > { %p11085_p4 = pnand %p11084_p2, %p11078_p0 }
  0x4b   : > { %8847 = vmatprep.subr.mxu0 %v483_v9  ;;  %v11329_v16 = vand.u32 4294901760, %v1653_v15 }
  0x4d   : > { %9003 = vmatprep.subr.mxu1 %v11329_v16 }
  0x7c   : > { %1343 = vxpose.xlu0.b32.start.end [1/1] (short) %v159_v4, 128 }
  0x7d   : > { %3685 = vxpose.xlu1.b32.start.end [1/1] (short) %v165_v17, 128 }
  0xbf   : > { %v187_v18 = vpop.trf.xlu0 }
  0xc0   : > { %v205_v19 = vsel %vm203_vm0, %v187_v18, 0 }
  0xc1   : > { %v11334_v20 = vand.u32 4294901760, %v205_v19 }
  0xc3   : > { %v11337_v21 = vsub.f32 %v205_v19, %v11334_v20  ;;  %v188_v22 = vpop.trf.xlu0 }
  0xc4   : > { %v208_v23 = vsel %vm203_vm0, %v188_v22, 0 }
  0xc5   : > { %v11340_v24 = vand.u32 4294901760, %v208_v23  ;;  %v13299_v25 = vand.u32 4294901760, %v11337_v21 }
  0xc7   : > { %v11344_v26 = vsub.f32 %v208_v23, %v11340_v24  ;;  %v189_v27 = vpop.trf.xlu0  ;;  %v321_v28 = vsub.f32 %v11337_v21, %v13299_v25 }
  0xc8   : > { %v211_v29 = vsel %vm203_vm0, %v189_v27, 0 }
  0xc9   : > { %v13298_v30 = vand.u32 4294901760, %v11344_v26  ;;  %v11351_v31 = vand.u32 4294901760, %v211_v29  ;;  %v322_v32 = vand.u32 4294901760, %v321_v28 }
  0xcb   : > { %v11354_v33 = vsub.f32 %v211_v29, %v11351_v31  ;;  %8823 = vmatprep.mubr.f32.mxu0 %v322_v32  ;;  %v190_v34 = vpop.trf.xlu0  ;;  %v331_v35 = vsub.f32 %v11344_v26, %v13298_v30 }
  0xcc   : > { %v214_v36 = vsel %vm203_vm0, %v190_v34, 0 }
  0xcd   : > { %v13296_v37 = vand.u32 4294901760, %v11354_v33  ;;  %v11361_v38 = vand.u32 4294901760, %v214_v36  ;;  %v332_v39 = vand.u32 4294901760, %v331_v35 }
  0xcf   : > { %v11364_v40 = vsub.f32 %v214_v36, %v11361_v38  ;;  %v191_v41 = vpop.trf.xlu0  ;;  %8824 = vmatmul.mubr.f32.vlgmr.msra.gmra.mrb[0].mxu0 %v332_v39  ;;  %v341_v42 = vsub.f32 %v11354_v33, %v13296_v37 }
  0xd0   : > { %v217_v43 = vsel %vm203_vm0, %v191_v41, 0  ;;  %8848 = vmatpush3.msra.mxu0 %v483_v9 }
  0xd1   : > { %v13295_v44 = vand.u32 4294901760, %v11364_v40  ;;  %v11371_v45 = vand.u32 4294901760, %v217_v43  ;;  %v342_v46 = vand.u32 4294901760, %v341_v42  ;;  %8873 = vmatprep.subr.mxu0 %v11309_v6 }
  0xd3   : > { %v11375_v47 = vsub.f32 %v217_v43, %v11371_v45  ;;  %v192_v48 = vpop.trf.xlu0  ;;  %8826 = vmatprep.mubr.f32.mxu0 %v342_v46  ;;  %v351_v49 = vsub.f32 %v11364_v40, %v13295_v44 }
  0xd4   : > { %v220_v50 = vsel %vm203_vm0, %v192_v48, 0 }
  0xd5   : > { %v13293_v51 = vand.u32 4294901760, %v11375_v47  ;;  %v11382_v52 = vand.u32 4294901760, %v220_v50  ;;  %v352_v53 = vand.u32 4294901760, %v351_v49 }
  0xd7   : > { %v11385_v54 = vsub.f32 %v220_v50, %v11382_v52  ;;  %v193_v55 = vpop.trf.xlu0  ;;  %8827 = vmatmul.mubr.f32.gmra.mrb[2].mxu0 %v352_v53  ;;  %v361_v56 = vsub.f32 %v11375_v47, %v13293_v51 }
  0xd8   : > { %v223_v57 = vsel %vm203_vm0, %v193_v55, 0 }
  0xd9   : > { %v13292_v58 = vand.u32 4294901760, %v11385_v54  ;;  %v11392_v59 = vand.u32 4294901760, %v223_v57  ;;  %v362_v60 = vand.u32 4294901760, %v361_v56 }
  0xdb   : > { %v11395_v61 = vsub.f32 %v223_v57, %v11392_v59  ;;  %v194_v62 = vpop.trf.xlu0  ;;  %8829 = vmatprep.mubr.f32.mxu0 %v362_v60  ;;  %v371_v63 = vsub.f32 %v11385_v54, %v13292_v58 }
  0xdc   : > { %v226_v0 = vsel %vm203_vm0, %v194_v62, 0 }
  0xdd   : > { %v13290_v1 = vand.u32 4294901760, %v11395_v61  ;;  %v11402_v2 = vand.u32 4294901760, %v226_v0  ;;  %v372_v4 = vand.u32 4294901760, %v371_v63 }
  0xdf   : > { %v11405_v5 = vsub.f32 %v226_v0, %v11402_v2  ;;  %v195_v8 = vpop.trf.xlu0  ;;  %8830 = vmatmul.mubr.f32.gmra.mrb[4].mxu0 %v372_v4  ;;  %v381_v9 = vsub.f32 %v11395_v61, %v13290_v1 }
  0xe0   : > { %v229_v10 = vsel %vm203_vm0, %v195_v8, 0 }
  0xe1   : > { %v13289_v11 = vand.u32 4294901760, %v11405_v5  ;;  %v11412_v15 = vand.u32 4294901760, %v229_v10  ;;  %v382_v17 = vand.u32 4294901760, %v381_v9 }
  0xe3   : > { %v11415_v18 = vsub.f32 %v229_v10, %v11412_v15  ;;  %v196_v19 = vpop.trf.xlu0  ;;  %8832 = vmatprep.mubr.f32.mxu0 %v382_v17  ;;  %v391_v22 = vsub.f32 %v11405_v5, %v13289_v11 }
  0xe4   : > { %v232_v23 = vsel %vm203_vm0, %v196_v19, 0 }
  0xe5   : > { %v13287_v27 = vand.u32 4294901760, %v11415_v18  ;;  %v11422_v28 = vand.u32 4294901760, %v232_v23  ;;  %v392_v29 = vand.u32 4294901760, %v391_v22 }
  0xe7   : > { %13422 = vst [vmem:[#allocation8_spill] sm:$0xff] %v11422_v28  ;;  %v11425_v32 = vsub.f32 %v232_v23, %v11422_v28  ;;  %v197_v34 = vpop.trf.xlu0  ;;  %8833 = vmatmul.mubr.f32.gmra.mrb[6].mxu0 %v392_v29  ;;  %v401_v35 = vsub.f32 %v11415_v18, %v13287_v27 }
  0xe8   : > { %v235_v36 = vsel %vm203_vm0, %v197_v34, 0 }
  0xe9   : > { %v13285_v39 = vand.u32 4294901760, %v11425_v32  ;;  %v11432_v41 = vand.u32 4294901760, %v235_v36  ;;  %v402_v42 = vand.u32 4294901760, %v401_v35 }
  0xeb   : > { %13423 = vst [vmem:[#allocation9_spill] sm:$0xff] %v11432_v41  ;;  %v11435_v43 = vsub.f32 %v235_v36, %v11432_v41  ;;  %v198_v46 = vpop.trf.xlu0  ;;  %8835 = vmatprep.mubr.f32.mxu0 %v402_v42  ;;  %v411_v48 = vsub.f32 %v11425_v32, %v13285_v39 }
  0xec   : > { %v238_v49 = vsel %vm203_vm0, %v198_v46, 0 }
  0xed   : > { %v13283_v50 = vand.u32 4294901760, %v11435_v43  ;;  %v11442_v53 = vand.u32 4294901760, %v238_v49  ;;  %v412_v55 = vand.u32 4294901760, %v411_v48 }
  0xef   : > { %13424 = vst [vmem:[#allocation10_spill] sm:$0xff] %v11442_v53  ;;  %v11445_v56 = vsub.f32 %v238_v49, %v11442_v53  ;;  %v199_v57 = vpop.trf.xlu0  ;;  %8836 = vmatmul.mubr.f32.gmra.mrb[8].mxu0 %v412_v55  ;;  %v421_v60 = vsub.f32 %v11435_v43, %v13283_v50 }
  0xf0   : > { %v241_v62 = vsel %vm203_vm0, %v199_v57, 0 }
  0xf1   : > { %v13281_v63 = vand.u32 4294901760, %v11445_v56  ;;  %v11452_v0 = vand.u32 4294901760, %v241_v62  ;;  %v422_v4 = vand.u32 4294901760, %v421_v60 }
  0xf3   : > { %13425 = vst [vmem:[#allocation11_spill] sm:$0xff] %v11452_v0  ;;  %v11455_v8 = vsub.f32 %v241_v62, %v11452_v0  ;;  %v200_v9 = vpop.trf.xlu0  ;;  %8838 = vmatprep.mubr.f32.mxu0 %v422_v4  ;;  %v431_v10 = vsub.f32 %v11445_v56, %v13281_v63 }
  0xf4   : > { %v244_v17 = vsel %vm203_vm0, %v200_v9, 0 }
  0xf5   : > { %v13279_v19 = vand.u32 4294901760, %v11455_v8  ;;  %v11462_v22 = vand.u32 4294901760, %v244_v17  ;;  %v432_v23 = vand.u32 4294901760, %v431_v10 }
  0xf7   : > { %13426 = vst [vmem:[#allocation12_spill] sm:$0xff] %v11462_v22  ;;  %v11465_v29 = vsub.f32 %v244_v17, %v11462_v22  ;;  %v201_v34 = vpop.trf.xlu0  ;;  %8839 = vmatmul.mubr.f32.gmra.mrb[10].mxu0 %v432_v23  ;;  %v441_v35 = vsub.f32 %v11455_v8, %v13279_v19 }
  0xf8   : > { %v247_v36 = vsel %vm203_vm0, %v201_v34, 0 }
  0xf9   : > { %v13277_v42 = vand.u32 4294901760, %v11465_v29  ;;  %v11472_v46 = vand.u32 4294901760, %v247_v36  ;;  %v442_v48 = vand.u32 4294901760, %v441_v35 }
  0xfb   : > { %13427 = vst [vmem:[#allocation13_spill] sm:$0xff] %v11472_v46  ;;  %v11475_v49 = vsub.f32 %v247_v36, %v11472_v46  ;;  %v202_v55 = vpop.trf.xlu0  ;;  %8841 = vmatprep.mubr.f32.mxu0 %v442_v48  ;;  %v451_v57 = vsub.f32 %v11465_v29, %v13277_v42 }
  0xfc   : > { %v250_v60 = vsel %vm203_vm0, %v202_v55, 0 }
  0xfd   : > { %v13278_v62 = vand.u32 4294901760, %v11475_v49  ;;  %v11482_v4 = vand.u32 4294901760, %v250_v60  ;;  %v452_v9 = vand.u32 4294901760, %v451_v57 }
  0xff   : > { %13428 = vst [vmem:[#allocation14_spill] sm:$0xff] %v11482_v4  ;;  %v11485_v10 = vsub.f32 %v250_v60, %v11482_v4  ;;  %v1359_v17 = vpop.trf.xlu0  ;;  %8842 = vmatmul.mubr.f32.gmra.mrb[12].mxu0 %v452_v9  ;;  %v461_v23 = vsub.f32 %v11475_v49, %v13278_v62 }
 0x100   : > { %v1376_v34 = vsel %vm203_vm0, %v1359_v17, 0 }
 0x101   : > { %v13280_v35 = vand.u32 4294901760, %v11485_v10  ;;  %v11492_v36 = vand.u32 4294901760, %v1376_v34  ;;  %v462_v48 = vand.u32 4294901760, %v461_v23 }
 0x103   : > { %v11495_v55 = vsub.f32 %v1376_v34, %v11492_v36  ;;  %v1360_v57 = vpop.trf.xlu0  ;;  %8844 = vmatprep.mubr.f32.mxu0 %v462_v48  ;;  %v471_v60 = vsub.f32 %v11485_v10, %v13280_v35 }
 0x104   : > { %v1379_v9 = vsel %vm203_vm0, %v1360_v57, 0 }
 0x105   : > { %v11501_v42 = vand.u32 4294901760, %v1379_v9  ;;  %v472_v62 = vand.u32 4294901760, %v471_v60  ;;  %v13282_v17 = vand.u32 4294901760, %v11495_v55 }
 0x107   : > { %v11505_v19 = vsub.f32 %v1379_v9, %v11501_v42  ;;  %v1361_v23 = vpop.trf.xlu0  ;;  %8845 = vmatmul.mubr.f32.gmra.mrb[14].mxu0 %v472_v62  ;;  %v1492_v34 = vsub.f32 %v11495_v55, %v13282_v17 }
 0x108   : > { %v1382_v48 = vsel %vm203_vm0, %v1361_v23, 0  ;;  %8849 = vmatprep.mubr.f32.mxu0 %v11334_v20 }
 0x109   : > { %v13284_v57 = vand.u32 4294901760, %v11505_v19  ;;  %v11513_v35 = vand.u32 4294901760, %v1382_v48  ;;  %v1493_v60 = vand.u32 4294901760, %v1492_v34 }
 0x10b   : > { %v11516_v63 = vsub.f32 %v1382_v48, %v11513_v35  ;;  %8979 = vmatprep.mubr.f32.mxu1 %v1493_v60  ;;  %v1362_v9 = vpop.trf.xlu0  ;;  %8850 = vmatmul.mubr.f32.vlgmr.msra.gmra.mrb[0].mxu0 %v11340_v24  ;;  %v1502_v62 = vsub.f32 %v11505_v19, %v13284_v57 }
 0x10c   : > { %v1385_v23 = vsel %vm203_vm0, %v1362_v9, 0  ;;  %8852 = vmatprep.mubr.f32.mxu0 %v11351_v31  ;;  %8874 = vmatpush3.msra.mxu0 %v11309_v6 }
 0x10d   : > { %v13286_v17 = vand.u32 4294901760, %v11516_v63  ;;  %v11526_v34 = vand.u32 4294901760, %v1385_v23  ;;  %v1503_v48 = vand.u32 4294901760, %v1502_v62  ;;  %8899 = vmatprep.subr.mxu0 %v11302_v3 }
 0x10f   : > { %v11530_v60 = vsub.f32 %v1385_v23, %v11526_v34  ;;  %8980 = vmatmul.mubr.f32.vlgmr.msra.gmra.mrb[0].mxu1 %v1503_v48  ;;  %v1363_v50 = vpop.trf.xlu0  ;;  %8853 = vmatmul.mubr.f32.gmra.mrb[16].mxu0 %v11361_v38  ;;  %v1512_v9 = vsub.f32 %v11516_v63, %v13286_v17 }
 0x110   : > { %v1388_v6 = vsel %vm203_vm0, %v1363_v50, 0  ;;  %8855 = vmatprep.mubr.f32.mxu0 %v11371_v45  ;;  %9004 = vmatpush3.msra.mxu1 %v11329_v16 }
 0x111   : > { %v13288_v62 = vand.u32 4294901760, %v11530_v60  ;;  %v11540_v57 = vand.u32 4294901760, %v1388_v6  ;;  %v1513_v23 = vand.u32 4294901760, %v1512_v9  ;;  %9029 = vmatprep.subr.mxu1 %v11322_v13 }
 0x113   : > { %v11544_v48 = vsub.f32 %v1388_v6, %v11540_v57  ;;  %8982 = vmatprep.mubr.f32.mxu1 %v1513_v23  ;;  %v1364_v39 = vpop.trf.xlu0  ;;  %8856 = vmatmul.mubr.f32.gmra.mrb[18].mxu0 %v11382_v52  ;;  %v1522_v50 = vsub.f32 %v11530_v60, %v13288_v62 }
 0x114   : > { %v1391_v16 = vsel %vm203_vm0, %v1364_v39, 0  ;;  %8858 = vmatprep.mubr.f32.mxu0 %v11392_v59 }
 0x115   : > { %v13291_v17 = vand.u32 4294901760, %v11544_v48  ;;  %v11553_v9 = vand.u32 4294901760, %v1391_v16  ;;  %v1523_v27 = vand.u32 4294901760, %v1522_v50 }
 0x117   : > { %v11556_v6 = vsub.f32 %v1391_v16, %v11553_v9  ;;  %8983 = vmatmul.mubr.f32.gmra.mrb[2].mxu1 %v1523_v27  ;;  %v1365_v23 = vpop.trf.xlu0  ;;  %8859 = vmatmul.mubr.f32.gmra.mrb[20].mxu0 %v11402_v2  ;;  %v1532_v62 = vsub.f32 %v11544_v48, %v13291_v17 }
 0x118   : > { %v1394_v39 = vsel %vm203_vm0, %v1365_v23, 0  ;;  %8861 = vmatprep.mubr.f32.mxu0 %v11412_v15 }
 0x119   : > { %v13294_v11 = vand.u32 4294901760, %v11556_v6  ;;  %v11565_v1 = vand.u32 4294901760, %v1394_v39  ;;  %v1533_v50 = vand.u32 4294901760, %v1532_v62 }
 0x11b   : > { %v11568_v16 = vsub.f32 %v1394_v39, %v11565_v1  ;;  %8985 = vmatprep.mubr.f32.mxu1 %v1533_v50  ;;  %v1366_v27 = vpop.trf.xlu0  ;;  %8862 = vmatmul.mubr.f32.gmra.mrb[22].mxu0 %v11422_v28  ;;  %v1542_v17 = vsub.f32 %v11556_v6, %v13294_v11  ;;  %v11653_v28 = vpop.trf.xlu1 }
 0x11c   : > { %v1397_v23 = vsel %vm203_vm0, %v1366_v27, 0  ;;  %8864 = vmatprep.mubr.f32.mxu0 %v11432_v41  ;;  %13438 = vst [vmem:[#allocation24_spill] sm:$0xff] %v11653_v28 }
 0x11d   : > { %v13297_v58 = vand.u32 4294901760, %v11568_v16  ;;  %v11577_v51 = vand.u32 4294901760, %v1397_v23  ;;  %v1543_v62 = vand.u32 4294901760, %v1542_v17 }
 0x11f   : > { %v11580_v39 = vsub.f32 %v1397_v23, %v11577_v51  ;;  %8986 = vmatmul.mubr.f32.gmra.mrb[4].mxu1 %v1543_v62  ;;  %v1367_v50 = vpop.trf.xlu0  ;;  %8865 = vmatmul.mubr.f32.gmra.mrb[24].mxu0 %v11442_v53  ;;  %v1552_v11 = vsub.f32 %v11568_v16, %v13297_v58 }
 0x120   : > { %v1400_v27 = vsel %vm203_vm0, %v1367_v50, 0  ;;  %8867 = vmatprep.mubr.f32.mxu0 %v11452_v0 }
 0x121   : > { %v13300_v44 = vand.u32 4294901760, %v11580_v39  ;;  %v11589_v37 = vand.u32 4294901760, %v1400_v27  ;;  %v1553_v17 = vand.u32 4294901760, %v1552_v11 }
 0x123   : > { %v11592_v23 = vsub.f32 %v1400_v27, %v11589_v37  ;;  %8988 = vmatprep.mubr.f32.mxu1 %v1553_v17  ;;  %v1368_v62 = vpop.trf.xlu0  ;;  %8868 = vmatmul.mubr.f32.gmra.mrb[26].mxu0 %v11462_v22  ;;  %v1562_v58 = vsub.f32 %v11580_v39, %v13300_v44 }
 0x124   : > { %v1403_v50 = vsel %vm203_vm0, %v1368_v62, 0  ;;  %8870 = vmatprep.mubr.f32.mxu0 %v11472_v46 }
 0x125   : > { %13429 = vst [vmem:[#allocation15_spill] sm:$0xff] %v11592_v23  ;;  %v13305_v30 = vand.u32 4294901760, %v11592_v23  ;;  %v11601_v25 = vand.u32 4294901760, %v1403_v50  ;;  %v1563_v11 = vand.u32 4294901760, %v1562_v58 }
 0x127   : > { %v11604_v27 = vsub.f32 %v1403_v50, %v11601_v25  ;;  %8989 = vmatmul.mubr.f32.gmra.mrb[6].mxu1 %v1563_v11  ;;  %v1369_v17 = vpop.trf.xlu0  ;;  %8871 = vmatmul.mubr.f32.gmra.mrb[28].mxu0 %v11482_v4  ;;  %v1572_v44 = vsub.f32 %v11592_v23, %v13305_v30 }
 0x128   : > { %v1406_v62 = vsel %vm203_vm0, %v1369_v17, 0  ;;  %8875 = vmatprep.mubr.f32.mxu0 %v11337_v21 }
 0x129   : > { %13430 = vst [vmem:[#allocation16_spill] sm:$0xff] %v11604_v27  ;;  %v13310_v46 = vand.u32 4294901760, %v11604_v27  ;;  %v11613_v22 = vand.u32 4294901760, %v1406_v62  ;;  %v1573_v58 = vand.u32 4294901760, %v1572_v44 }
 0x12b   : > { %13431 = vst [vmem:[#allocation17_spill] sm:$0xff] %v11613_v22  ;;  %v11616_v50 = vsub.f32 %v1406_v62, %v11613_v22  ;;  %8991 = vmatprep.mubr.f32.mxu1 %v1573_v58  ;;  %v1370_v11 = vpop.trf.xlu0  ;;  %8876 = vmatmul.mubr.f32.vlgmr.msra.gmra.mrb[0].mxu0 %v11344_v26  ;;  %v1582_v30 = vsub.f32 %v11604_v27, %v13310_v46 }
 0x12c   : > { %v1409_v17 = vsel %vm203_vm0, %v1370_v11, 0  ;;  %8878 = vmatprep.mubr.f32.mxu0 %v11354_v33  ;;  %8900 = vmatpush3.msra.mxu0 %v11302_v3 }
 0x12d   : > { %13432 = vst [vmem:[#allocation18_spill] sm:$0xff] %v11616_v50  ;;  %v13315_v4 = vand.u32 4294901760, %v11616_v50  ;;  %v11626_v44 = vand.u32 4294901760, %v1409_v17  ;;  %v1583_v62 = vand.u32 4294901760, %v1582_v30  ;;  %8925 = vmatprep.subr.mxu0 %v11312_v7 }
 0x12f   : > { %13433 = vst [vmem:[#allocation19_spill] sm:$0xff] %v11626_v44  ;;  %v11630_v58 = vsub.f32 %v1409_v17, %v11626_v44  ;;  %8992 = vmatmul.mubr.f32.gmra.mrb[8].mxu1 %v1583_v62  ;;  %v1371_v0 = vpop.trf.xlu0  ;;  %8879 = vmatmul.mubr.f32.gmra.mrb[30].mxu0 %v11364_v40  ;;  %v1592_v11 = vsub.f32 %v11616_v50, %v13315_v4 }
 0x130   : > { %v1412_v46 = vsel %vm203_vm0, %v1371_v0, 0  ;;  %8881 = vmatprep.mubr.f32.mxu0 %v11375_v47 }
 0x131   : > { %13434 = vst [vmem:[#allocation20_spill] sm:$0xff] %v11630_v58  ;;  %v13322_v53 = vand.u32 4294901760, %v11630_v58  ;;  %v11639_v30 = vand.u32 4294901760, %v1412_v46  ;;  %v1593_v41 = vand.u32 4294901760, %v1592_v11 }
 0x133   : > { %13435 = vst [vmem:[#allocation21_spill] sm:$0xff] %v11639_v30  ;;  %v11642_v17 = vsub.f32 %v1412_v46, %v11639_v30  ;;  %8994 = vmatprep.mubr.f32.mxu1 %v1593_v41  ;;  %v1372_v62 = vpop.trf.xlu0  ;;  %8882 = vmatmul.mubr.f32.gmra.mrb[32].mxu0 %v11385_v54  ;;  %v1602_v4 = vsub.f32 %v11630_v58, %v13322_v53 }
 0x134   : > { %v1415_v0 = vsel %vm203_vm0, %v1372_v62, 0  ;;  %8884 = vmatprep.mubr.f32.mxu0 %v11395_v61 }
 0x135   : > { %13436 = vst [vmem:[#allocation22_spill] sm:$0xff] %v11642_v17  ;;  %v13325_v50 = vand.u32 4294901760, %v11642_v17  ;;  %v11651_v27 = vand.u32 4294901760, %v1415_v0  ;;  %v1603_v11 = vand.u32 4294901760, %v1602_v4 }
 0x137   : > { %13437 = vst [vmem:[#allocation23_spill] sm:$0xff] %v11651_v27  ;;  %v11656_v41 = vsub.f32 %v1415_v0, %v11651_v27  ;;  %8995 = vmatmul.mubr.f32.gmra.mrb[10].mxu1 %v1603_v11  ;;  %v1373_v46 = vpop.trf.xlu0  ;;  %8885 = vmatmul.mubr.f32.gmra.mrb[34].mxu0 %v11405_v5  ;;  %v1612_v62 = vsub.f32 %v11642_v17, %v13325_v50  ;;  %v11674_v17 = vpop.trf.xlu1 }
 0x138   : > { %v1418_v53 = vsel %vm203_vm0, %v1373_v46, 0  ;;  %8887 = vmatprep.mubr.f32.mxu0 %v11415_v18  ;;  %13441 = vst [vmem:[#allocation27_spill] sm:$0xff] %v11674_v17 }
 0x139   : > { %13439 = vst [vmem:[#allocation25_spill] sm:$0xff] %v11656_v41  ;;  %v13330_v58 = vand.u32 4294901760, %v11656_v41  ;;  %v11665_v4 = vand.u32 4294901760, %v1418_v53  ;;  %v1613_v28 = vand.u32 4294901760, %v1612_v62 }
 0x13b   : > { %13440 = vst [vmem:[#allocation26_spill] sm:$0xff] %v11665_v4  ;;  %v11668_v0 = vsub.f32 %v1418_v53, %v11665_v4  ;;  %8997 = vmatprep.mubr.f32.mxu1 %v1613_v28  ;;  %v1374_v11 = vpop.trf.xlu0  ;;  %8888 = vmatmul.mubr.f32.gmra.mrb[36].mxu0 %v11425_v32  ;;  %v1622_v50 = vsub.f32 %v11656_v41, %v13330_v58  ;;  %v11690_v41 = vpop.trf.xlu1 }
 0x13c   : > { %v1421_v46 = vsel %vm203_vm0, %v1374_v11, 0  ;;  %8890 = vmatprep.mubr.f32.mxu0 %v11435_v43 }
 0x13d   : > { %v13333_v23 = vand.u32 4294901760, %v11668_v0  ;;  %v11679_v62 = vand.u32 4294901760, %v1421_v46  ;;  %v1623_v53 = vand.u32 4294901760, %v1622_v50 }
 0x13f   : > { %13442 = vst [vmem:[#allocation28_spill] sm:$0xff] %v11679_v62  ;;  %v11682_v28 = vsub.f32 %v1421_v46, %v11679_v62  ;;  %8891 = vmatmul.mubr.f32.gmra.mrb[38].mxu0 %v11445_v56  ;;  %8998 = vmatmul.mubr.f32.gmra.mrb[12].mxu1 %v1623_v53  ;;  %v1632_v58 = vsub.f32 %v11668_v0, %v13333_v23  ;;  %v11698_v53 = vpop.trf.xlu1  ;;  %v13443_v23 = vand.u32 4294901760, %v11337_v21  ;;  %v13446_v21 = vand.u32 4294901760, %v11364_v40 }
 0x140   : > { %8893 = vmatprep.mubr.f32.mxu0 %v11455_v8  ;;  %v13450_v40 = vand.u32 4294901760, %v11405_v5  ;;  %v13454_v5 = vand.u32 4294901760, %v11445_v56 }
 0x141   : > { %v13334_v11 = vand.u32 4294901760, %v11682_v28  ;;  %v1633_v17 = vand.u32 4294901760, %v1632_v58  ;;  %v13444_v58 = vand.u32 4294901760, %v11344_v26  ;;  %v13448_v26 = vand.u32 4294901760, %v11385_v54 }
 0x143   : > { %8894 = vmatmul.mubr.f32.gmra.mrb[40].mxu0 %v11465_v29  ;;  %9000 = vmatprep.mubr.f32.mxu1 %v1633_v17  ;;  %v1642_v50 = vsub.f32 %v11682_v28, %v13334_v11  ;;  %v13445_v17 = vand.u32 4294901760, %v11354_v33  ;;  %v13449_v33 = vand.u32 4294901760, %v11395_v61  ;;  %v13453_v61 = vand.u32 4294901760, %v11435_v43  ;;  %v161_v43 = vld [vmem:[%s11294_s4 + $0x30] sm:$0xff]  ;;  %v13470_v11 = vld [vmem:[#allocation13_spill] sm:$0xff] }
 0x144   : > { %8896 = vmatprep.mubr.f32.mxu0 %v11475_v49 }
 0x145   : > { %v1643_v46 = vand.u32 4294901760, %v1642_v50  ;;  %v11711_v50 = vpop.trf.xlu1 }
 0x147   : > { %8897 = vmatmul.mubr.f32.gmra.mrb[42].mxu0 %v11485_v10  ;;  %9001 = vmatmul.mubr.f32.gmra.mrb[14].mxu1 %v1643_v46  ;;  %v13455_v46 = vand.u32 4294901760, %v11455_v8 }
 0x148   : > { %8901 = vmatprep.mubr.f32.mxu0 %v13443_v23  ;;  %9005 = vmatprep.mubr.f32.mxu1 %v11492_v36  ;;  %v13452_v23 = vand.u32 4294901760, %v11425_v32  ;;  %v13456_v32 = vand.u32 4294901760, %v11465_v29 }
 0x14b   : > { %8902 = vmatmul.mubr.f32.vlgmr.msra.gmra.mrb[0].mxu0 %v13444_v58  ;;  %9006 = vmatmul.mubr.f32.vlgmr.msra.gmra.mrb[0].mxu1 %v11501_v42  ;;  %v13457_v58 = vand.u32 4294901760, %v11475_v49 }
 0x14c   : > { %9030 = vmatpush3.msra.mxu1 %v11322_v13  ;;  %8904 = vmatprep.mubr.f32.mxu0 %v13445_v17  ;;  %v13447_v13 = vand.u32 4294901760, %v11375_v47  ;;  %v13451_v47 = vand.u32 4294901760, %v11415_v18  ;;  %v169_v17 = vmul.f32 0.35355338, %v161_v43  ;;  %v13468_v43 = vld [vmem:[#allocation12_spill] sm:$0xff] }
 0x14d   : > { %9008 = vmatprep.mubr.f32.mxu1 %v11513_v35  ;;  %8926 = vmatpush3.msra.mxu0 %v11312_v7  ;;  %v11724_v7 = vpop.trf.xlu1 }
 0x14e   : > { %9055 = vmatprep.subr.mxu1 %v11317_v12  ;;  %8951 = vmatprep.subr.mxu0 %v11302_v3  ;;  %v11765_v8 = vand.u32 4294901760, %v169_v17 }
 0x14f   : > { %8905 = vmatmul.mubr.f32.gmra.mrb[44].mxu0 %v13446_v21  ;;  %9009 = vmatmul.mubr.f32.gmra.mrb[16].mxu1 %v11526_v34  ;;  %v13458_v21 = vand.u32 4294901760, %v11485_v10  ;;  %v13459_v10 = vld [vmem:[#allocation15_spill] sm:$0xff] }
 0x150   : > { %8907 = vmatprep.mubr.f32.mxu0 %v13447_v13  ;;  %9011 = vmatprep.mubr.f32.mxu1 %v11540_v57  ;;  %v13460_v13 = vld [vmem:[#allocation8_spill] sm:$0xff] }
 0x151   : > { %v11735_v54 = vpop.trf.xlu1 }
 0x153   : > { %8908 = vmatmul.mubr.f32.gmra.mrb[46].mxu0 %v13448_v26  ;;  %9012 = vmatmul.mubr.f32.gmra.mrb[18].mxu1 %v11553_v9  ;;  %v13461_v26 = vld [vmem:[#allocation16_spill] sm:$0xff] }
 0x154   : > { %8910 = vmatprep.mubr.f32.mxu0 %v13449_v33  ;;  %9014 = vmatprep.mubr.f32.mxu1 %v11565_v1  ;;  %v13462_v33 = vld [vmem:[#allocation9_spill] sm:$0xff] }
 0x155   : > { %v11746_v18 = vpop.trf.xlu1 }
 0x157   : > { %8911 = vmatmul.mubr.f32.gmra.mrb[48].mxu0 %v13450_v40  ;;  %9015 = vmatmul.mubr.f32.gmra.mrb[20].mxu1 %v11577_v51  ;;  %v13463_v40 = vld [vmem:[#allocation18_spill] sm:$0xff] }
 0x158   : > { %8913 = vmatprep.mubr.f32.mxu0 %v13451_v47  ;;  %9017 = vmatprep.mubr.f32.mxu1 %v11589_v37 }
 0x159   : > { %v11758_v56 = vpop.trf.xlu1 }
 0x15b   : > { %8914 = vmatmul.mubr.f32.gmra.mrb[50].mxu0 %v13452_v23  ;;  %9018 = vmatmul.mubr.f32.gmra.mrb[22].mxu1 %v11601_v25  ;;  %v13464_v23 = vld [vmem:[#allocation10_spill] sm:$0xff] }
 0x15c   : > { %8916 = vmatprep.mubr.f32.mxu0 %v13453_v61  ;;  %9020 = vmatprep.mubr.f32.mxu1 %v11613_v22  ;;  %v13465_v61 = vld [vmem:[#allocation20_spill] sm:$0xff]  ;;  %v13474_v22 = vand.u32 4294901760, %v11516_v63 }
 0x15d   : > { %v11769_v29 = vpop.trf.xlu1 }
 0x15f   : > { %8917 = vmatmul.mubr.f32.gmra.mrb[52].mxu0 %v13454_v5  ;;  %9021 = vmatmul.mubr.f32.gmra.mrb[24].mxu1 %v11626_v44  ;;  %v13466_v5 = vld [vmem:[#allocation11_spill] sm:$0xff]  ;;  %v13473_v44 = vand.u32 4294901760, %v11505_v19 }
 0x160   : > { %8919 = vmatprep.mubr.f32.mxu0 %v13455_v46  ;;  %9023 = vmatprep.mubr.f32.mxu1 %v11639_v30  ;;  %v13467_v46 = vld [vmem:[#allocation22_spill] sm:$0xff] }
 0x161   : > { %v11781_v49 = vpop.trf.xlu1 }
 0x163   : > { %8920 = vmatmul.mubr.f32.gmra.mrb[54].mxu0 %v13456_v32  ;;  %9024 = vmatmul.mubr.f32.gmra.mrb[26].mxu1 %v11651_v27  ;;  %v11804_v32 = vsub.f32 %v169_v17, %v11765_v8  ;;  %v13472_v17 = vand.u32 4294901760, %v11495_v55 }
 0x164   : > { %8922 = vmatprep.mubr.f32.mxu0 %v13457_v58  ;;  %9026 = vmatprep.mubr.f32.mxu1 %v11665_v4  ;;  %v13469_v58 = vld [vmem:[#allocation25_spill] sm:$0xff]  ;;  %v13471_v4 = vld [vmem:[#allocation14_spill] sm:$0xff] }
 0x167   : > { %8923 = vmatmul.mubr.f32.gmra.mrb[56].mxu0 %v13458_v21  ;;  %9027 = vmatmul.mubr.f32.gmra.mrb[28].mxu1 %v11679_v62  ;;  %v11813_v62 = vand.u32 4294901760, %v11804_v32 }
 0x168   : > { %8927 = vmatprep.mubr.f32.mxu0 %v11334_v20  ;;  %9031 = vmatprep.mubr.f32.mxu1 %v11495_v55 }
 0x169   : > { %v2824_v30 = vsub.f32 %v11804_v32, %v11813_v62 }
 0x16b   : > { %8928 = vmatmul.mubr.f32.vlgmr.msra.gmra.mrb[0].mxu0 %v11340_v24  ;;  %9032 = vmatmul.mubr.f32.vlgmr.msra.gmra.mrb[0].mxu1 %v11505_v19 }
 0x16c   : > { %9056 = vmatpush3.msra.mxu1 %v11317_v12  ;;  %8930 = vmatprep.mubr.f32.mxu0 %v11351_v31 }
 0x16d   : > { %9034 = vmatprep.mubr.f32.mxu1 %v11516_v63  ;;  %8952 = vmatpush3.msra.mxu0 %v11302_v3  ;;  %v11789_v3 = vpop.trf.xlu1 }
 0x16e   : > { %9081 = vmatprep.subr.mxu1 %v11325_v14  ;;  %9133 = vmatprep.subr.mxu0 %v11765_v8 }
 0x16f   : > { %8931 = vmatmul.mubr.f32.gmra.mrb[58].mxu0 %v11361_v38  ;;  %9035 = vmatmul.mubr.f32.gmra.mrb[30].mxu1 %v11530_v60 }
 0x170   : > { %8933 = vmatprep.mubr.f32.mxu0 %v11371_v45  ;;  %9037 = vmatprep.mubr.f32.mxu1 %v11544_v48 }
 0x171   : > { %v11797_v47 = vpop.trf.xlu1 }
 0x173   : > { %8934 = vmatmul.mubr.f32.gmra.mrb[60].mxu0 %v11382_v52  ;;  %9038 = vmatmul.mubr.f32.gmra.mrb[32].mxu1 %v11556_v6 }
 0x174   : > { %8936 = vmatprep.mubr.f32.mxu0 %v11392_v59  ;;  %9040 = vmatprep.mubr.f32.mxu1 %v11568_v16 }
 0x175   : > { %v11808_v21 = vpop.trf.xlu1 }
 0x177   : > { %8937 = vmatmul.mubr.f32.gmra.mrb[62].mxu0 %v11402_v2  ;;  %9041 = vmatmul.mubr.f32.gmra.mrb[34].mxu1 %v11580_v39 }
 0x178   : > { %8939 = vmatprep.mubr.f32.mxu0 %v11412_v15  ;;  %9043 = vmatprep.mubr.f32.mxu1 %v13459_v10 }
 0x179   : > { %v11820_v27 = vpop.trf.xlu1 }
 0x17b   : > { %8940 = vmatmul.mubr.f32.gmra.mrb[64].mxu0 %v13460_v13  ;;  %9044 = vmatmul.mubr.f32.gmra.mrb[36].mxu1 %v13461_v26 }
 0x17c   : > { %8942 = vmatprep.mubr.f32.mxu0 %v13462_v33  ;;  %9046 = vmatprep.mubr.f32.mxu1 %v13463_v40 }
 0x17d   : > { %v11838_v19 = vpop.trf.xlu1 }
 0x17f   : > { %8943 = vmatmul.mubr.f32.gmra.mrb[66].mxu0 %v13464_v23  ;;  %9047 = vmatmul.mubr.f32.gmra.mrb[38].mxu1 %v13465_v61 }
 0x180   : > { %8945 = vmatprep.mubr.f32.mxu0 %v13466_v5  ;;  %9049 = vmatprep.mubr.f32.mxu1 %v13467_v46 }
 0x181   : > { %v11852_v55 = vpop.trf.xlu1 }
 0x183   : > { %8946 = vmatmul.mubr.f32.gmra.mrb[68].mxu0 %v13468_v43  ;;  %9050 = vmatmul.mubr.f32.gmra.mrb[40].mxu1 %v13469_v58 }
 0x184   : > { %8948 = vmatprep.mubr.f32.mxu0 %v13470_v11  ;;  %9052 = vmatprep.mubr.f32.mxu1 %v11668_v0 }
 0x187   : > { %8949 = vmatmul.mubr.f32.gmra.mrb[70].mxu0 %v13471_v4  ;;  %9053 = vmatmul.mubr.f32.gmra.mrb[42].mxu1 %v11682_v28 }
 0x188   : > { %8953 = vmatprep.mubr.f32.mxu0 %v11334_v20  ;;  %9057 = vmatprep.mubr.f32.mxu1 %v13472_v17  ;;  %v11832_v20 = vand.u32 4294901760, %v2824_v30  ;;  %v2556_v30 = vsel %vm203_vm0, %v11698_v53, 0 }
 0x189   : > { %v11888_v53 = vand.u32 4294901760, %v2556_v30 }
 0x18b   : > { %8954 = vmatmul.mubr.f32.vlgmr.msra.gmra.mrb[0].mxu0 %v11340_v24  ;;  %9058 = vmatmul.mubr.f32.vlgmr.msra.gmra.mrb[0].mxu1 %v13473_v44  ;;  %v13475_v24 = vand.u32 4294901760, %v11530_v60  ;;  %v13480_v60 = vld [vmem:[#allocation27_spill] sm:$0xff]  ;;  %v13481_v44 = vand.u32 4294901760, %v11580_v39  ;;  %v2559_v39 = vsel %vm203_vm0, %v11711_v50, 0  ;;  %v2562_v50 = vsel %vm203_vm0, %v11724_v7, 0 }
 0x18c   : > { %9082 = vmatpush3.msra.mxu1 %v11325_v14  ;;  %8956 = vmatprep.mubr.f32.mxu0 %v11351_v31  ;;  %v13476_v14 = vand.u32 4294901760, %v11544_v48  ;;  %v13477_v31 = vld [vmem:[#allocation24_spill] sm:$0xff]  ;;  %v2550_v48 = vsel %vm203_vm0, %v13480_v60, 0  ;;  %v13487_v7 = vand.u32 4294901760, %v13467_v46  ;;  %v13488_v60 = vand.u32 4294901760, %v13469_v58 }
 0x18d   : > { %9060 = vmatprep.mubr.f32.mxu1 %v13474_v22  ;;  %9107 = vmatprep.subr.mxu1 %v11317_v12  ;;  %v2547_v63 = vsel %vm203_vm0, %v13477_v31, 0  ;;  %v13478_v22 = vand.u32 4294901760, %v11556_v6  ;;  %v11866_v6 = vand.u32 4294901760, %v2550_v48 }
 0x18e   : > { %9134 = vmatpush3.msra.mxu0 %v11765_v8 }
 0x18f   : > { %8957 = vmatmul.mubr.f32.gmra.mrb[72].mxu0 %v11361_v38  ;;  %9061 = vmatmul.mubr.f32.gmra.mrb[44].mxu1 %v13475_v24  ;;  %v13479_v38 = vand.u32 4294901760, %v11568_v16  ;;  %v11886_v17 = vsub.f32 %v2550_v48, %v11866_v6  ;;  %v11895_v24 = vand.u32 4294901760, %v2559_v39 }
 0x190   : > { %8959 = vmatprep.mubr.f32.mxu0 %v11371_v45  ;;  %9063 = vmatprep.mubr.f32.mxu1 %v13476_v14  ;;  %v11854_v45 = vand.u32 4294901760, %v2547_v63  ;;  %v11903_v14 = vand.u32 4294901760, %v2562_v50 }
 0x191   : > { %9159 = vmatprep.subr.mxu0 %v11832_v20 }
 0x192   : > { %v11869_v16 = vsub.f32 %v2547_v63, %v11854_v45  ;;  %v11912_v63 = vsub.f32 %v2556_v30, %v11888_v53  ;;  %v11932_v48 = vsub.f32 %v2562_v50, %v11903_v14 }
 0x193   : > { %8960 = vmatmul.mubr.f32.gmra.mrb[74].mxu0 %v11382_v52  ;;  %9064 = vmatmul.mubr.f32.gmra.mrb[46].mxu1 %v13478_v22  ;;  %v2553_v52 = vsel %vm203_vm0, %v11690_v41, 0  ;;  %v11880_v41 = vpop.trf.xlu1  ;;  %v11919_v22 = vsub.f32 %v2559_v39, %v11895_v24  ;;  %v2574_v39 = vsel %vm203_vm0, %v11769_v29, 0 }
 0x194   : > { %8962 = vmatprep.mubr.f32.mxu0 %v11392_v59  ;;  %9066 = vmatprep.mubr.f32.mxu1 %v13479_v38  ;;  %v13482_v59 = vand.u32 4294901760, %v13459_v10  ;;  %v13484_v10 = vand.u32 4294901760, %v13463_v40  ;;  %v13485_v40 = vand.u32 4294901760, %v13465_v61  ;;  %v2571_v38 = vsel %vm203_vm0, %v11758_v56, 0 }
 0x195   : > { %v13490_v56 = vand.u32 4294901760, %v11668_v0  ;;  %v13347_v58 = vand.u32 4294901760, %v11912_v63  ;;  %v13348_v30 = vand.u32 4294901760, %v11919_v22  ;;  %v2577_v0 = vsel %vm203_vm0, %v11781_v49, 0 }
 0x196   : > { %v11972_v49 = vand.u32 4294901760, %v2574_v39 }
 0x197   : > { %8963 = vmatmul.mubr.f32.gmra.mrb[76].mxu0 %v11402_v2  ;;  %9067 = vmatmul.mubr.f32.gmra.mrb[48].mxu1 %v13481_v44  ;;  %v11873_v2 = vand.u32 4294901760, %v2553_v52  ;;  %v11916_v61 = vpop.trf.xlu1 }
 0x198   : > { %8965 = vmatprep.mubr.f32.mxu0 %v11412_v15  ;;  %9069 = vmatprep.mubr.f32.mxu1 %v13482_v59  ;;  %v13483_v15 = vand.u32 4294901760, %v13461_v26  ;;  %v13355_v26 = vand.u32 4294901760, %v11869_v16  ;;  %v11946_v59 = vand.u32 4294901760, %v2571_v38  ;;  %13495 = vst [vmem:[#allocation10_spill] sm:$0xff] %v11972_v49 }
 0x19a   : > { %13491 = vst [vmem:[#allocation16_spill] sm:$0xff] %v11946_v59 }
 0x19b   : > { %8966 = vmatmul.mubr.f32.gmra.mrb[78].mxu0 %v13460_v13  ;;  %9070 = vmatmul.mubr.f32.gmra.mrb[50].mxu1 %v13483_v15  ;;  %v2565_v13 = vsel %vm203_vm0, %v11735_v54, 0  ;;  %v13353_v54 = vand.u32 4294901760, %v11886_v17 }
 0x19c   : > { %8968 = vmatprep.mubr.f32.mxu0 %v13462_v33  ;;  %9072 = vmatprep.mubr.f32.mxu1 %v13484_v10  ;;  %v11898_v33 = vsub.f32 %v2553_v52, %v11873_v2  ;;  %v11905_v31 = vand.u32 4294901760, %v2565_v13 }
 0x19e   : > { %13486 = vst [vmem:[#allocation15_spill] sm:$0xff] %v11905_v31  ;;  %v13351_v46 = vand.u32 4294901760, %v11898_v33  ;;  %v11935_v44 = vsub.f32 %v2565_v13, %v11905_v31  ;;  %v11961_v13 = vpop.trf.xlu1 }
 0x19f   : > { %8969 = vmatmul.mubr.f32.gmra.mrb[80].mxu0 %v13464_v23  ;;  %9073 = vmatmul.mubr.f32.gmra.mrb[52].mxu1 %v13485_v40  ;;  %v2568_v23 = vsel %vm203_vm0, %v11746_v18, 0  ;;  %v164_v18 = vld [vmem:[%s11294_s4 + $0x48] sm:$0xff]  ;;  %v13349_v40 = vand.u32 4294901760, %v11932_v48 }
 0x1a0   : > { %8971 = vmatprep.mubr.f32.mxu0 %v13466_v5  ;;  %9075 = vmatprep.mubr.f32.mxu1 %v13487_v7  ;;  %v2663_v5 = vsub.f32 %v11869_v16, %v13355_v26  ;;  %v11937_v52 = vand.u32 4294901760, %v2568_v23  ;;  %v11951_v10 = vmul.f32 0.35355338, %v164_v18  ;;  %v2683_v50 = vsub.f32 %v11898_v33, %v13351_v46 }
 0x1a1   : > { %v13350_v29 = vand.u32 4294901760, %v11935_v44  ;;  %v2580_v18 = vsel %vm203_vm0, %v11789_v3, 0  ;;  %v2713_v3 = vsub.f32 %v11932_v48, %v13349_v40 }
 0x1a2   : > { %13489 = vst [vmem:[#allocation8_spill] sm:$0xff] %v11937_v52  ;;  %v2664_v15 = vand.u32 4294901760, %v2663_v5  ;;  %v11966_v7 = vsub.f32 %v2568_v23, %v11937_v52  ;;  %v2693_v5 = vsub.f32 %v11912_v63, %v13347_v58 }
 0x1a3   : > { %8972 = vmatmul.mubr.f32.gmra.mrb[82].mxu0 %v13468_v43  ;;  %9076 = vmatmul.mubr.f32.gmra.mrb[54].mxu1 %v13488_v60  ;;  %v2673_v43 = vsub.f32 %v11886_v17, %v13353_v54  ;;  %v11977_v60 = vand.u32 4294901760, %v2577_v0 }
 0x1a4   : > { %8974 = vmatprep.mubr.f32.mxu0 %v13470_v11  ;;  %9078 = vmatprep.mubr.f32.mxu1 %v13490_v56  ;;  %v13492_v11 = vand.u32 4294901760, %v11682_v28  ;;  %13493 = vst [vmem:[#allocation9_spill] sm:$0xff] %v11966_v7  ;;  %v11970_v28 = vsub.f32 %v2571_v38, %v11946_v59  ;;  %v2703_v56 = vsub.f32 %v11919_v22, %v13348_v30  ;;  %v2583_v38 = vsel %vm203_vm0, %v11797_v47, 0 }
 0x1a5   : > { %13496 = vst [vmem:[#allocation20_spill] sm:$0xff] %v11977_v60  ;;  %v13352_v58 = vand.u32 4294901760, %v11966_v7  ;;  %v12009_v30 = vsub.f32 %v2577_v0, %v11977_v60  ;;  %v12011_v40 = vand.u32 4294901760, %v2583_v38 }
 0x1a6   : > { %13494 = vst [vmem:[#allocation18_spill] sm:$0xff] %v11970_v28  ;;  %v13354_v47 = vand.u32 4294901760, %v11970_v28  ;;  %v2704_v46 = vand.u32 4294901760, %v2703_v56 }
 0x1a7   : > { %8975 = vmatmul.mubr.f32.gmra.mrb[84].mxu0 %v13471_v4  ;;  %9079 = vmatmul.mubr.f32.gmra.mrb[56].mxu1 %v13492_v11  ;;  %v2674_v4 = vand.u32 4294901760, %v2673_v43  ;;  %v11985_v43 = vand.u32 4294901760, %v11951_v10  ;;  %v2684_v11 = vand.u32 4294901760, %v2683_v50  ;;  %v12003_v50 = vand.u32 4294901760, %v2580_v18  ;;  %13499 = vst [vmem:[#allocation12_spill] sm:$0xff] %v12009_v30  ;;  %13500 = vst [vmem:[#allocation25_spill] sm:$0xff] %v12011_v40 }
 0x1a8   : > { %9083 = vmatprep.mubr.f32.mxu1 %v11492_v36  ;;  %9135 = vmatprep.mubr.f32.mxu0 %v2664_v15 }
 0x1a9   : > { %13498 = vst [vmem:[#allocation22_spill] sm:$0xff] %v12003_v50  ;;  %v12026_v56 = vsub.f32 %v2580_v18, %v12003_v50 }
 0x1aa   : > { %v8828_v23 = vpop.f32.mrb[2].mxu0 }
 0x1ab   : > { %v344_v15 = vpop.f32.mrb[3].mxu0  ;;  %9084 = vmatmul.mubr.f32.vlgmr.msra.gmra.mrb[0].mxu1 %v11501_v42  ;;  %9136 = vmatmul.mubr.f32.vlgmr.msra.gmra.mrb[86].mxu0 %v2674_v4  ;;  %v2723_v23 = vsub.f32 %v11935_v44, %v13350_v29  ;;  %v2694_v4 = vand.u32 4294901760, %v2693_v5  ;;  %v2586_v29 = vsel %vm203_vm0, %v11808_v21, 0  ;;  %v2733_v21 = vsub.f32 %v11966_v7, %v13352_v58  ;;  %13501 = vst [vmem:[#allocation13_spill] sm:$0xff] %v12026_v56 }
 0x1ac   : > { %9108 = vmatpush3.msra.mxu1 %v11317_v12  ;;  %9086 = vmatprep.mubr.f32.mxu1 %v11513_v35  ;;  %v12001_v15 = vsub.f32 %v2574_v39, %v11972_v49  ;;  %v12006_v12 = vpop.trf.xlu1  ;;  %v2714_v39 = vand.u32 4294901760, %v2713_v3  ;;  %v2592_v58 = vsel %vm203_vm0, %v11838_v19, 0  ;;  %v13363_v26 = vand.u32 4294901760, %v12026_v56 }
 0x1ad   : > { %9138 = vmatprep.mubr.f32.mxu0 %v2684_v11  ;;  %9160 = vmatpush3.msra.mxu0 %v11832_v20  ;;  %v2589_v20 = vsel %vm203_vm0, %v11820_v27, 0  ;;  %v2724_v0 = vand.u32 4294901760, %v2723_v23  ;;  %v12028_v11 = vand.u32 4294901760, %v2586_v29  ;;  %v2743_v27 = vsub.f32 %v11970_v28, %v13354_v47 }
 0x1ae   : > { %13497 = vst [vmem:[#allocation11_spill] sm:$0xff] %v12001_v15  ;;  %9289 = vmatprep.subr.mxu1 %v11985_v43  ;;  %9185 = vmatprep.subr.mxu0 %v11804_v32  ;;  %v13356_v5 = vand.u32 4294901760, %v12001_v15  ;;  %v12037_v23 = vand.u32 4294901760, %v2589_v20  ;;  %v2734_v47 = vand.u32 4294901760, %v2733_v21 }
 0x1af   : > { %9087 = vmatmul.mubr.f32.gmra.mrb[58].mxu1 %v11526_v34  ;;  %9139 = vmatmul.mubr.f32.gmra.mrb[88].mxu0 %v2694_v4  ;;  %13502 = vst [vmem:[#allocation14_spill] sm:$0xff] %v12028_v11  ;;  %v2744_v4 = vand.u32 4294901760, %v2743_v27 }
 0x1b0   : > { %9089 = vmatprep.mubr.f32.mxu1 %v11540_v57  ;;  %9141 = vmatprep.mubr.f32.mxu0 %v2704_v46  ;;  %v12035_v46 = vsub.f32 %v2583_v38, %v12011_v40  ;;  %13504 = vst [vmem:[#allocation27_spill] sm:$0xff] %v12037_v23  ;;  %v12042_v18 = vpop.trf.xlu1  ;;  %v12047_v38 = vsub.f32 %v2586_v29, %v12028_v11 }
 0x1b1   : > { %v2753_v19 = vsub.f32 %v12001_v15, %v13356_v5 }
 0x1b2   : > { %13503 = vst [vmem:[#allocation24_spill] sm:$0xff] %v12035_v46  ;;  %v8831_v3 = vpop.f32.mrb[4].mxu0  ;;  %13505 = vst [vmem:[#allocation29_spill] sm:$0xff] %v12047_v38  ;;  %v13366_v29 = vand.u32 4294901760, %v12047_v38 }
 0x1b3   : > { %v364_v54 = vpop.f32.mrb[5].mxu0  ;;  %9090 = vmatmul.mubr.f32.gmra.mrb[60].mxu1 %v11553_v9  ;;  %9142 = vmatmul.mubr.f32.gmra.mrb[90].mxu0 %v2714_v39  ;;  %v12049_v3 = vand.u32 4294901760, %v2592_v58  ;;  %v12056_v39 = vsub.f32 %v2589_v20, %v12037_v23  ;;  %v2773_v20 = vsub.f32 %v12026_v56, %v13363_v26 }
 0x1b4   : > { %9092 = vmatprep.mubr.f32.mxu1 %v11565_v1  ;;  %9144 = vmatprep.mubr.f32.mxu0 %v2724_v0  ;;  %v13508_v0 = vand.u32 4294901760, %v12009_v30  ;;  %v2754_v54 = vand.u32 4294901760, %v2753_v19  ;;  %v12070_v27 = vpop.trf.xlu1 }
 0x1b5   : > { %13506 = vst [vmem:[#allocation30_spill] sm:$0xff] %v12049_v3  ;;  %13507 = vst [vmem:[#allocation31_spill] sm:$0xff] %v12056_v39  ;;  %v12065_v5 = vsub.f32 %v2592_v58, %v12049_v3  ;;  %v13510_v58 = vld [vmem:[#allocation17_spill] sm:$0xff]  ;;  %v2774_v26 = vand.u32 4294901760, %v2773_v20 }
 0x1b6   : > { %v2763_v21 = vsub.f32 %v12009_v30, %v13508_v0  ;;  %v2793_v0 = vsub.f32 %v12047_v38, %v13366_v29 }
 0x1b7   : > { %9093 = vmatmul.mubr.f32.gmra.mrb[62].mxu1 %v11577_v51  ;;  %9145 = vmatmul.mubr.f32.gmra.mrb[92].mxu0 %v2734_v47  ;;  %v13509_v47 = vand.u32 4294901760, %v12035_v46  ;;  %v13376_v19 = vand.u32 4294901760, %v12065_v5 }
 0x1b8   : > { %9095 = vmatprep.mubr.f32.mxu1 %v11589_v37  ;;  %9147 = vmatprep.mubr.f32.mxu0 %v2744_v4  ;;  %v2764_v15 = vand.u32 4294901760, %v2763_v21  ;;  %v13511_v21 = vand.u32 4294901760, %v12056_v39  ;;  %v2794_v20 = vand.u32 4294901760, %v2793_v0 }
 0x1b9   : > { %v2783_v4 = vsub.f32 %v12035_v46, %v13509_v47  ;;  %v13513_v47 = vld [vmem:[#allocation21_spill] sm:$0xff] }
 0x1ba   : > { %v8834_v30 = vpop.f32.mrb[6].mxu0  ;;  %v2803_v56 = vsub.f32 %v12056_v39, %v13511_v21  ;;  %v13514_v39 = vld [vmem:[#allocation23_spill] sm:$0xff] }
 0x1bb   : > { %v384_v28 = vpop.f32.mrb[7].mxu0  ;;  %9096 = vmatmul.mubr.f32.gmra.mrb[64].mxu1 %v11601_v25  ;;  %9148 = vmatmul.mubr.f32.gmra.mrb[94].mxu0 %v2754_v54  ;;  %v2784_v30 = vand.u32 4294901760, %v2783_v4  ;;  %v13512_v54 = vld [vmem:[#allocation19_spill] sm:$0xff]  ;;  %v2813_v4 = vsub.f32 %v12065_v5, %v13376_v19 }
 0x1bc   : > { %9098 = vmatprep.mubr.f32.mxu1 %v13510_v58  ;;  %9150 = vmatprep.mubr.f32.mxu0 %v2764_v15  ;;  %v12087_v28 = vsub.f32 %v11951_v10, %v11985_v43  ;;  %v12090_v15 = vpop.trf.xlu1  ;;  %v2804_v38 = vand.u32 4294901760, %v2803_v56 }
 0x1bd   : > { %v2814_v46 = vand.u32 4294901760, %v2813_v4 }
 0x1be   : > { %v12097_v21 = vand.u32 4294901760, %v12087_v28 }
 0x1bf   : > { %9099 = vmatmul.mubr.f32.gmra.mrb[66].mxu1 %v13512_v54  ;;  %9151 = vmatmul.mubr.f32.gmra.mrb[96].mxu0 %v2774_v26  ;;  %v13515_v26 = vld [vmem:[#allocation26_spill] sm:$0xff] }
 0x1c0   : > { %9101 = vmatprep.mubr.f32.mxu1 %v13513_v47  ;;  %9153 = vmatprep.mubr.f32.mxu0 %v2784_v30  ;;  %v12101_v7 = vpop.trf.xlu1  ;;  %v3995_v0 = vsub.f32 %v12087_v28, %v12097_v21  ;;  %v13516_v30 = vld [vmem:[#allocation28_spill] sm:$0xff] }
 0x1c2   : > { %v8837_v29 = vpop.f32.mrb[8].mxu0 }
 0x1c3   : > { %v404_v10 = vpop.f32.mrb[9].mxu0  ;;  %9102 = vmatmul.mubr.f32.gmra.mrb[68].mxu1 %v13514_v39  ;;  %9154 = vmatmul.mubr.f32.gmra.mrb[98].mxu0 %v2794_v20  ;;  %v12108_v29 = vand.u32 4294901760, %v3995_v0 }
 0x1c4   : > { %9104 = vmatprep.mubr.f32.mxu1 %v13515_v26  ;;  %9156 = vmatprep.mubr.f32.mxu0 %v2804_v38  ;;  %v12112_v38 = vpop.trf.xlu1  ;;  %v3730_v10 = vsel %vm203_vm0, %v12006_v12, 0  ;;  %v3736_v12 = vsel %vm203_vm0, %v12070_v27, 0 }
 0x1c7   : > { %9105 = vmatmul.mubr.f32.gmra.mrb[70].mxu1 %v13516_v30  ;;  %9157 = vmatmul.mubr.f32.gmra.mrb[100].mxu0 %v2814_v46 }
 0x1c8   : > { %9109 = vmatprep.mubr.f32.mxu1 %v11492_v36  ;;  %9161 = vmatprep.mubr.f32.mxu0 %v11854_v45 }
 0x1ca   : > { %v8840_v56 = vpop.f32.mrb[10].mxu0 }
 0x1cb   : > { %v424_v20 = vpop.f32.mrb[11].mxu0  ;;  %9110 = vmatmul.mubr.f32.vlgmr.msra.gmra.mrb[0].mxu1 %v11501_v42  ;;  %9162 = vmatmul.mubr.f32.vlgmr.msra.gmra.mrb[86].mxu0 %v11866_v6  ;;  %v12124_v42 = vpop.trf.xlu1 }
 0x1cc   : > { %9290 = vmatpush3.msra.mxu1 %v11985_v43  ;;  %9112 = vmatprep.mubr.f32.mxu1 %v11513_v35  ;;  %v3718_v35 = vsel %vm203_vm0, %v11852_v55, 0  ;;  %v12169_v20 = vand.u32 4294901760, %v3730_v10 }
 0x1cd   : > { %9164 = vmatprep.mubr.f32.mxu0 %v11873_v2  ;;  %9186 = vmatpush3.msra.mxu0 %v11804_v32 }
 0x1ce   : > { %9315 = vmatprep.subr.mxu1 %v12108_v29  ;;  %9211 = vmatprep.subr.mxu0 %v11765_v8 }
 0x1cf   : > { %9113 = vmatmul.mubr.f32.gmra.mrb[72].mxu1 %v11526_v34  ;;  %9165 = vmatmul.mubr.f32.gmra.mrb[102].mxu0 %v11888_v53  ;;  %v12132_v34 = vand.u32 4294901760, %v3718_v35  ;;  %v12138_v32 = vpop.trf.xlu1 }
 0x1d0   : > { %9115 = vmatprep.mubr.f32.mxu1 %v11540_v57  ;;  %9167 = vmatprep.mubr.f32.mxu0 %v11895_v24  ;;  %v3721_v57 = vsel %vm203_vm0, %v11880_v41, 0  ;;  %v3727_v41 = vsel %vm203_vm0, %v11961_v13, 0  ;;  %v3733_v13 = vsel %vm203_vm0, %v12042_v18, 0 }
 0x1d1   : > { %v12147_v55 = vsub.f32 %v3718_v35, %v12132_v34  ;;  %v12178_v35 = vand.u32 4294901760, %v3736_v12 }
 0x1d2   : > { %v8843_v36 = vpop.f32.mrb[12].mxu0 }
 0x1d3   : > { %v444_v46 = vpop.f32.mrb[13].mxu0  ;;  %9116 = vmatmul.mubr.f32.gmra.mrb[74].mxu1 %v11553_v9  ;;  %9168 = vmatmul.mubr.f32.gmra.mrb[104].mxu0 %v11903_v14  ;;  %v3724_v9 = vsel %vm203_vm0, %v11916_v61, 0  ;;  %v12162_v61 = vand.u32 4294901760, %v3727_v41  ;;  %v3713_v56 = vpop.trf.xlu1  ;;  %v12176_v36 = vand.u32 4294901760, %v3733_v13 }
 0x1d4   : > { %9118 = vmatprep.mubr.f32.mxu1 %v11565_v1  ;;  %9170 = vmatprep.mubr.f32.mxu0 %v11905_v31  ;;  %v12144_v1 = vand.u32 4294901760, %v3721_v57  ;;  %v12151_v4 = vand.u32 4294901760, %v3724_v9  ;;  %v3739_v46 = vsel %vm203_vm0, %v12090_v15, 0 }
 0x1d5   : > { %v12184_v27 = vsub.f32 %v3727_v41, %v12162_v61  ;;  %v12200_v15 = vsub.f32 %v3733_v13, %v12176_v36 }
 0x1d7   : > { %9119 = vmatmul.mubr.f32.gmra.mrb[76].mxu1 %v11577_v51  ;;  %9171 = vmatmul.mubr.f32.gmra.mrb[106].mxu0 %v11937_v52  ;;  %v3714_v41 = vpop.trf.xlu1 }
 0x1d8   : > { %9121 = vmatprep.mubr.f32.mxu1 %v11589_v37  ;;  %9173 = vmatprep.mubr.f32.mxu0 %v11946_v59  ;;  %v12160_v37 = vsub.f32 %v3721_v57, %v12144_v1  ;;  %v3742_v57 = vsel %vm203_vm0, %v12101_v7, 0  ;;  %v12205_v7 = vand.u32 4294901760, %v3739_v46 }
 0x1da   : > { %v8846_v51 = vpop.f32.mrb[14].mxu0  ;;  %v13377_v18 = vand.u32 4294901760, %v12160_v37 }
 0x1db   : > { %v464_v0 = vpop.f32.mrb[15].mxu0  ;;  %9122 = vmatmul.mubr.f32.gmra.mrb[78].mxu1 %v11601_v25  ;;  %9174 = vmatmul.mubr.f32.gmra.mrb[108].mxu0 %v11972_v49  ;;  %v13375_v25 = vand.u32 4294901760, %v12147_v55 }
 0x1dc   : > { %9124 = vmatprep.mubr.f32.mxu1 %v13510_v58  ;;  %9176 = vmatprep.mubr.f32.mxu0 %v11977_v60  ;;  %v12172_v58 = vsub.f32 %v3724_v9, %v12151_v4 }
 0x1df   : > { %9125 = vmatmul.mubr.f32.gmra.mrb[80].mxu1 %v13512_v54  ;;  %9177 = vmatmul.mubr.f32.gmra.mrb[110].mxu0 %v12003_v50  ;;  %v12189_v54 = vsub.f32 %v3730_v10, %v12169_v20  ;;  %v12203_v10 = vsub.f32 %v3736_v12, %v12178_v35  ;;  %v3745_v12 = vsel %vm203_vm0, %v12112_v38, 0  ;;  %v12228_v38 = vsub.f32 %v3739_v46, %v12205_v7 }
 0x1e0   : > { %9127 = vmatprep.mubr.f32.mxu1 %v13513_v47  ;;  %9179 = vmatprep.mubr.f32.mxu0 %v12011_v40  ;;  %v3834_v47 = vsub.f32 %v12147_v55, %v13375_v25  ;;  %v3751_v46 = vsel %vm203_vm0, %v12138_v32, 0  ;;  %v3757_v50 = vsel %vm203_vm0, %v3714_v41, 0 }
 0x1e1   : > { %13517 = vst [vmem:[#allocation17_spill] sm:$0xff] %v12203_v10  ;;  %13519 = vst [vmem:[#allocation19_spill] sm:$0xff] %v12228_v38 }
 0x1e2   : > { %v8854_v9 = vpop.f32.mrb[16].mxu0  ;;  %v3835_v19 = vand.u32 4294901760, %v3834_v47  ;;  %v13521_v47 = vand.u32 4294901760, %v12184_v27 }
 0x1e3   : > { %v562_v0 = vpop.f32.mrb[17].mxu0  ;;  %9128 = vmatmul.mubr.f32.gmra.mrb[82].mxu1 %v13514_v39  ;;  %9180 = vmatmul.mubr.f32.gmra.mrb[112].mxu0 %v12028_v11  ;;  %v3844_v9 = vsub.f32 %v12160_v37, %v13377_v18  ;;  %v13518_v18 = vand.u32 4294901760, %v12172_v58 }
 0x1e4   : > { %9130 = vmatprep.mubr.f32.mxu1 %v13515_v26  ;;  %9182 = vmatprep.mubr.f32.mxu0 %v12037_v23  ;;  %v12213_v0 = vand.u32 4294901760, %v3742_v57  ;;  %v3748_v26 = vsel %vm203_vm0, %v12124_v42, 0 }
 0x1e5   : > { %v3854_v39 = vsub.f32 %v12172_v58, %v13518_v18  ;;  %v3845_v42 = vand.u32 4294901760, %v3844_v9  ;;  %v3864_v18 = vsub.f32 %v12184_v27, %v13521_v47  ;;  %v12239_v23 = vand.u32 4294901760, %v3748_v26 }
 0x1e6   : > { %v8857_v25 = vpop.f32.mrb[18].mxu0 }
 0x1e7   : > { %v574_v51 = vpop.f32.mrb[19].mxu0  ;;  %9131 = vmatmul.mubr.f32.gmra.mrb[84].mxu1 %v13516_v30  ;;  %9183 = vmatmul.mubr.f32.gmra.mrb[114].mxu0 %v12049_v3  ;;  %v12232_v25 = vsub.f32 %v3742_v57, %v12213_v0  ;;  %v12234_v30 = vand.u32 4294901760, %v3745_v12  ;;  %v3754_v57 = vsel %vm203_vm0, %v3713_v56, 0  ;;  %v3855_v47 = vand.u32 4294901760, %v3854_v39 }
 0x1e8   : > { %9187 = vmatprep.mubr.f32.mxu0 %v11869_v16  ;;  %9291 = vmatprep.mubr.f32.mxu1 %v3835_v19  ;;  %v3715_v51 = vpop.trf.xlu1  ;;  %v13522_v19 = vand.u32 4294901760, %v12189_v54  ;;  %v12261_v39 = vand.u32 4294901760, %v3751_v46 }
 0x1e9   : > { %13520 = vst [vmem:[#allocation21_spill] sm:$0xff] %v12232_v25 }
 0x1ea   : > { %v8860_v13 = vpop.f32.mrb[20].mxu0  ;;  %v8984_v3 = vpop.f32.mrb[2].mxu1  ;;  %v3874_v9 = vsub.f32 %v12189_v54, %v13522_v19  ;;  %v12267_v19 = vand.u32 4294901760, %v3754_v57  ;;  %v12280_v60 = vsub.f32 %v3751_v46, %v12261_v39 }
 0x1eb   : > { %v586_v11 = vpop.f32.mrb[21].mxu0  ;;  %v1515_v40 = vpop.f32.mrb[3].mxu1  ;;  %9188 = vmatmul.mubr.f32.vlgmr.msra.gmra.mrb[86].mxu0 %v11886_v17  ;;  %9292 = vmatmul.mubr.f32.vlgmr.msra.gmra.mrb[86].mxu1 %v3845_v42  ;;  %v13523_v3 = vand.u32 4294901760, %v12200_v15  ;;  %v13524_v13 = vand.u32 4294901760, %v12203_v10  ;;  %v3865_v42 = vand.u32 4294901760, %v3864_v18  ;;  %v3760_v18 = vsel %vm203_vm0, %v3715_v51, 0 }
 0x1ec   : > { %9316 = vmatpush3.msra.mxu1 %v12108_v29  ;;  %9190 = vmatprep.mubr.f32.mxu0 %v11898_v33  ;;  %v12259_v11 = vsub.f32 %v3745_v12, %v12234_v30  ;;  %v12265_v29 = vsub.f32 %v3748_v26, %v12239_v23  ;;  %13528 = vst [vmem:[#allocation28_spill] sm:$0xff] %v12280_v60  ;;  %v12291_v59 = vand.u32 4294901760, %v3760_v18 }
 0x1ed   : > { %v3884_v32 = vsub.f32 %v12200_v15, %v13523_v3  ;;  %v3894_v56 = vsub.f32 %v12203_v10, %v13524_v13  ;;  %9294 = vmatprep.mubr.f32.mxu1 %v3855_v47  ;;  %9212 = vmatpush3.msra.mxu0 %v11765_v8  ;;  %v3875_v13 = vand.u32 4294901760, %v3874_v9  ;;  %v3716_v47 = vpop.trf.xlu1 }
 0x1ee   : > { %13525 = vst [vmem:[#allocation23_spill] sm:$0xff] %v12259_v11  ;;  %13526 = vst [vmem:[#allocation26_spill] sm:$0xff] %v12265_v29  ;;  %v8863_v3 = vpop.f32.mrb[22].mxu0  ;;  %9341 = vmatprep.subr.mxu1 %v12087_v28  ;;  %9237 = vmatprep.subr.mxu0 %v11813_v62 }
 0x1ef   : > { %v598_v12 = vpop.f32.mrb[23].mxu0  ;;  %9191 = vmatmul.mubr.f32.gmra.mrb[116].mxu0 %v11912_v63  ;;  %9295 = vmatmul.mubr.f32.gmra.mrb[88].mxu1 %v3865_v42  ;;  %v3885_v26 = vand.u32 4294901760, %v3884_v32  ;;  %v3895_v40 = vand.u32 4294901760, %v3894_v56  ;;  %v13527_v3 = vand.u32 4294901760, %v12228_v38  ;;  %v13529_v42 = vand.u32 4294901760, %v12232_v25 }
 0x1f0   : > { %9193 = vmatprep.mubr.f32.mxu0 %v11919_v22  ;;  %9297 = vmatprep.mubr.f32.mxu1 %v3875_v13  ;;  %v12282_v12 = vand.u32 4294901760, %v3757_v50  ;;  %v12289_v32 = vsub.f32 %v3754_v57, %v12267_v19 }
 0x1f1   : > { %v3904_v41 = vsub.f32 %v12228_v38, %v13527_v3  ;;  %v3914_v51 = vsub.f32 %v12232_v25, %v13529_v42  ;;  %v3763_v3 = vsel %vm203_vm0, %v3716_v47, 0  ;;  %v13536_v38 = vld [vmem:[#allocation18_spill] sm:$0xff] }
 0x1f2   : > { %13530 = vst [vmem:[#allocation32_spill] sm:$0xff] %v12289_v32  ;;  %v8866_v56 = vpop.f32.mrb[24].mxu0  ;;  %v8987_v13 = vpop.f32.mrb[4].mxu1  ;;  %v12298_v57 = vsub.f32 %v3757_v50, %v12282_v12  ;;  %v13535_v50 = vld [vmem:[#allocation9_spill] sm:$0xff] }
 0x1f3   : > { %v610_v9 = vpop.f32.mrb[25].mxu0  ;;  %v1535_v46 = vpop.f32.mrb[5].mxu1  ;;  %9194 = vmatmul.mubr.f32.gmra.mrb[118].mxu0 %v11932_v48  ;;  %9298 = vmatmul.mubr.f32.gmra.mrb[90].mxu1 %v3885_v26  ;;  %v3905_v42 = vand.u32 4294901760, %v3904_v41  ;;  %v12300_v56 = vand.u32 4294901760, %v3763_v3  ;;  %v13532_v13 = vand.u32 4294901760, %v12259_v11  ;;  %v3915_v25 = vand.u32 4294901760, %v3914_v51 }
 0x1f4   : > { %9196 = vmatprep.mubr.f32.mxu0 %v11935_v44  ;;  %9300 = vmatprep.mubr.f32.mxu1 %v3895_v40  ;;  %13531 = vst [vmem:[#allocation33_spill] sm:$0xff] %v12298_v57  ;;  %v12307_v46 = vsub.f32 %v3760_v18, %v12291_v59  ;;  %v13534_v40 = vand.u32 4294901760, %v12265_v29 }
 0x1f5   : > { %v3924_v47 = vsub.f32 %v12259_v11, %v13532_v13  ;;  %v12316_v9 = vsub.f32 %v3763_v3, %v12300_v56  ;;  %v13539_v13 = vld [vmem:[#allocation11_spill] sm:$0xff]  ;;  %v13540_v3 = vld [vmem:[#allocation12_spill] sm:$0xff]  ;;  %v13541_v11 = vand.u32 4294901760, %v12298_v57 }
 0x1f6   : > { %13533 = vst [vmem:[#allocation34_spill] sm:$0xff] %v12307_v46  ;;  %v8869_v26 = vpop.f32.mrb[26].mxu0  ;;  %v3934_v41 = vsub.f32 %v12265_v29, %v13534_v40 }
 0x1f7   : > { %v622_v49 = vpop.f32.mrb[27].mxu0  ;;  %9197 = vmatmul.mubr.f32.gmra.mrb[120].mxu0 %v13535_v50  ;;  %9301 = vmatmul.mubr.f32.gmra.mrb[92].mxu1 %v3905_v42  ;;  %v3925_v18 = vand.u32 4294901760, %v3924_v47  ;;  %v13537_v26 = vand.u32 4294901760, %v12280_v60  ;;  %v13538_v42 = vand.u32 4294901760, %v12289_v32  ;;  %v3983_v47 = vand.u32 4294901760, %v12316_v9 }
 0x1f8   : > { %9199 = vmatprep.mubr.f32.mxu0 %v13536_v38  ;;  %9303 = vmatprep.mubr.f32.mxu1 %v3915_v25  ;;  %v3935_v29 = vand.u32 4294901760, %v3934_v41 }
 0x1f9   : > { %v3944_v51 = vsub.f32 %v12280_v60, %v13537_v26  ;;  %v3954_v52 = vsub.f32 %v12289_v32, %v13538_v42 }
 0x1fa   : > { %v8872_v40 = vpop.f32.mrb[28].mxu0  ;;  %v8990_v49 = vpop.f32.mrb[6].mxu1 }
 0x1fb   : > { %v634_v25 = vpop.f32.mrb[29].mxu0  ;;  %v1555_v10 = vpop.f32.mrb[7].mxu1  ;;  %9200 = vmatmul.mubr.f32.gmra.mrb[122].mxu0 %v13539_v13  ;;  %9304 = vmatmul.mubr.f32.gmra.mrb[94].mxu1 %v3925_v18  ;;  %v3945_v26 = vand.u32 4294901760, %v3944_v51  ;;  %v3964_v40 = vsub.f32 %v12298_v57, %v13541_v11  ;;  %v3955_v41 = vand.u32 4294901760, %v3954_v52  ;;  %v13542_v49 = vand.u32 4294901760, %v12307_v46  ;;  %v13545_v57 = vld [vmem:[#allocation29_spill] sm:$0xff] }
 0x1fc   : > { %9202 = vmatprep.mubr.f32.mxu0 %v13540_v3  ;;  %9306 = vmatprep.mubr.f32.mxu1 %v3935_v29  ;;  %v13543_v25 = vld [vmem:[#allocation13_spill] sm:$0xff]  ;;  %v13544_v10 = vld [vmem:[#allocation24_spill] sm:$0xff]  ;;  %v3984_v29 = vsub.f32 %v12316_v9, %v3983_v47 }
 0x1fd   : > { %v3974_v42 = vsub.f32 %v12307_v46, %v13542_v49  ;;  %v3965_v18 = vand.u32 4294901760, %v3964_v40  ;;  %v13546_v49 = vld [vmem:[#allocation31_spill] sm:$0xff]  ;;  %v13547_v40 = vand.u32 4294901760, %v11869_v16 }
 0x1ff   : > { %9203 = vmatmul.mubr.f32.gmra.mrb[124].mxu0 %v13543_v25  ;;  %9307 = vmatmul.mubr.f32.gmra.mrb[96].mxu1 %v3945_v26  ;;  %v3975_v60 = vand.u32 4294901760, %v3974_v42  ;;  %v3985_v26 = vand.u32 4294901760, %v3984_v29 }
 0x200   : > { %9205 = vmatprep.mubr.f32.mxu0 %v13544_v10  ;;  %9309 = vmatprep.mubr.f32.mxu1 %v3955_v41 }
 0x202   : > { %v8880_v51 = vpop.f32.mrb[30].mxu0  ;;  %v8993_v32 = vpop.f32.mrb[8].mxu1 }
 0x203   : > { %v728_v11 = vpop.f32.mrb[31].mxu0  ;;  %v1575_v52 = vpop.f32.mrb[9].mxu1  ;;  %9206 = vmatmul.mubr.f32.gmra.mrb[126].mxu0 %v13545_v57  ;;  %9310 = vmatmul.mubr.f32.gmra.mrb[98].mxu1 %v3965_v18  ;;  %v13548_v18 = vand.u32 4294901760, %v11886_v17  ;;  %v13550_v17 = vand.u32 4294901760, %v11912_v63 }
 0x204   : > { %9208 = vmatprep.mubr.f32.mxu0 %v13546_v49  ;;  %9312 = vmatprep.mubr.f32.mxu1 %v3975_v60  ;;  %v13552_v11 = vand.u32 4294901760, %v11932_v48  ;;  %v13553_v52 = vand.u32 4294901760, %v11935_v44  ;;  %v13556_v44 = vand.u32 4294901760, %v13539_v13 }
 0x206   : > { %v8883_v46 = vpop.f32.mrb[32].mxu0 }
 0x207   : > { %v742_v31 = vpop.f32.mrb[33].mxu0  ;;  %9209 = vmatmul.mubr.f32.gmra.mrb[128].mxu0 %v12065_v5  ;;  %9313 = vmatmul.mubr.f32.gmra.mrb[100].mxu1 %v3985_v26 }
 0x208   : > { %9213 = vmatprep.mubr.f32.mxu0 %v13547_v40  ;;  %9317 = vmatprep.mubr.f32.mxu1 %v12132_v34  ;;  %v13549_v31 = vand.u32 4294901760, %v11898_v33  ;;  %v13555_v40 = vand.u32 4294901760, %v13536_v38  ;;  %v13559_v38 = vand.u32 4294901760, %v13544_v10 }
 0x20a   : > { %v8886_v32 = vpop.f32.mrb[34].mxu0  ;;  %v8996_v41 = vpop.f32.mrb[10].mxu1 }
 0x20b   : > { %v756_v42 = vpop.f32.mrb[35].mxu0  ;;  %v1595_v51 = vpop.f32.mrb[11].mxu1  ;;  %9214 = vmatmul.mubr.f32.vlgmr.msra.gmra.mrb[86].mxu0 %v13548_v18  ;;  %9318 = vmatmul.mubr.f32.vlgmr.msra.gmra.mrb[86].mxu1 %v12144_v1 }
 0x20c   : > { %9342 = vmatpush3.msra.mxu1 %v12087_v28  ;;  %9216 = vmatprep.mubr.f32.mxu0 %v13549_v31  ;;  %v13551_v28 = vand.u32 4294901760, %v11919_v22  ;;  %v13554_v22 = vand.u32 4294901760, %v13535_v50  ;;  %v13557_v51 = vand.u32 4294901760, %v13540_v3  ;;  %v13558_v50 = vand.u32 4294901760, %v13543_v25 }
 0x20d   : > { %9320 = vmatprep.mubr.f32.mxu1 %v12151_v4  ;;  %9238 = vmatpush3.msra.mxu0 %v11813_v62  ;;  %v13561_v3 = vand.u32 4294901760, %v13546_v49 }
 0x20e   : > { %v8889_v16 = vpop.f32.mrb[36].mxu0  ;;  %9367 = vmatprep.subr.mxu1 %v11985_v43  ;;  %9263 = vmatprep.subr.mxu0 %v11765_v8 }
 0x20f   : > { %v770_v60 = vpop.f32.mrb[37].mxu0  ;;  %9217 = vmatmul.mubr.f32.gmra.mrb[130].mxu0 %v13550_v17  ;;  %9321 = vmatmul.mubr.f32.gmra.mrb[102].mxu1 %v12162_v61 }
 0x210   : > { %9219 = vmatprep.mubr.f32.mxu0 %v13551_v28  ;;  %9323 = vmatprep.mubr.f32.mxu1 %v12169_v20  ;;  %v13560_v60 = vand.u32 4294901760, %v13545_v57 }
 0x212   : > { %v8892_v33 = vpop.f32.mrb[38].mxu0  ;;  %v8999_v46 = vpop.f32.mrb[12].mxu1 }
 0x213   : > { %v784_v29 = vpop.f32.mrb[39].mxu0  ;;  %v1615_v62 = vpop.f32.mrb[13].mxu1  ;;  %9220 = vmatmul.mubr.f32.gmra.mrb[132].mxu0 %v13552_v11  ;;  %9324 = vmatmul.mubr.f32.gmra.mrb[104].mxu1 %v12176_v36  ;;  %v13562_v33 = vand.u32 4294901760, %v12065_v5  ;;  %v11162_v11 = vmov 0.0|0.0  }
 0x214   : > { %9222 = vmatprep.mubr.f32.mxu0 %v13553_v52  ;;  %9326 = vmatprep.mubr.f32.mxu1 %v12178_v35 }
 0x216   : > { %v8895_v63 = vpop.f32.mrb[40].mxu0 }
 0x217   : > { %v798_v26 = vpop.f32.mrb[41].mxu0  ;;  %9223 = vmatmul.mubr.f32.gmra.mrb[134].mxu0 %v13554_v22  ;;  %9327 = vmatmul.mubr.f32.gmra.mrb[106].mxu1 %v12205_v7 }
 0x218   : > { %9225 = vmatprep.mubr.f32.mxu0 %v13555_v40  ;;  %9329 = vmatprep.mubr.f32.mxu1 %v12213_v0 }
 0x21a   : > { %v8898_v48 = vpop.f32.mrb[42].mxu0  ;;  %v9002_v32 = vpop.f32.mrb[14].mxu1 }
 0x21b   : > { %v812_v41 = vpop.f32.mrb[43].mxu0  ;;  %v1635_v42 = vpop.f32.mrb[15].mxu1  ;;  %9226 = vmatmul.mubr.f32.gmra.mrb[136].mxu0 %v13556_v44  ;;  %9330 = vmatmul.mubr.f32.gmra.mrb[108].mxu1 %v12234_v30  ;;  %v13563_v48 = vld [vmem:[#allocation15_spill] sm:$0xff]  ;;  %v13564_v32 = vld [vmem:[#allocation17_spill] sm:$0xff] }
 0x21c   : > { %9228 = vmatprep.mubr.f32.mxu0 %v13557_v51  ;;  %9332 = vmatprep.mubr.f32.mxu1 %v12239_v23 }
 0x21f   : > { %9229 = vmatmul.mubr.f32.gmra.mrb[138].mxu0 %v13558_v50  ;;  %9333 = vmatmul.mubr.f32.gmra.mrb[110].mxu1 %v12261_v39  ;;  %v13565_v50 = vld [vmem:[#allocation8_spill] sm:$0xff] }
 0x220   : > { %9231 = vmatprep.mubr.f32.mxu0 %v13559_v38  ;;  %9335 = vmatprep.mubr.f32.mxu1 %v12267_v19  ;;  %v13566_v38 = vld [vmem:[#allocation19_spill] sm:$0xff] }
 0x222   : > { %v8906_v18 = vpop.f32.mrb[44].mxu0  ;;  %v9010_v13 = vpop.f32.mrb[16].mxu1 }
 0x223   : > { %v909_v31 = vpop.f32.mrb[45].mxu0  ;;  %v1733_v16 = vpop.f32.mrb[17].mxu1  ;;  %9232 = vmatmul.mubr.f32.gmra.mrb[140].mxu0 %v13560_v60  ;;  %9336 = vmatmul.mubr.f32.gmra.mrb[112].mxu1 %v12282_v12  ;;  %v13567_v18 = vld [vmem:[#allocation16_spill] sm:$0xff]  ;;  %v13568_v13 = vld [vmem:[#allocation21_spill] sm:$0xff] }
 0x224   : > { %9234 = vmatprep.mubr.f32.mxu0 %v13561_v3  ;;  %9338 = vmatprep.mubr.f32.mxu1 %v12291_v59 }
 0x226   : > { %v8909_v25 = vpop.f32.mrb[46].mxu0  ;;  %v9013_v17 = vpop.f32.mrb[18].mxu1 }
 0x227   : > { %v925_v10 = vpop.f32.mrb[47].mxu0  ;;  %v1745_v28 = vpop.f32.mrb[19].mxu1  ;;  %9235 = vmatmul.mubr.f32.gmra.mrb[142].mxu0 %v13562_v33  ;;  %9339 = vmatmul.mubr.f32.gmra.mrb[114].mxu1 %v12300_v56  ;;  %v13569_v25 = vld [vmem:[#allocation10_spill] sm:$0xff]  ;;  %v13570_v17 = vld [vmem:[#allocation23_spill] sm:$0xff] }
 0x228   : > { %9239 = vmatprep.mubr.f32.mxu0 %v11854_v45  ;;  %9343 = vmatprep.mubr.f32.mxu1 %v12147_v55  ;;  %v13571_v10 = vld [vmem:[#allocation20_spill] sm:$0xff]  ;;  %v13572_v28 = vld [vmem:[#allocation26_spill] sm:$0xff] }
 0x229   : > { %v13573_v33 = vld [vmem:[#allocation22_spill] sm:$0xff] }
 0x22a   : > { %v8912_v57 = vpop.f32.mrb[48].mxu0  ;;  %v9016_v46 = vpop.f32.mrb[20].mxu1 }
 0x22b   : > { %v941_v29 = vpop.f32.mrb[49].mxu0  ;;  %v1757_v49 = vpop.f32.mrb[21].mxu1  ;;  %9240 = vmatmul.mubr.f32.vlgmr.msra.gmra.mrb[86].mxu0 %v11866_v6  ;;  %9344 = vmatmul.mubr.f32.vlgmr.msra.gmra.mrb[86].mxu1 %v12160_v37  ;;  %v13574_v57 = vld [vmem:[#allocation28_spill] sm:$0xff]  ;;  %v13575_v46 = vld [vmem:[#allocation25_spill] sm:$0xff] }
 0x22c   : > { %9368 = vmatpush3.msra.mxu1 %v11985_v43  ;;  %9242 = vmatprep.mubr.f32.mxu0 %v11873_v2  ;;  %v13576_v29 = vld [vmem:[#allocation32_spill] sm:$0xff] }
 0x22d   : > { %9346 = vmatprep.mubr.f32.mxu1 %v12172_v58  ;;  %9264 = vmatpush3.msra.mxu0 %v11765_v8 }
 0x22e   : > { %v8915_v5 = vpop.f32.mrb[50].mxu0  ;;  %v9019_v62 = vpop.f32.mrb[22].mxu1  ;;  %9393 = vmatprep.subr.mxu1 %v12097_v21  ;;  %10285 = vmatprep.subr.bf16.mxu0 %v11162_v11 }
 0x22f   : > { %v957_v52 = vpop.f32.mrb[51].mxu0  ;;  %v1769_v63 = vpop.f32.mrb[23].mxu1  ;;  %9243 = vmatmul.mubr.f32.gmra.mrb[144].mxu0 %v11888_v53  ;;  %9347 = vmatmul.mubr.f32.gmra.mrb[116].mxu1 %v12184_v27 }
 0x230   : > { %9245 = vmatprep.mubr.f32.mxu0 %v11895_v24  ;;  %9349 = vmatprep.mubr.f32.mxu1 %v12189_v54  ;;  %v13577_v63 = vld [vmem:[#allocation14_spill] sm:$0xff] }
 0x232   : > { %v8918_v26 = vpop.f32.mrb[52].mxu0  ;;  %v9022_v22 = vpop.f32.mrb[24].mxu1 }
 0x233   : > { %v973_v8 = vpop.f32.mrb[53].mxu0  ;;  %v1781_v40 = vpop.f32.mrb[25].mxu1  ;;  %9246 = vmatmul.mubr.f32.gmra.mrb[146].mxu0 %v11903_v14  ;;  %9350 = vmatmul.mubr.f32.gmra.mrb[118].mxu1 %v12200_v15  ;;  %v13578_v26 = vld [vmem:[#allocation33_spill] sm:$0xff]  ;;  %v13579_v22 = vld [vmem:[#allocation27_spill] sm:$0xff] }
 0x234   : > { %9248 = vmatprep.mubr.f32.mxu0 %v13563_v48  ;;  %9352 = vmatprep.mubr.f32.mxu1 %v13564_v32  ;;  %v13580_v8 = vld [vmem:[#allocation34_spill] sm:$0xff] }
 0x236   : > { %v8921_v41 = vpop.f32.mrb[54].mxu0  ;;  %v9025_v42 = vpop.f32.mrb[26].mxu1 }
 0x237   : > { %v989_v44 = vpop.f32.mrb[55].mxu0  ;;  %v1793_v51 = vpop.f32.mrb[27].mxu1  ;;  %9249 = vmatmul.mubr.f32.gmra.mrb[148].mxu0 %v13565_v50  ;;  %9353 = vmatmul.mubr.f32.gmra.mrb[120].mxu1 %v13566_v38 }
 0x238   : > { %9251 = vmatprep.mubr.f32.mxu0 %v13567_v18  ;;  %9355 = vmatprep.mubr.f32.mxu1 %v13568_v13  ;;  %v13581_v51 = vld [vmem:[#allocation30_spill] sm:$0xff] }
 0x23a   : > { %v8924_v31 = vpop.f32.mrb[56].mxu0  ;;  %v9028_v16 = vpop.f32.mrb[28].mxu1 }
 0x23b   : > { %v1005_v60 = vpop.f32.mrb[57].mxu0  ;;  %v1805_v3 = vpop.f32.mrb[29].mxu1  ;;  %9252 = vmatmul.mubr.f32.gmra.mrb[150].mxu0 %v13569_v25  ;;  %9356 = vmatmul.mubr.f32.gmra.mrb[122].mxu1 %v13570_v17  ;;  %v13582_v31 = vand.u32 4294901760, %v12147_v55 }
 0x23c   : > { %9254 = vmatprep.mubr.f32.mxu0 %v13571_v10  ;;  %9358 = vmatprep.mubr.f32.mxu1 %v13572_v28 }
 0x23f   : > { %9255 = vmatmul.mubr.f32.gmra.mrb[152].mxu0 %v13573_v33  ;;  %9359 = vmatmul.mubr.f32.gmra.mrb[124].mxu1 %v13574_v57 }
 0x240   : > { %9257 = vmatprep.mubr.f32.mxu0 %v13575_v46  ;;  %9361 = vmatprep.mubr.f32.mxu1 %v13576_v29 }
 0x242   : > { %v8932_v49 = vpop.f32.mrb[58].mxu0  ;;  %v9036_v5 = vpop.f32.mrb[30].mxu1 }
 0x243   : > { %v1099_v62 = vpop.f32.mrb[59].mxu0  ;;  %v1899_v52 = vpop.f32.mrb[31].mxu1  ;;  %9258 = vmatmul.mubr.f32.gmra.mrb[154].mxu0 %v13577_v63  ;;  %9362 = vmatmul.mubr.f32.gmra.mrb[126].mxu1 %v13578_v26  ;;  %v13583_v5 = vand.u32 4294901760, %v12160_v37 }
 0x244   : > { %9260 = vmatprep.mubr.f32.mxu0 %v13579_v22  ;;  %9364 = vmatprep.mubr.f32.mxu1 %v13580_v8  ;;  %v13584_v62 = vand.u32 4294901760, %v12172_v58 }
 0x246   : > { %v8935_v40 = vpop.f32.mrb[60].mxu0  ;;  %v9039_v41 = vpop.f32.mrb[32].mxu1 }
 0x247   : > { %v1111_v42 = vpop.f32.mrb[61].mxu0  ;;  %v1913_v44 = vpop.f32.mrb[33].mxu1  ;;  %9261 = vmatmul.mubr.f32.gmra.mrb[156].mxu0 %v13581_v51  ;;  %9365 = vmatmul.mubr.f32.gmra.mrb[128].mxu1 %v12316_v9 }
 0x248   : > { %9265 = vmatprep.mubr.f32.mxu0 %v11854_v45  ;;  %9369 = vmatprep.mubr.f32.mxu1 %v13582_v31  ;;  %v13587_v42 = vand.u32 4294901760, %v12200_v15 }
 0x24a   : > { %v8938_v16 = vpop.f32.mrb[62].mxu0  ;;  %v9042_v60 = vpop.f32.mrb[34].mxu1 }
 0x24b   : > { %v1123_v3 = vpop.f32.mrb[63].mxu0  ;;  %v1927_v49 = vpop.f32.mrb[35].mxu1  ;;  %9266 = vmatmul.mubr.f32.vlgmr.msra.gmra.mrb[86].mxu0 %v11866_v6  ;;  %9370 = vmatmul.mubr.f32.vlgmr.msra.gmra.mrb[86].mxu1 %v13583_v5  ;;  %v13585_v6 = vand.u32 4294901760, %v12184_v27 }
 0x24c   : > { %9394 = vmatpush3.msra.mxu1 %v12097_v21  ;;  %9268 = vmatprep.mubr.f32.mxu0 %v11873_v2  ;;  %v13586_v21 = vand.u32 4294901760, %v12189_v54  ;;  %v13589_v54 = vand.u32 4294901760, %v13566_v38 }
 0x24d   : > { %9372 = vmatprep.mubr.f32.mxu1 %v13584_v62  ;;  %9419 = vmatprep.subr.mxu1 %v11985_v43  ;;  %v13596_v62 = vand.u32 4294901760, %v13580_v8 }
 0x24e   : > { %v8941_v45 = vpop.f32.mrb[64].mxu0  ;;  %v9045_v55 = vpop.f32.mrb[36].mxu1 }
 0x24f   : > { %v1135_v52 = vpop.f32.mrb[65].mxu0  ;;  %v1941_v40 = vpop.f32.mrb[37].mxu1  ;;  %9269 = vmatmul.mubr.f32.gmra.mrb[158].mxu0 %v11888_v53  ;;  %9373 = vmatmul.mubr.f32.gmra.mrb[130].mxu1 %v13585_v6  ;;  %v13588_v53 = vand.u32 4294901760, %v13564_v32  ;;  %v13591_v32 = vand.u32 4294901760, %v13570_v17  ;;  %v13594_v17 = vand.u32 4294901760, %v13576_v29 }
 0x250   : > { %9271 = vmatprep.mubr.f32.mxu0 %v11895_v24  ;;  %9375 = vmatprep.mubr.f32.mxu1 %v13586_v21 }
 0x252   : > { %v8944_v2 = vpop.f32.mrb[66].mxu0  ;;  %v9048_v37 = vpop.f32.mrb[38].mxu1 }
 0x253   : > { %v1147_v58 = vpop.f32.mrb[67].mxu0  ;;  %v1955_v41 = vpop.f32.mrb[39].mxu1  ;;  %9272 = vmatmul.mubr.f32.gmra.mrb[160].mxu0 %v11903_v14  ;;  %9376 = vmatmul.mubr.f32.gmra.mrb[132].mxu1 %v13587_v42  ;;  %v13590_v14 = vand.u32 4294901760, %v13568_v13  ;;  %v13593_v13 = vand.u32 4294901760, %v13574_v57 }
 0x254   : > { %9274 = vmatprep.mubr.f32.mxu0 %v13563_v48  ;;  %9378 = vmatprep.mubr.f32.mxu1 %v13588_v53 }
 0x256   : > { %v8947_v27 = vpop.f32.mrb[68].mxu0  ;;  %v9051_v44 = vpop.f32.mrb[40].mxu1 }
 0x257   : > { %v1159_v24 = vpop.f32.mrb[69].mxu0  ;;  %v1969_v31 = vpop.f32.mrb[41].mxu1  ;;  %9275 = vmatmul.mubr.f32.gmra.mrb[162].mxu0 %v13565_v50  ;;  %9379 = vmatmul.mubr.f32.gmra.mrb[134].mxu1 %v13589_v54  ;;  %v13592_v50 = vand.u32 4294901760, %v13572_v28 }
 0x258   : > { %9277 = vmatprep.mubr.f32.mxu0 %v13567_v18  ;;  %9381 = vmatprep.mubr.f32.mxu1 %v13590_v14 }
 0x25a   : > { %v8950_v15 = vpop.f32.mrb[70].mxu0  ;;  %v9054_v16 = vpop.f32.mrb[42].mxu1 }
 0x25b   : > { %v1171_v48 = vpop.f32.mrb[71].mxu0  ;;  %v1983_v60 = vpop.f32.mrb[43].mxu1  ;;  %9278 = vmatmul.mubr.f32.gmra.mrb[164].mxu0 %v13569_v25  ;;  %9382 = vmatmul.mubr.f32.gmra.mrb[136].mxu1 %v13591_v32 }
 0x25c   : > { %9280 = vmatprep.mubr.f32.mxu0 %v13571_v10  ;;  %9384 = vmatprep.mubr.f32.mxu1 %v13592_v50 }
 0x25e   : > { %v12465_v38 = vpop.f32.mrb[0].mxu0 }
 0x25f   : > { %v12467_v18 = vpop.f32.mrb[1].mxu0  ;;  %9281 = vmatmul.mubr.f32.gmra.mrb[166].mxu0 %v13573_v33  ;;  %9385 = vmatmul.mubr.f32.gmra.mrb[138].mxu1 %v13593_v13  ;;  %v13595_v33 = vand.u32 4294901760, %v13578_v26  ;;  %v11164_v26 = vmov 0.0  }
 0x260   : > { %v4953_v25 = vmax.f32 %v12467_v18, %v12465_v38  ;;  %9283 = vmatprep.mubr.f32.mxu0 %v13575_v46  ;;  %9387 = vmatprep.mubr.f32.mxu1 %v13594_v17 }
 0x262   : > { %v4954_v10 = vmax.f32 %v4953_v25, -1e+30  ;;  %v8958_v28 = vpop.f32.mrb[72].mxu0  ;;  %v9062_v3 = vpop.f32.mrb[44].mxu1 }
 0x263   : > { %v1261_v49 = vpop.f32.mrb[73].mxu0  ;;  %v2080_v5 = vpop.f32.mrb[45].mxu1  ;;  %9284 = vmatmul.mubr.f32.gmra.mrb[168].mxu0 %v13577_v63  ;;  %9388 = vmatmul.mubr.f32.gmra.mrb[140].mxu1 %v13595_v33 }
 0x264   : > { %v4955_v57 = vmax.f32 %v4954_v10, -1e+30  ;;  %9286 = vmatprep.mubr.f32.mxu0 %v13579_v22  ;;  %9390 = vmatprep.mubr.f32.mxu1 %v13596_v62 }
 0x266   : > { %v4956_v46 = vmax.f32 %v4955_v57, -1e+30  ;;  %v8961_v45 = vpop.f32.mrb[74].mxu0  ;;  %v9065_v29 = vpop.f32.mrb[46].mxu1 }
 0x267   : > { %v1273_v55 = vpop.f32.mrb[75].mxu0  ;;  %v2096_v52 = vpop.f32.mrb[47].mxu1  ;;  %9287 = vmatmul.mubr.f32.gmra.mrb[170].mxu0 %v13581_v51  ;;  %9391 = vmatmul.mubr.f32.gmra.mrb[142].mxu1 %v3983_v47 }
 0x268   : > { %v4957_v63 = vmax.f32 %v4956_v46, -1e+30  ;;  %9395 = vmatprep.mubr.f32.mxu1 %v12132_v34  ;;  %9477 = vmatprep.mubr.msk.f32.mxu0 %vm11163_vm1, %v11164_v26 }
 0x26a   : > { %v4958_v22 = vmax.f32 %v4957_v63, -1e+30  ;;  %v8964_v8 = vpop.f32.mrb[76].mxu0  ;;  %v9068_v40 = vpop.f32.mrb[48].mxu1 }
 0x26b   : > { %v1285_v6 = vpop.f32.mrb[77].mxu0  ;;  %v2112_v21 = vpop.f32.mrb[49].mxu1  ;;  %9396 = vmatmul.mubr.f32.vlgmr.msra.gmra.mrb[86].mxu1 %v12144_v1 }
 0x26c   : > { %v4959_v2 = vmax.f32 %v4958_v22, -1e+30  ;;  %9420 = vmatpush3.msra.mxu1 %v11985_v43  ;;  %9398 = vmatprep.mubr.f32.mxu1 %v12151_v4 }
 0x26d   : > { %10429 = vmatprep.subr.bf16.mxu1 %v11162_v11 }
 0x26e   : > { %v4960_v9 = vmax.f32 %v4959_v2, -1e+30  ;;  %v8967_v47 = vpop.f32.mrb[78].mxu0  ;;  %v9071_v51 = vpop.f32.mrb[50].mxu1 }
 0x26f   : > { %v1297_v37 = vpop.f32.mrb[79].mxu0  ;;  %v2128_v58 = vpop.f32.mrb[51].mxu1  ;;  %9399 = vmatmul.mubr.f32.gmra.mrb[144].mxu1 %v12162_v61 }
 0x270   : > { %v4961_v41 = vmax.f32 %v4960_v9, -1e+30  ;;  %9401 = vmatprep.mubr.f32.mxu1 %v12169_v20 }
 0x272   : > { %v4962_v42 = vmax.f32 %v4961_v41, -1e+30  ;;  %v8970_v53 = vpop.f32.mrb[80].mxu0  ;;  %v9074_v27 = vpop.f32.mrb[52].mxu1 }
 0x273   : > { %v1309_v44 = vpop.f32.mrb[81].mxu0  ;;  %v2144_v24 = vpop.f32.mrb[53].mxu1  ;;  %9402 = vmatmul.mubr.f32.gmra.mrb[146].mxu1 %v12176_v36 }
 0x274   : > { %v4963_v43 = vmax.f32 %v4962_v42, -1e+30  ;;  %9404 = vmatprep.mubr.f32.mxu1 %v12178_v35 }
 0x276   : > { %v4964_v31 = vmax.f32 %v4963_v43, -1e+30  ;;  %v8973_v54 = vpop.f32.mrb[82].mxu0  ;;  %v9077_v14 = vpop.f32.mrb[54].mxu1 }
 0x277   : > { %v1321_v15 = vpop.f32.mrb[83].mxu0  ;;  %v2160_v16 = vpop.f32.mrb[55].mxu1  ;;  %9405 = vmatmul.mubr.f32.gmra.mrb[148].mxu1 %v12205_v7 }
 0x278   : > { %v4965_v48 = vmax.f32 %v4964_v31, -1e+30  ;;  %9407 = vmatprep.mubr.f32.mxu1 %v12213_v0 }
 0x27a   : > { %v4966_v60 = vmax.f32 %v4965_v48, -1e+30  ;;  %v8976_v32 = vpop.f32.mrb[84].mxu0  ;;  %v9080_v50 = vpop.f32.mrb[56].mxu1 }
 0x27b   : > { %v1333_v13 = vpop.f32.mrb[85].mxu0  ;;  %v2176_v25 = vpop.f32.mrb[57].mxu1  ;;  %9408 = vmatmul.mubr.f32.gmra.mrb[150].mxu1 %v12234_v30 }
 0x27c   : > { %v4967_v17 = vmax.f32 %v4966_v60, -1e+30  ;;  %9410 = vmatprep.mubr.f32.mxu1 %v12239_v23 }
 0x27e   : > { %v4968_v10 = vrot.slane %v4967_v17, 4 }
 0x27f   : > { %9411 = vmatmul.mubr.f32.gmra.mrb[152].mxu1 %v12261_v39 }
 0x280   : > { %v4969_v28 = vmax.f32 %v4967_v17, %v4968_v10  ;;  %9413 = vmatprep.mubr.f32.mxu1 %v12267_v19 }
 0x282   : > { %v4970_v3 = vrot.slane %v4969_v28, 2  ;;  %v9088_v49 = vpop.f32.mrb[58].mxu1  ;;  %v9140_v5 = vpop.f32.mrb[88].mxu0 }
 0x283   : > { %v2270_v33 = vpop.f32.mrb[59].mxu1  ;;  %v2686_v57 = vpop.f32.mrb[89].mxu0  ;;  %9414 = vmatmul.mubr.f32.gmra.mrb[154].mxu1 %v12282_v12 }
 0x284   : > { %v4971_v62 = vmax.f32 %v4969_v28, %v4970_v3  ;;  %9416 = vmatprep.mubr.f32.mxu1 %v12291_v59 }
 0x286   : > { %v4972_v46 = vrot.slane %v4971_v62, 1  ;;  %v9091_v45 = vpop.f32.mrb[60].mxu1  ;;  %v9143_v29 = vpop.f32.mrb[90].mxu0 }
 0x287   : > { %v2282_v55 = vpop.f32.mrb[61].mxu1  ;;  %v2706_v52 = vpop.f32.mrb[91].mxu0  ;;  %9417 = vmatmul.mubr.f32.gmra.mrb[156].mxu1 %v12300_v56 }
 0x288   : > { %v4973_v63 = vmax.f32 %v4971_v62, %v4972_v46  ;;  %9421 = vmatprep.mubr.f32.mxu1 %v12132_v34 }
 0x28a   : > { %v5037_v22 = vsub.f32 %v12467_v18, %v4973_v63  ;;  %v5038_v8 = vsub.f32 %v12465_v38, %v4973_v63  ;;  %v5039_v40 = vsub.f32 -1e+30, %v4973_v63  ;;  %v9094_v6 = vpop.f32.mrb[62].mxu1  ;;  %v9146_v21 = vpop.f32.mrb[92].mxu0 }
 0x28b   : > { %v2294_v2 = vpop.f32.mrb[63].mxu1  ;;  %v2726_v9 = vpop.f32.mrb[93].mxu0  ;;  %9422 = vmatmul.mubr.f32.vlgmr.msra.gmra.mrb[86].mxu1 %v12144_v1  ;;  %v157_v21 = vld [vmem:[%s11294_s4 + $0x10] sm:$0xff] }
 0x28c   : > { %v5101_v47 = vmul.f32 1.442695, %v5037_v22  ;;  %v5103_v51 = vmul.f32 1.442695, %v5038_v8  ;;  %v5105_v37 = vmul.f32 1.442695, %v5039_v40  ;;  %9424 = vmatprep.mubr.f32.mxu1 %v12151_v4 }
 0x28e   : > { %11013 = vpow2.f32 %v5101_v47  ;;  %v9097_v58 = vpop.f32.mrb[64].mxu1  ;;  %v9149_v41 = vpop.f32.mrb[94].mxu0 }
 0x28f   : > { %11015 = vpow2.f32 %v5103_v51  ;;  %v2306_v34 = vpop.f32.mrb[65].mxu1  ;;  %v2746_v18 = vpop.f32.mrb[95].mxu0  ;;  %9425 = vmatmul.mubr.f32.gmra.mrb[158].mxu1 %v12162_v61  ;;  %v12571_v51 = vand.u32 4294901760, %v157_v21 }
 0x290   : > { %11017 = vpow2.f32 %v5105_v37  ;;  %9427 = vmatprep.mubr.f32.mxu1 %v12169_v20 }
 0x292   : > { %v9100_v38 = vpop.f32.mrb[66].mxu1  ;;  %v9152_v42 = vpop.f32.mrb[96].mxu0 }
 0x293   : > { %v2318_v53 = vpop.f32.mrb[67].mxu1  ;;  %v2766_v1 = vpop.f32.mrb[97].mxu0  ;;  %9428 = vmatmul.mubr.f32.gmra.mrb[160].mxu1 %v12176_v36 }
 0x294   : > { %9430 = vmatprep.mubr.f32.mxu1 %v12178_v35  ;;  %v12578_v53 = vsub.f32 %v157_v21, %v12571_v51 }
 0x296   : > { %v9103_v4 = vpop.f32.mrb[68].mxu1  ;;  %v9155_v27 = vpop.f32.mrb[98].mxu0 }
 0x297   : > { %v2330_v44 = vpop.f32.mrb[69].mxu1  ;;  %v2786_v24 = vpop.f32.mrb[99].mxu0  ;;  %9431 = vmatmul.mubr.f32.gmra.mrb[162].mxu1 %v12205_v7 }
 0x298   : > { %v11014_v43 = vpop.eup %11013  ;;  %9433 = vmatprep.mubr.f32.mxu1 %v12213_v0 }
 0x299   : > { %v11016_v61 = vpop.eup %11015  ;;  %v5314_v31 = vand.u32 4294901760, %v11014_v43 }
 0x29a   : > { %v12517_v20 = vpop.eup %11017  ;;  %v5229_v54 = vadd.f32 %v11016_v61, %v11014_v43  ;;  %v9106_v14 = vpop.f32.mrb[70].mxu1  ;;  %v5317_v16 = vand.u32 4294901760, %v11016_v61 }
 0x29b   : > { %v9158_v15 = vpop.f32.mrb[100].mxu0  ;;  %v2342_v36 = vpop.f32.mrb[71].mxu1  ;;  %9434 = vmatmul.mubr.f32.gmra.mrb[164].mxu1 %v12234_v30  ;;  %v12520_v35 = vsub.f32 %v11014_v43, %v5314_v31  ;;  %v12523_v60 = vand.u32 4294901760, %v12517_v20  ;;  %v5396_v14 = vand.u32 4294901760, %v12578_v53 }
 0x29c   : > { %v2806_v48 = vpop.f32.mrb[101].mxu0  ;;  %v5230_v7 = vadd.f32 %v12517_v20, %v5229_v54  ;;  %9436 = vmatprep.mubr.f32.mxu1 %v12239_v23  ;;  %v12527_v0 = vpack.c.bf16 %v5317_v16, %v5314_v31  ;;  %v12529_v32 = vsub.f32 %v11016_v61, %v5317_v16 }
 0x29d   : > { %v5407_v50 = vand.u32 4294901760, %v12520_v35  ;;  %v12545_v23 = vpack.c.bf16 %v12523_v60, %v12523_v60  ;;  %v12585_v31 = vsub.f32 %v12517_v20, %v12523_v60 }
 0x29e   : > { %v5231_v13 = vadd.f32 %v12517_v20, %v5230_v7  ;;  %10287 = vmatpush3.bf16.msra.mxu0 %v12527_v0  ;;  %v12534_v30 = vpop.f32.mrb[0].mxu1  ;;  %v5414_v25 = vand.u32 4294901760, %v12529_v32  ;;  %v10334_v17 = vpack.c.bf16 %v12529_v32, %v12520_v35 }
 0x29f   : > { %v12539_v10 = vpop.f32.mrb[1].mxu1  ;;  %9437 = vmatmul.mubr.f32.gmra.mrb[166].mxu1 %v12261_v39  ;;  %10288 = vmatprep.subr.bf16.mxu0 %v11162_v11  ;;  %v5408_v28 = vsub.f32 %v12520_v35, %v5407_v50 }
 0x2a0   : > { %v5232_v3 = vadd.f32 %v12517_v20, %v5231_v13  ;;  %v4974_v49 = vmax.f32 %v12539_v10, %v12534_v30  ;;  %9439 = vmatprep.mubr.f32.mxu1 %v12267_v19  ;;  %v5415_v5 = vsub.f32 %v12529_v32, %v5414_v25  ;;  %v12553_v33 = vpack.c.bf16 %v5414_v25, %v5407_v50 }
 0x2a1   : > { %v5409_v39 = vand.u32 4294901760, %v5408_v28  ;;  %v12593_v25 = vand.u32 4294901760, %v12585_v31  ;;  %v5397_v28 = vsub.f32 %v12578_v53, %v5396_v14 }
 0x2a2   : > { %v5233_v57 = vadd.f32 %v12517_v20, %v5232_v3  ;;  %v4975_v62 = vmax.f32 %v4974_v49, -1e+30  ;;  %10290 = vmatpush3.bf16.msra.mxu0 %v12545_v23  ;;  %v9114_v46 = vpop.f32.mrb[72].mxu1  ;;  %v9166_v45 = vpop.f32.mrb[102].mxu0  ;;  %v5416_v29 = vand.u32 4294901760, %v5415_v5 }
 0x2a3   : > { %v2432_v55 = vpop.f32.mrb[73].mxu1  ;;  %v2904_v52 = vpop.f32.mrb[103].mxu0  ;;  %9440 = vmatmul.mubr.f32.gmra.mrb[168].mxu1 %v12282_v12  ;;  %10291 = vmatprep.subr.bf16.mxu0 %v11162_v11  ;;  %v5422_v45 = vsub.f32 %v12585_v31, %v12593_v25 }
 0x2a4   : > { %v4976_v19 = vmax.f32 %v4975_v62, -1e+30  ;;  %9442 = vmatprep.mubr.f32.mxu1 %v12291_v59  ;;  %v12560_v63 = vpack.c.bf16 %v5416_v29, %v5409_v39  ;;  %v5234_v22 = vadd.f32 %v12517_v20, %v5233_v57  ;;  %v5398_v29 = vand.u32 4294901760, %v5397_v28 }
 0x2a6   : > { %v4977_v8 = vmax.f32 %v4976_v19, -1e+30  ;;  %10293 = vmatpush3.bf16.msra.mxu0 %v12545_v23  ;;  %v9117_v40 = vpop.f32.mrb[74].mxu1  ;;  %v9169_v6 = vpop.f32.mrb[104].mxu0  ;;  %v5235_v2 = vadd.f32 %v12517_v20, %v5234_v22 }
 0x2a7   : > { %v2444_v9 = vpop.f32.mrb[75].mxu1  ;;  %v2916_v47 = vpop.f32.mrb[105].mxu0  ;;  %9443 = vmatmul.mubr.f32.gmra.mrb[170].mxu1 %v12300_v56  ;;  %10294 = vmatprep.subr.bf16.mxu0 %v11162_v11  ;;  %v5423_v40 = vand.u32 4294901760, %v5422_v45 }
 0x2a8   : > { %v4978_v12 = vmax.f32 %v4977_v8, -1e+30  ;;  %9687 = vmatprep.mubr.msk.f32.mxu1 %vm11163_vm1, %v11164_v26  ;;  %v5236_v59 = vadd.f32 %v12517_v20, %v5235_v2 }
 0x2a9   : > { %v10313_v2 = vpack.c.bf16 %v5423_v40, %v5423_v40 }
 0x2aa   : > { %v4979_v37 = vmax.f32 %v4978_v12, -1e+30  ;;  %10296 = vmatpush3.bf16.msra.mxu0 %v12545_v23  ;;  %v9120_v58 = vpop.f32.mrb[76].mxu1  ;;  %v9172_v41 = vpop.f32.mrb[106].mxu0  ;;  %v5237_v34 = vadd.f32 %v12517_v20, %v5236_v59 }
 0x2ab   : > { %v2456_v18 = vpop.f32.mrb[77].mxu1  ;;  %v2928_v38 = vpop.f32.mrb[107].mxu0  ;;  %10297 = vmatprep.subr.bf16.mxu0 %v11162_v11 }
 0x2ac   : > { %v4980_v56 = vmax.f32 %v4979_v37, -1e+30  ;;  %v5238_v42 = vadd.f32 %v12517_v20, %v5237_v34 }
 0x2ae   : > { %v4981_v1 = vmax.f32 %v4980_v56, -1e+30  ;;  %10299 = vmatpush3.bf16.msra.mxu0 %v12545_v23  ;;  %v9123_v4 = vpop.f32.mrb[78].mxu1  ;;  %v9175_v27 = vpop.f32.mrb[108].mxu0  ;;  %v5239_v44 = vadd.f32 %v12517_v20, %v5238_v42 }
 0x2af   : > { %v2468_v24 = vpop.f32.mrb[79].mxu1  ;;  %v2940_v43 = vpop.f32.mrb[109].mxu0  ;;  %10300 = vmatprep.subr.bf16.mxu0 %v11162_v11 }
 0x2b0   : > { %v4982_v61 = vmax.f32 %v4981_v1, -1e+30  ;;  %v5240_v54 = vadd.f32 %v12517_v20, %v5239_v44 }
 0x2b2   : > { %v4983_v15 = vmax.f32 %v4982_v61, -1e+30  ;;  %10302 = vmatpush3.bf16.msra.mxu0 %v12545_v23  ;;  %v9126_v16 = vpop.f32.mrb[80].mxu1  ;;  %v9178_v36 = vpop.f32.mrb[110].mxu0  ;;  %v5241_v48 = vadd.f32 %v12517_v20, %v5240_v54 }
 0x2b3   : > { %v2480_v7 = vpop.f32.mrb[81].mxu1  ;;  %v2952_v50 = vpop.f32.mrb[111].mxu0  ;;  %10303 = vmatprep.subr.bf16.mxu0 %v11162_v11 }
 0x2b4   : > { %v4984_v13 = vmax.f32 %v4983_v15, -1e+30  ;;  %v5242_v60 = vadd.f32 %v12517_v20, %v5241_v48 }
 0x2b6   : > { %v4985_v3 = vmax.f32 %v4984_v13, -1e+30  ;;  %10305 = vmatpush3.bf16.msra.mxu0 %v12545_v23  ;;  %v9129_v49 = vpop.f32.mrb[82].mxu1  ;;  %v9181_v5 = vpop.f32.mrb[112].mxu0  ;;  %v12601_v39 = vadd.f32 %v12517_v20, %v5242_v60 }
 0x2b7   : > { %v2492_v57 = vpop.f32.mrb[83].mxu1  ;;  %v2964_v62 = vpop.f32.mrb[113].mxu0  ;;  %10306 = vmatprep.subr.bf16.mxu0 %v11162_v11 }
 0x2b8   : > { %v4986_v46 = vmax.f32 %v4985_v3, -1e+30 }
 0x2ba   : > { %v4987_v55 = vmax.f32 %v4986_v46, -1e+30  ;;  %10308 = vmatpush3.bf16.msra.mxu0 %v12545_v23  ;;  %v9132_v52 = vpop.f32.mrb[84].mxu1  ;;  %v9184_v19 = vpop.f32.mrb[114].mxu0 }
 0x2bb   : > { %v2504_v22 = vpop.f32.mrb[85].mxu1  ;;  %v2976_v8 = vpop.f32.mrb[115].mxu0  ;;  %10309 = vmatprep.subr.bf16.mxu0 %v11162_v11 }
 0x2bc   : > { %v4988_v20 = vmax.f32 %v4987_v55, -1e+30 }
 0x2bd   : > { %9478 = vmatmul.mubr.f32.vlgmr.msra.gmra.mrb[172].mxu0 %v5398_v29 }
 0x2be   : > { %v4989_v6 = vrot.slane %v4988_v20, 4  ;;  %10311 = vmatpush3.bf16.msra.mxu0 %v12560_v63  ;;  %9512 = vmatprep.mubr.msk.f32.mxu0 %vm11163_vm1, %v11164_v26 }
 0x2bf   : > { %10312 = vmatprep.subr.bf16.mxu0 %v11162_v11 }
 0x2c0   : > { %v4990_v21 = vmax.f32 %v4988_v20, %v4989_v6 }
 0x2c2   : > { %v4991_v9 = vrot.slane %v4990_v21, 2  ;;  %10314 = vmatpush3.bf16.msra.mxu0 %v10313_v2  ;;  %v9192_v47 = vpop.f32.mrb[116].mxu0  ;;  %v9296_v12 = vpop.f32.mrb[88].mxu1 }
 0x2c3   : > { %v3070_v59 = vpop.f32.mrb[117].mxu0  ;;  %v3857_v37 = vpop.f32.mrb[89].mxu1  ;;  %10315 = vmatprep.subr.bf16.mxu0 %v11162_v11 }
 0x2c4   : > { %v4992_v58 = vmax.f32 %v4990_v21, %v4991_v9  ;;  %v12645_v59 = vpack.c.bf16 %v12585_v31, %v12585_v31 }
 0x2c6   : > { %v4993_v41 = vrot.slane %v4992_v58, 1  ;;  %10317 = vmatpush3.bf16.msra.mxu0 %v10313_v2  ;;  %v9195_v34 = vpop.f32.mrb[118].mxu0  ;;  %v9299_v63 = vpop.f32.mrb[90].mxu1 }
 0x2c7   : > { %v3084_v18 = vpop.f32.mrb[119].mxu0  ;;  %v3877_v38 = vpop.f32.mrb[91].mxu1  ;;  %10318 = vmatprep.subr.bf16.mxu0 %v11162_v11 }
 0x2c8   : > { %v4994_v56 = vmax.f32 %v4992_v58, %v4993_v41 }
 0x2ca   : > { %v5053_v42 = vsub.f32 %v12539_v10, %v4994_v56  ;;  %v5054_v1 = vsub.f32 %v12534_v30, %v4994_v56  ;;  %v5055_v4 = vsub.f32 -1e+30, %v4994_v56  ;;  %10320 = vmatpush3.bf16.msra.mxu0 %v10313_v2  ;;  %v9198_v27 = vpop.f32.mrb[120].mxu0  ;;  %v9302_v44 = vpop.f32.mrb[92].mxu1 }
 0x2cb   : > { %v3098_v24 = vpop.f32.mrb[121].mxu0  ;;  %v3897_v43 = vpop.f32.mrb[93].mxu1  ;;  %10321 = vmatprep.subr.bf16.mxu0 %v11162_v11  ;;  %v160_v44 = vld [vmem:[%s11294_s4 + $0x28] sm:$0xff] }
 0x2cc   : > { %v5133_v61 = vmul.f32 1.442695, %v5053_v42  ;;  %v5135_v54 = vmul.f32 1.442695, %v5054_v1  ;;  %v5137_v15 = vmul.f32 1.442695, %v5055_v4 }
 0x2ce   : > { %11019 = vpow2.f32 %v5133_v61  ;;  %10323 = vmatpush3.bf16.msra.mxu0 %v10313_v2  ;;  %v9201_v16 = vpop.f32.mrb[122].mxu0  ;;  %v9305_v36 = vpop.f32.mrb[94].mxu1 }
 0x2cf   : > { %11021 = vpow2.f32 %v5135_v54  ;;  %v3112_v48 = vpop.f32.mrb[123].mxu0  ;;  %v3917_v10 = vpop.f32.mrb[95].mxu1  ;;  %10324 = vmatprep.subr.bf16.mxu0 %v11162_v11 }
 0x2d0   : > { %11023 = vpow2.f32 %v5137_v15  ;;  %v12671_v15 = vand.u32 4294901760, %v160_v44 }
 0x2d2   : > { %10326 = vmatpush3.bf16.msra.mxu0 %v10313_v2  ;;  %v9204_v30 = vpop.f32.mrb[124].mxu0  ;;  %v9308_v7 = vpop.f32.mrb[96].mxu1 }
 0x2d3   : > { %v3126_v50 = vpop.f32.mrb[125].mxu0  ;;  %v3937_v13 = vpop.f32.mrb[97].mxu1  ;;  %10327 = vmatprep.subr.bf16.mxu0 %v11162_v11 }
 0x2d4   : > { %v12680_v50 = vsub.f32 %v160_v44, %v12671_v15 }
 0x2d6   : > { %10329 = vmatpush3.bf16.msra.mxu0 %v10313_v2  ;;  %v9207_v60 = vpop.f32.mrb[126].mxu0  ;;  %v9311_v28 = vpop.f32.mrb[98].mxu1 }
 0x2d7   : > { %v3140_v3 = vpop.f32.mrb[127].mxu0  ;;  %v3957_v49 = vpop.f32.mrb[99].mxu1  ;;  %10330 = vmatprep.subr.bf16.mxu0 %v11162_v11 }
 0x2d8   : > { %v11020_v5 = vpop.eup %11019 }
 0x2d9   : > { %v11022_v57 = vpop.eup %11021  ;;  %v5955_v62 = vand.u32 4294901760, %v11020_v5 }
 0x2da   : > { %v12620_v46 = vpop.eup %11023  ;;  %v5250_v45 = vadd.f32 %v11022_v57, %v11020_v5  ;;  %10332 = vmatpush3.bf16.msra.mxu0 %v10313_v2  ;;  %v9210_v29 = vpop.f32.mrb[128].mxu0  ;;  %v5958_v52 = vand.u32 4294901760, %v11022_v57 }
 0x2db   : > { %v9314_v55 = vpop.f32.mrb[100].mxu1  ;;  %v3154_v19 = vpop.f32.mrb[129].mxu0  ;;  %10333 = vmatprep.subr.bf16.mxu0 %v11162_v11  ;;  %v12623_v8 = vsub.f32 %v11020_v5, %v5955_v62  ;;  %v5961_v21 = vand.u32 4294901760, %v12620_v46 }
 0x2dc   : > { %v3977_v22 = vpop.f32.mrb[101].mxu1  ;;  %v5251_v20 = vadd.f32 %v12620_v46, %v5250_v45  ;;  %v12626_v40 = vpack.c.bf16 %v5958_v52, %v5955_v62  ;;  %v12628_v6 = vsub.f32 %v11022_v57, %v5958_v52  ;;  %v6037_v62 = vand.u32 4294901760, %v12680_v50 }
 0x2dd   : > { %9513 = vmatmul.mubr.f32.vlgmr.msra.gmra.mrb[172].mxu0 %v12571_v51  ;;  %v6048_v2 = vand.u32 4294901760, %v12623_v8  ;;  %v12649_v32 = vpack.c.bf16 %v5961_v21, %v5961_v21  ;;  %v12688_v5 = vsub.f32 %v12620_v46, %v5961_v21 }
 0x2de   : > { %v5252_v9 = vadd.f32 %v12620_v46, %v5251_v20  ;;  %10335 = vmatpush3.bf16.msra.mxu0 %v10334_v17  ;;  %10431 = vmatpush3.bf16.msra.mxu1 %v12626_v40  ;;  %v6055_v47 = vand.u32 4294901760, %v12628_v6  ;;  %v10478_v12 = vpack.c.bf16 %v12628_v6, %v12623_v8  ;;  %v6038_v21 = vsub.f32 %v12680_v50, %v6037_v62 }
 0x2df   : > { %10336 = vmatprep.subr.bf16.mxu0 %v11162_v11  ;;  %10432 = vmatprep.subr.bf16.mxu1 %v11162_v11  ;;  %v6049_v37 = vsub.f32 %v12623_v8, %v6048_v2  ;;  %v12698_v22 = vand.u32 4294901760, %v12688_v5 }
 0x2e0   : > { %v5253_v35 = vadd.f32 %v12620_v46, %v5252_v9  ;;  %9547 = vmatprep.mubr.msk.f32.mxu0 %vm11163_vm1, %v11164_v26  ;;  %v6056_v17 = vsub.f32 %v12628_v6, %v6055_v47  ;;  %v12654_v58 = vpack.c.bf16 %v6055_v47, %v6048_v2 }
 0x2e1   : > { %v6050_v41 = vand.u32 4294901760, %v6049_v37 }
 0x2e2   : > { %v5254_v34 = vadd.f32 %v12620_v46, %v5253_v35  ;;  %10338 = vmatpush3.bf16.msra.mxu0 %v12645_v59  ;;  %10434 = vmatpush3.bf16.msra.mxu1 %v12649_v32  ;;  %v9218_v31 = vpop.f32.mrb[130].mxu0  ;;  %v9322_v63 = vpop.f32.mrb[102].mxu1  ;;  %v6057_v18 = vand.u32 4294901760, %v6056_v17  ;;  %v6063_v17 = vsub.f32 %v12688_v5, %v12698_v22 }
 0x2e3   : > { %v3251_v38 = vpop.f32.mrb[131].mxu0  ;;  %v4075_v56 = vpop.f32.mrb[103].mxu1  ;;  %10339 = vmatprep.subr.bf16.mxu0 %v11162_v11  ;;  %10435 = vmatprep.subr.bf16.mxu1 %v11162_v11 }
 0x2e4   : > { %v12661_v42 = vpack.c.bf16 %v6057_v18, %v6050_v41  ;;  %v5255_v1 = vadd.f32 %v12620_v46, %v5254_v34  ;;  %v6039_v41 = vand.u32 4294901760, %v6038_v21 }
 0x2e6   : > { %10341 = vmatpush3.bf16.msra.mxu0 %v12645_v59  ;;  %10437 = vmatpush3.bf16.msra.mxu1 %v12649_v32  ;;  %v9221_v4 = vpop.f32.mrb[132].mxu0  ;;  %v9325_v27 = vpop.f32.mrb[104].mxu1  ;;  %v5256_v24 = vadd.f32 %v12620_v46, %v5255_v1 }
 0x2e7   : > { %v3267_v43 = vpop.f32.mrb[133].mxu0  ;;  %v4087_v61 = vpop.f32.mrb[105].mxu1  ;;  %10342 = vmatprep.subr.bf16.mxu0 %v11162_v11  ;;  %10438 = vmatprep.subr.bf16.mxu1 %v11162_v11 }
 0x2e8   : > { %v5257_v54 = vadd.f32 %v12620_v46, %v5256_v24 }
 0x2ea   : > { %10344 = vmatpush3.bf16.msra.mxu0 %v12645_v59  ;;  %10440 = vmatpush3.bf16.msra.mxu1 %v12649_v32  ;;  %v9224_v16 = vpop.f32.mrb[134].mxu0  ;;  %v9328_v36 = vpop.f32.mrb[106].mxu1  ;;  %v5258_v48 = vadd.f32 %v12620_v46, %v5257_v54 }
 0x2eb   : > { %v3283_v10 = vpop.f32.mrb[135].mxu0  ;;  %v4099_v30 = vpop.f32.mrb[107].mxu1  ;;  %10345 = vmatprep.subr.bf16.mxu0 %v11162_v11  ;;  %10441 = vmatprep.subr.bf16.mxu1 %v11162_v11 }
 0x2ec   : > { %v5259_v7 = vadd.f32 %v12620_v46, %v5258_v48 }
 0x2ee   : > { %10347 = vmatpush3.bf16.msra.mxu0 %v12645_v59  ;;  %10443 = vmatpush3.bf16.msra.mxu1 %v12649_v32  ;;  %v9227_v13 = vpop.f32.mrb[136].mxu0  ;;  %v9331_v60 = vpop.f32.mrb[108].mxu1  ;;  %v5260_v28 = vadd.f32 %v12620_v46, %v5259_v7 }
 0x2ef   : > { %v3299_v3 = vpop.f32.mrb[137].mxu0  ;;  %v4111_v49 = vpop.f32.mrb[109].mxu1  ;;  %10348 = vmatprep.subr.bf16.mxu0 %v11162_v11  ;;  %10444 = vmatprep.subr.bf16.mxu1 %v11162_v11 }
 0x2f0   : > { %v5261_v57 = vadd.f32 %v12620_v46, %v5260_v28 }
 0x2f2   : > { %10350 = vmatpush3.bf16.msra.mxu0 %v12645_v59  ;;  %10446 = vmatpush3.bf16.msra.mxu1 %v12649_v32  ;;  %v9230_v45 = vpop.f32.mrb[138].mxu0  ;;  %v9334_v29 = vpop.f32.mrb[110].mxu1  ;;  %v5262_v55 = vadd.f32 %v12620_v46, %v5261_v57 }
 0x2f3   : > { %v3315_v52 = vpop.f32.mrb[139].mxu0  ;;  %v4123_v19 = vpop.f32.mrb[111].mxu1  ;;  %10351 = vmatprep.subr.bf16.mxu0 %v11162_v11  ;;  %10447 = vmatprep.subr.bf16.mxu1 %v11162_v11 }
 0x2f4   : > { %v5263_v20 = vadd.f32 %v12620_v46, %v5262_v55 }
 0x2f6   : > { %10353 = vmatpush3.bf16.msra.mxu0 %v12645_v59  ;;  %10449 = vmatpush3.bf16.msra.mxu1 %v12649_v32  ;;  %v9233_v2 = vpop.f32.mrb[140].mxu0  ;;  %v9337_v9 = vpop.f32.mrb[112].mxu1  ;;  %v12707_v47 = vadd.f32 %v12620_v46, %v5263_v20  ;;  %v6064_v46 = vand.u32 4294901760, %v6063_v17 }
 0x2f7   : > { %v3331_v37 = vpop.f32.mrb[141].mxu0  ;;  %v4135_v35 = vpop.f32.mrb[113].mxu1  ;;  %10354 = vmatprep.subr.bf16.mxu0 %v11162_v11  ;;  %10450 = vmatprep.subr.bf16.mxu1 %v11162_v11 }
 0x2fa   : > { %10356 = vmatpush3.bf16.msra.mxu0 %v12645_v59  ;;  %10452 = vmatpush3.bf16.msra.mxu1 %v12649_v32  ;;  %v9236_v34 = vpop.f32.mrb[142].mxu0  ;;  %v9340_v31 = vpop.f32.mrb[114].mxu1  ;;  %v10457_v59 = vpack.c.bf16 %v6064_v46, %v6064_v46 }
 0x2fb   : > { %v3347_v63 = vpop.f32.mrb[143].mxu0  ;;  %v4147_v18 = vpop.f32.mrb[115].mxu1  ;;  %10357 = vmatprep.subr.bf16.mxu0 %v11162_v11  ;;  %10453 = vmatprep.subr.bf16.mxu1 %v11162_v11 }
 0x2fd   : > { %9548 = vmatmul.mubr.f32.vlgmr.msra.gmra.mrb[172].mxu0 %v12578_v53  ;;  %9688 = vmatmul.mubr.f32.vlgmr.msra.gmra.mrb[172].mxu1 %v6039_v41 }
 0x2fe   : > { %10359 = vmatpush3.bf16.msra.mxu0 %v12527_v0  ;;  %10455 = vmatpush3.bf16.msra.mxu1 %v12661_v42 }
 0x2ff   : > { %10360 = vmatprep.subr.bf16.mxu0 %v11162_v11  ;;  %10456 = vmatprep.subr.bf16.mxu1 %v11162_v11 }
 0x300   : > { %9582 = vmatprep.mubr.msk.f32.mxu0 %vm11163_vm1, %v11164_v26  ;;  %9722 = vmatprep.mubr.msk.f32.mxu1 %vm11163_vm1, %v11164_v26 }
 0x302   : > { %10362 = vmatpush3.bf16.msra.mxu0 %v12545_v23  ;;  %10458 = vmatpush3.bf16.msra.mxu1 %v10457_v59  ;;  %v9244_v38 = vpop.f32.mrb[144].mxu0  ;;  %v9348_v56 = vpop.f32.mrb[116].mxu1 }
 0x303   : > { %v3441_v1 = vpop.f32.mrb[145].mxu0  ;;  %v4241_v4 = vpop.f32.mrb[117].mxu1  ;;  %10363 = vmatprep.subr.bf16.mxu0 %v11162_v11  ;;  %10459 = vmatprep.subr.bf16.mxu1 %v11162_v11 }
 0x306   : > { %10365 = vmatpush3.bf16.msra.mxu0 %v12545_v23  ;;  %10461 = vmatpush3.bf16.msra.mxu1 %v10457_v59  ;;  %v9247_v42 = vpop.f32.mrb[146].mxu0  ;;  %v9351_v27 = vpop.f32.mrb[118].mxu1 }
 0x307   : > { %v3453_v44 = vpop.f32.mrb[147].mxu0  ;;  %v4255_v24 = vpop.f32.mrb[119].mxu1  ;;  %10366 = vmatprep.subr.bf16.mxu0 %v11162_v11  ;;  %10462 = vmatprep.subr.bf16.mxu1 %v11162_v11 }
 0x30a   : > { %10368 = vmatpush3.bf16.msra.mxu0 %v12545_v23  ;;  %10464 = vmatpush3.bf16.msra.mxu1 %v10457_v59  ;;  %v9250_v43 = vpop.f32.mrb[148].mxu0  ;;  %v9354_v61 = vpop.f32.mrb[120].mxu1 }
 0x30b   : > { %v3465_v54 = vpop.f32.mrb[149].mxu0  ;;  %v4269_v16 = vpop.f32.mrb[121].mxu1  ;;  %10369 = vmatprep.subr.bf16.mxu0 %v11162_v11  ;;  %10465 = vmatprep.subr.bf16.mxu1 %v11162_v11 }
 0x30e   : > { %10371 = vmatpush3.bf16.msra.mxu0 %v12545_v23  ;;  %10467 = vmatpush3.bf16.msra.mxu1 %v10457_v59  ;;  %v9253_v36 = vpop.f32.mrb[150].mxu0  ;;  %v9357_v48 = vpop.f32.mrb[122].mxu1 }
 0x30f   : > { %v3477_v10 = vpop.f32.mrb[151].mxu0  ;;  %v4283_v30 = vpop.f32.mrb[123].mxu1  ;;  %10372 = vmatprep.subr.bf16.mxu0 %v11162_v11  ;;  %10468 = vmatprep.subr.bf16.mxu1 %v11162_v11 }
 0x312   : > { %10374 = vmatpush3.bf16.msra.mxu0 %v12545_v23  ;;  %10470 = vmatpush3.bf16.msra.mxu1 %v10457_v59  ;;  %v9256_v7 = vpop.f32.mrb[152].mxu0  ;;  %v9360_v13 = vpop.f32.mrb[124].mxu1 }
 0x313   : > { %v3489_v60 = vpop.f32.mrb[153].mxu0  ;;  %v4297_v28 = vpop.f32.mrb[125].mxu1  ;;  %10375 = vmatprep.subr.bf16.mxu0 %v11162_v11  ;;  %10471 = vmatprep.subr.bf16.mxu1 %v11162_v11 }
 0x316   : > { %10377 = vmatpush3.bf16.msra.mxu0 %v12545_v23  ;;  %10473 = vmatpush3.bf16.msra.mxu1 %v10457_v59  ;;  %v9259_v3 = vpop.f32.mrb[154].mxu0  ;;  %v9363_v49 = vpop.f32.mrb[126].mxu1 }
 0x317   : > { %v3501_v57 = vpop.f32.mrb[155].mxu0  ;;  %v4311_v45 = vpop.f32.mrb[127].mxu1  ;;  %10378 = vmatprep.subr.bf16.mxu0 %v11162_v11  ;;  %10474 = vmatprep.subr.bf16.mxu1 %v11162_v11 }
 0x31a   : > { %10380 = vmatpush3.bf16.msra.mxu0 %v12545_v23  ;;  %10476 = vmatpush3.bf16.msra.mxu1 %v10457_v59  ;;  %v9262_v29 = vpop.f32.mrb[156].mxu0  ;;  %v9366_v55 = vpop.f32.mrb[128].mxu1 }
 0x31b   : > { %v3513_v52 = vpop.f32.mrb[157].mxu0  ;;  %v4325_v19 = vpop.f32.mrb[129].mxu1  ;;  %10381 = vmatprep.subr.bf16.mxu0 %v11162_v11  ;;  %10477 = vmatprep.subr.bf16.mxu1 %v11162_v11 }
 0x31d   : > { %9583 = vmatmul.mubr.f32.vlgmr.msra.gmra.mrb[172].mxu0 %v5396_v14  ;;  %9723 = vmatmul.mubr.f32.vlgmr.msra.gmra.mrb[172].mxu1 %v12671_v15  ;;  %v12764_v14 = vpack.c.bf16 %v12593_v25, %v12593_v25 }
 0x31e   : > { %10383 = vmatpush3.bf16.msra.mxu0 %v12553_v33  ;;  %10479 = vmatpush3.bf16.msra.mxu1 %v10478_v12  ;;  %v12754_v20 = vpop.f32.mrb[86].mxu0  ;;  %v12768_v33 = vpack.c.bf16 %v12688_v5, %v12688_v5 }
 0x31f   : > { %v12756_v21 = vpop.f32.mrb[87].mxu0  ;;  %10384 = vmatprep.subr.bf16.mxu0 %v11162_v11  ;;  %10480 = vmatprep.subr.bf16.mxu1 %v11162_v11 }
 0x320   : > { %v4995_v53 = vmax.f32 %v12756_v21, %v12754_v20  ;;  %9617 = vmatprep.mubr.msk.f32.mxu0 %vm11163_vm1, %v11164_v26  ;;  %9757 = vmatprep.mubr.msk.f32.mxu1 %vm11163_vm1, %v11164_v26 }
 0x322   : > { %v4996_v8 = vmax.f32 %v4995_v53, -1e+30  ;;  %10386 = vmatpush3.bf16.msra.mxu0 %v12764_v14  ;;  %10482 = vmatpush3.bf16.msra.mxu1 %v12768_v33  ;;  %v9270_v6 = vpop.f32.mrb[158].mxu0  ;;  %v9374_v12 = vpop.f32.mrb[130].mxu1 }
 0x323   : > { %v3603_v2 = vpop.f32.mrb[159].mxu0  ;;  %v4422_v25 = vpop.f32.mrb[131].mxu1  ;;  %10387 = vmatprep.subr.bf16.mxu0 %v11162_v11  ;;  %10483 = vmatprep.subr.bf16.mxu1 %v11162_v11 }
 0x324   : > { %v4997_v5 = vmax.f32 %v4996_v8, -1e+30 }
 0x326   : > { %v4998_v9 = vmax.f32 %v4997_v5, -1e+30  ;;  %10389 = vmatpush3.bf16.msra.mxu0 %v12764_v14  ;;  %10485 = vmatpush3.bf16.msra.mxu1 %v12768_v33  ;;  %v9273_v37 = vpop.f32.mrb[160].mxu0  ;;  %v9377_v35 = vpop.f32.mrb[132].mxu1 }
 0x327   : > { %v3615_v17 = vpop.f32.mrb[161].mxu0  ;;  %v4438_v41 = vpop.f32.mrb[133].mxu1  ;;  %10390 = vmatprep.subr.bf16.mxu0 %v11162_v11  ;;  %10486 = vmatprep.subr.bf16.mxu1 %v11162_v11 }
 0x328   : > { %v4999_v34 = vmax.f32 %v4998_v9, -1e+30 }
 0x32a   : > { %v5000_v31 = vmax.f32 %v4999_v34, -1e+30  ;;  %10392 = vmatpush3.bf16.msra.mxu0 %v12764_v14  ;;  %10488 = vmatpush3.bf16.msra.mxu1 %v12768_v33  ;;  %v9276_v63 = vpop.f32.mrb[162].mxu0  ;;  %v9380_v18 = vpop.f32.mrb[134].mxu1 }
 0x32b   : > { %v3627_v46 = vpop.f32.mrb[163].mxu0  ;;  %v4454_v59 = vpop.f32.mrb[135].mxu1  ;;  %10393 = vmatprep.subr.bf16.mxu0 %v11162_v11  ;;  %10489 = vmatprep.subr.bf16.mxu1 %v11162_v11 }
 0x32c   : > { %v5001_v38 = vmax.f32 %v5000_v31, -1e+30 }
 0x32e   : > { %v5002_v56 = vmax.f32 %v5001_v38, -1e+30  ;;  %10395 = vmatpush3.bf16.msra.mxu0 %v12764_v14  ;;  %10491 = vmatpush3.bf16.msra.mxu1 %v12768_v33  ;;  %v9279_v1 = vpop.f32.mrb[164].mxu0  ;;  %v9383_v4 = vpop.f32.mrb[136].mxu1 }
 0x32f   : > { %v3639_v42 = vpop.f32.mrb[165].mxu0  ;;  %v4470_v27 = vpop.f32.mrb[137].mxu1  ;;  %10396 = vmatprep.subr.bf16.mxu0 %v11162_v11  ;;  %10492 = vmatprep.subr.bf16.mxu1 %v11162_v11 }
 0x330   : > { %v5003_v44 = vmax.f32 %v5002_v56, -1e+30 }
 0x332   : > { %v5004_v24 = vmax.f32 %v5003_v44, -1e+30  ;;  %10398 = vmatpush3.bf16.msra.mxu0 %v12764_v14  ;;  %10494 = vmatpush3.bf16.msra.mxu1 %v12768_v33  ;;  %v9282_v43 = vpop.f32.mrb[166].mxu0  ;;  %v9386_v61 = vpop.f32.mrb[138].mxu1 }
 0x333   : > { %v3651_v54 = vpop.f32.mrb[167].mxu0  ;;  %v4486_v16 = vpop.f32.mrb[139].mxu1  ;;  %10399 = vmatprep.subr.bf16.mxu0 %v11162_v11  ;;  %10495 = vmatprep.subr.bf16.mxu1 %v11162_v11 }
 0x334   : > { %v5005_v36 = vmax.f32 %v5004_v24, -1e+30 }
 0x336   : > { %v5006_v48 = vmax.f32 %v5005_v36, -1e+30  ;;  %10401 = vmatpush3.bf16.msra.mxu0 %v12764_v14  ;;  %10497 = vmatpush3.bf16.msra.mxu1 %v12768_v33  ;;  %v9285_v10 = vpop.f32.mrb[168].mxu0  ;;  %v9389_v30 = vpop.f32.mrb[140].mxu1 }
 0x337   : > { %v3663_v7 = vpop.f32.mrb[169].mxu0  ;;  %v4502_v13 = vpop.f32.mrb[141].mxu1  ;;  %10402 = vmatprep.subr.bf16.mxu0 %v11162_v11  ;;  %10498 = vmatprep.subr.bf16.mxu1 %v11162_v11 }
 0x338   : > { %v5007_v60 = vmax.f32 %v5006_v48, -1e+30 }
 0x33a   : > { %v5008_v28 = vmax.f32 %v5007_v60, -1e+30  ;;  %10404 = vmatpush3.bf16.msra.mxu0 %v12764_v14  ;;  %10500 = vmatpush3.bf16.msra.mxu1 %v12768_v33  ;;  %v9288_v3 = vpop.f32.mrb[170].mxu0  ;;  %v9392_v49 = vpop.f32.mrb[142].mxu1 }
 0x33b   : > { %v3675_v57 = vpop.f32.mrb[171].mxu0  ;;  %v4518_v45 = vpop.f32.mrb[143].mxu1  ;;  %10405 = vmatprep.subr.bf16.mxu0 %v11162_v11  ;;  %10501 = vmatprep.subr.bf16.mxu1 %v11162_v11 }
 0x33c   : > { %v5009_v29 = vmax.f32 %v5008_v28, -1e+30 }
 0x33d   : > { %9618 = vmatmul.mubr.f32.vlgmr.msra.gmra.mrb[172].mxu0 %v12571_v51  ;;  %9758 = vmatmul.mubr.f32.vlgmr.msra.gmra.mrb[172].mxu1 %v12680_v50 }
 0x33e   : > { %v5010_v55 = vrot.slane %v5009_v29, 4  ;;  %10407 = vmatpush3.bf16.msra.mxu0 %v12527_v0  ;;  %10503 = vmatpush3.bf16.msra.mxu1 %v12626_v40 }
 0x33f   : > { %10408 = vmatprep.subr.bf16.mxu0 %v11162_v11  ;;  %10504 = vmatprep.subr.bf16.mxu1 %v11162_v11 }
 0x340   : > { %v5011_v52 = vmax.f32 %v5009_v29, %v5010_v55  ;;  %9652 = vmatprep.mubr.msk.f32.mxu0 %vm11163_vm1, %v11164_v26  ;;  %9792 = vmatprep.mubr.msk.f32.mxu1 %vm11163_vm1, %v11164_v26 }
 0x342   : > { %v5012_v19 = vrot.slane %v5011_v52, 2  ;;  %10410 = vmatpush3.bf16.msra.mxu0 %v12545_v23  ;;  %10506 = vmatpush3.bf16.msra.mxu1 %v12649_v32  ;;  %v9400_v53 = vpop.f32.mrb[144].mxu1 }
 0x343   : > { %v4612_v0 = vpop.f32.mrb[145].mxu1  ;;  %10411 = vmatprep.subr.bf16.mxu0 %v11162_v11  ;;  %10507 = vmatprep.subr.bf16.mxu1 %v11162_v11 }
 0x344   : > { %v5013_v14 = vmax.f32 %v5011_v52, %v5012_v19  ;;  %v163_v0 = vld [vmem:[%s11294_s4 + $0x40] sm:$0xff] }
 0x346   : > { %v5014_v33 = vrot.slane %v5013_v14, 1  ;;  %10413 = vmatpush3.bf16.msra.mxu0 %v12545_v23  ;;  %10509 = vmatpush3.bf16.msra.mxu1 %v12649_v32  ;;  %v9403_v8 = vpop.f32.mrb[146].mxu1 }
 0x347   : > { %v4624_v6 = vpop.f32.mrb[147].mxu1  ;;  %10414 = vmatprep.subr.bf16.mxu0 %v11162_v11  ;;  %10510 = vmatprep.subr.bf16.mxu1 %v11162_v11 }
 0x348   : > { %v5015_v12 = vmax.f32 %v5013_v14, %v5014_v33 }
 0x34a   : > { %v5069_v2 = vsub.f32 %v12756_v21, %v5015_v12  ;;  %v5070_v25 = vsub.f32 %v12754_v20, %v5015_v12  ;;  %v5071_v5 = vsub.f32 -1e+30, %v5015_v12  ;;  %10416 = vmatpush3.bf16.msra.mxu0 %v12545_v23  ;;  %10512 = vmatpush3.bf16.msra.mxu1 %v12649_v32  ;;  %v9406_v9 = vpop.f32.mrb[148].mxu1  ;;  %v12904_v12 = vand.u32 4294901760, %v163_v0 }
 0x34b   : > { %v4636_v37 = vpop.f32.mrb[149].mxu1  ;;  %10417 = vmatprep.subr.bf16.mxu0 %v11162_v11  ;;  %10513 = vmatprep.subr.bf16.mxu1 %v11162_v11 }
 0x34c   : > { %v5165_v35 = vmul.f32 1.442695, %v5069_v2  ;;  %v5167_v17 = vmul.f32 1.442695, %v5070_v25  ;;  %v5169_v41 = vmul.f32 1.442695, %v5071_v5 }
 0x34e   : > { %11025 = vpow2.f32 %v5165_v35  ;;  %10419 = vmatpush3.bf16.msra.mxu0 %v12545_v23  ;;  %10515 = vmatpush3.bf16.msra.mxu1 %v12649_v32  ;;  %v9409_v20 = vpop.f32.mrb[150].mxu1 }
 0x34f   : > { %11027 = vpow2.f32 %v5167_v17  ;;  %v4648_v21 = vpop.f32.mrb[151].mxu1  ;;  %10420 = vmatprep.subr.bf16.mxu0 %v11162_v11  ;;  %10516 = vmatprep.subr.bf16.mxu1 %v11162_v11  ;;  %v12913_v17 = vsub.f32 %v163_v0, %v12904_v12 }
 0x350   : > { %11029 = vpow2.f32 %v5169_v41 }
 0x352   : > { %10422 = vmatpush3.bf16.msra.mxu0 %v12545_v23  ;;  %10518 = vmatpush3.bf16.msra.mxu1 %v12649_v32  ;;  %v9412_v34 = vpop.f32.mrb[152].mxu1 }
 0x353   : > { %v4660_v31 = vpop.f32.mrb[153].mxu1  ;;  %10423 = vmatprep.subr.bf16.mxu0 %v11162_v11  ;;  %10519 = vmatprep.subr.bf16.mxu1 %v11162_v11 }
 0x356   : > { %10425 = vmatpush3.bf16.msra.mxu0 %v12545_v23  ;;  %10521 = vmatpush3.bf16.msra.mxu1 %v12649_v32  ;;  %v9415_v63 = vpop.f32.mrb[154].mxu1 }
 0x357   : > { %v4672_v18 = vpop.f32.mrb[155].mxu1  ;;  %10426 = vmatprep.subr.bf16.mxu0 %v11162_v11  ;;  %10522 = vmatprep.subr.bf16.mxu1 %v11162_v11 }
 0x358   : > { %v11026_v46 = vpop.eup %11025 }
 0x359   : > { %v11028_v59 = vpop.eup %11027  ;;  %v6596_v38 = vand.u32 4294901760, %v11026_v46 }
 0x35a   : > { %v12838_v56 = vpop.eup %11029  ;;  %v5271_v1 = vadd.f32 %v11028_v59, %v11026_v46  ;;  %10428 = vmatpush3.bf16.msra.mxu0 %v12545_v23  ;;  %10524 = vmatpush3.bf16.msra.mxu1 %v12649_v32  ;;  %v9418_v4 = vpop.f32.mrb[156].mxu1  ;;  %v6599_v42 = vand.u32 4294901760, %v11028_v59 }
 0x35b   : > { %v4684_v27 = vpop.f32.mrb[157].mxu1  ;;  %10525 = vmatprep.subr.bf16.mxu1 %v11162_v11  ;;  %10573 = vmatprep.subr.bf16.mxu0 %v11162_v11  ;;  %v12844_v44 = vsub.f32 %v11026_v46, %v6596_v38  ;;  %v12847_v24 = vand.u32 4294901760, %v12838_v56  ;;  %v6678_v46 = vand.u32 4294901760, %v12913_v17 }
 0x35c   : > { %v5272_v43 = vadd.f32 %v12838_v56, %v5271_v1  ;;  %v12850_v61 = vpack.c.bf16 %v6599_v42, %v6596_v38  ;;  %v12852_v54 = vsub.f32 %v11028_v59, %v6599_v42 }
 0x35d   : > { %9653 = vmatmul.mubr.f32.vlgmr.msra.gmra.mrb[172].mxu0 %v12571_v51  ;;  %9793 = vmatmul.mubr.f32.vlgmr.msra.gmra.mrb[172].mxu1 %v6037_v62  ;;  %v6689_v23 = vand.u32 4294901760, %v12844_v44  ;;  %v12872_v51 = vpack.c.bf16 %v12698_v22, %v12698_v22  ;;  %v12922_v63 = vsub.f32 %v12838_v56, %v12847_v24 }
 0x35e   : > { %v5273_v16 = vadd.f32 %v12838_v56, %v5272_v43  ;;  %10527 = vmatpush3.bf16.msra.mxu1 %v12654_v58  ;;  %10575 = vmatpush3.bf16.msra.mxu0 %v12850_v61  ;;  %v12861_v36 = vpop.f32.mrb[86].mxu1  ;;  %v6696_v48 = vand.u32 4294901760, %v12852_v54  ;;  %v10622_v10 = vpack.c.bf16 %v12852_v54, %v12844_v44  ;;  %v12876_v58 = vpack.c.bf16 %v12847_v24, %v12847_v24 }
 0x35f   : > { %v12866_v30 = vpop.f32.mrb[87].mxu1  ;;  %10528 = vmatprep.subr.bf16.mxu1 %v11162_v11  ;;  %10576 = vmatprep.subr.bf16.mxu0 %v11162_v11  ;;  %v6690_v50 = vsub.f32 %v12844_v44, %v6689_v23  ;;  %v12932_v27 = vand.u32 4294901760, %v12922_v63  ;;  %v6679_v43 = vsub.f32 %v12913_v17, %v6678_v46 }
 0x360   : > { %v5274_v62 = vadd.f32 %v12838_v56, %v5273_v16  ;;  %v5016_v7 = vmax.f32 %v12866_v30, %v12861_v36  ;;  %9827 = vmatprep.mubr.msk.f32.mxu1 %vm11163_vm1, %v11164_v26  ;;  %9897 = vmatprep.mubr.msk.f32.mxu0 %vm11163_vm1, %v11164_v26  ;;  %v6697_v22 = vsub.f32 %v12852_v54, %v6696_v48 }
 0x361   : > { %v6691_v13 = vand.u32 4294901760, %v6690_v50  ;;  %v12887_v60 = vpack.c.bf16 %v6696_v48, %v6689_v23 }
 0x362   : > { %v5275_v28 = vadd.f32 %v12838_v56, %v5274_v62  ;;  %v5017_v3 = vmax.f32 %v5016_v7, -1e+30  ;;  %10530 = vmatpush3.bf16.msra.mxu1 %v12872_v51  ;;  %10578 = vmatpush3.bf16.msra.mxu0 %v12876_v58  ;;  %v9426_v49 = vpop.f32.mrb[158].mxu1  ;;  %v6698_v57 = vand.u32 4294901760, %v6697_v22  ;;  %v6704_v7 = vsub.f32 %v12922_v63, %v12932_v27 }
 0x363   : > { %v4774_v45 = vpop.f32.mrb[159].mxu1  ;;  %10531 = vmatprep.subr.bf16.mxu1 %v11162_v11  ;;  %10579 = vmatprep.subr.bf16.mxu0 %v11162_v11  ;;  %v6680_v22 = vand.u32 4294901760, %v6679_v43 }
 0x364   : > { %v5018_v29 = vmax.f32 %v5017_v3, -1e+30  ;;  %v12894_v55 = vpack.c.bf16 %v6698_v57, %v6691_v13  ;;  %v5276_v52 = vadd.f32 %v12838_v56, %v5275_v28  ;;  %v6705_v49 = vand.u32 4294901760, %v6704_v7 }
 0x366   : > { %v5019_v19 = vmax.f32 %v5018_v29, -1e+30  ;;  %10533 = vmatpush3.bf16.msra.mxu1 %v12872_v51  ;;  %10581 = vmatpush3.bf16.msra.mxu0 %v12876_v58  ;;  %v9429_v53 = vpop.f32.mrb[160].mxu1  ;;  %v5277_v14 = vadd.f32 %v12838_v56, %v5276_v52  ;;  %v10601_v45 = vpack.c.bf16 %v6705_v49, %v6705_v49 }
 0x367   : > { %v4786_v33 = vpop.f32.mrb[161].mxu1  ;;  %10534 = vmatprep.subr.bf16.mxu1 %v11162_v11  ;;  %10582 = vmatprep.subr.bf16.mxu0 %v11162_v11 }
 0x368   : > { %v5020_v8 = vmax.f32 %v5019_v19, -1e+30  ;;  %v5278_v6 = vadd.f32 %v12838_v56, %v5277_v14 }
 0x36a   : > { %v5021_v2 = vmax.f32 %v5020_v8, -1e+30  ;;  %10536 = vmatpush3.bf16.msra.mxu1 %v12872_v51  ;;  %10584 = vmatpush3.bf16.msra.mxu0 %v12876_v58  ;;  %v9432_v25 = vpop.f32.mrb[162].mxu1  ;;  %v5279_v5 = vadd.f32 %v12838_v56, %v5278_v6 }
 0x36b   : > { %v4798_v9 = vpop.f32.mrb[163].mxu1  ;;  %10537 = vmatprep.subr.bf16.mxu1 %v11162_v11  ;;  %10585 = vmatprep.subr.bf16.mxu0 %v11162_v11 }
 0x36c   : > { %v5022_v37 = vmax.f32 %v5021_v2, -1e+30  ;;  %v5280_v35 = vadd.f32 %v12838_v56, %v5279_v5 }
 0x36e   : > { %v5023_v41 = vmax.f32 %v5022_v37, -1e+30  ;;  %10539 = vmatpush3.bf16.msra.mxu1 %v12872_v51  ;;  %10587 = vmatpush3.bf16.msra.mxu0 %v12876_v58  ;;  %v9435_v20 = vpop.f32.mrb[164].mxu1  ;;  %v5281_v21 = vadd.f32 %v12838_v56, %v5280_v35 }
 0x36f   : > { %v4810_v34 = vpop.f32.mrb[165].mxu1  ;;  %10540 = vmatprep.subr.bf16.mxu1 %v11162_v11  ;;  %10588 = vmatprep.subr.bf16.mxu0 %v11162_v11 }
 0x370   : > { %v5024_v31 = vmax.f32 %v5023_v41, -1e+30  ;;  %v5282_v18 = vadd.f32 %v12838_v56, %v5281_v21 }
 0x372   : > { %v5025_v59 = vmax.f32 %v5024_v31, -1e+30  ;;  %10542 = vmatpush3.bf16.msra.mxu1 %v12872_v51  ;;  %10590 = vmatpush3.bf16.msra.mxu0 %v12876_v58  ;;  %v9438_v38 = vpop.f32.mrb[166].mxu1  ;;  %v5283_v1 = vadd.f32 %v12838_v56, %v5282_v18 }
 0x373   : > { %v4822_v4 = vpop.f32.mrb[167].mxu1  ;;  %10543 = vmatprep.subr.bf16.mxu1 %v11162_v11  ;;  %10591 = vmatprep.subr.bf16.mxu0 %v11162_v11 }
 0x374   : > { %v5026_v42 = vmax.f32 %v5025_v59, -1e+30  ;;  %v5284_v24 = vadd.f32 %v12838_v56, %v5283_v1 }
 0x376   : > { %v5027_v23 = vmax.f32 %v5026_v42, -1e+30  ;;  %10545 = vmatpush3.bf16.msra.mxu1 %v12872_v51  ;;  %10593 = vmatpush3.bf16.msra.mxu0 %v12876_v58  ;;  %v9441_v16 = vpop.f32.mrb[168].mxu1  ;;  %v12941_v48 = vadd.f32 %v12838_v56, %v5284_v24  ;;  %v166_v24 = vld [vmem:[%s11294_s4 + $0x58] sm:$0xff] }
 0x377   : > { %v4834_v50 = vpop.f32.mrb[169].mxu1  ;;  %10546 = vmatprep.subr.bf16.mxu1 %v11162_v11  ;;  %10594 = vmatprep.subr.bf16.mxu0 %v11162_v11  ;;  %v13030_v16 = vand.u32 4294901760, %v166_v24 }
 0x378   : > { %v5028_v62 = vmax.f32 %v5027_v23, -1e+30 }
 0x379   : > { %v13038_v7 = vsub.f32 %v166_v24, %v13030_v16 }
 0x37a   : > { %v5029_v13 = vmax.f32 %v5028_v62, -1e+30  ;;  %10548 = vmatpush3.bf16.msra.mxu1 %v12872_v51  ;;  %10596 = vmatpush3.bf16.msra.mxu0 %v12876_v58  ;;  %v9444_v28 = vpop.f32.mrb[170].mxu1 }
 0x37b   : > { %v4846_v3 = vpop.f32.mrb[171].mxu1  ;;  %10549 = vmatprep.subr.bf16.mxu1 %v11162_v11  ;;  %10597 = vmatprep.subr.bf16.mxu0 %v11162_v11 }
 0x37c   : > { %v5030_v56 = vmax.f32 %v5029_v13, -1e+30  ;;  %v7319_v3 = vand.u32 4294901760, %v13038_v7 }
 0x37d   : > { %9828 = vmatmul.mubr.f32.vlgmr.msra.gmra.mrb[172].mxu1 %v12671_v15  ;;  %9898 = vmatmul.mubr.f32.vlgmr.msra.gmra.mrb[174].mxu0 %v6680_v22 }
 0x37e   : > { %v5031_v57 = vrot.slane %v5030_v56, 4  ;;  %10551 = vmatpush3.bf16.msra.mxu1 %v12626_v40  ;;  %10599 = vmatpush3.bf16.msra.mxu0 %v12894_v55 }
 0x37f   : > { %10552 = vmatprep.subr.bf16.mxu1 %v11162_v11  ;;  %10600 = vmatprep.subr.bf16.mxu0 %v11162_v11 }
 0x380   : > { %v5032_v51 = vmax.f32 %v5030_v56, %v5031_v57  ;;  %9862 = vmatprep.mubr.msk.f32.mxu1 %vm11163_vm1, %v11164_v26  ;;  %9932 = vmatprep.mubr.msk.f32.mxu0 %vm11163_vm1, %v11164_v26 }
 0x382   : > { %v5033_v29 = vrot.slane %v5032_v51, 2  ;;  %10554 = vmatpush3.bf16.msra.mxu1 %v12649_v32  ;;  %10602 = vmatpush3.bf16.msra.mxu0 %v10601_v45 }
 0x383   : > { %10555 = vmatprep.subr.bf16.mxu1 %v11162_v11  ;;  %10603 = vmatprep.subr.bf16.mxu0 %v11162_v11 }
 0x384   : > { %v5034_v40 = vmax.f32 %v5032_v51, %v5033_v29  ;;  %v7320_v51 = vsub.f32 %v13038_v7, %v7319_v3 }
 0x386   : > { %v5035_v55 = vrot.slane %v5034_v40, 1  ;;  %10557 = vmatpush3.bf16.msra.mxu1 %v12649_v32  ;;  %10605 = vmatpush3.bf16.msra.mxu0 %v10601_v45 }
 0x387   : > { %10558 = vmatprep.subr.bf16.mxu1 %v11162_v11  ;;  %10606 = vmatprep.subr.bf16.mxu0 %v11162_v11 }
 0x388   : > { %v5036_v52 = vmax.f32 %v5034_v40, %v5035_v55  ;;  %v7321_v40 = vand.u32 4294901760, %v7320_v51 }
 0x38a   : > { %v5085_v19 = vsub.f32 %v12866_v30, %v5036_v52  ;;  %v5086_v53 = vsub.f32 %v12861_v36, %v5036_v52  ;;  %v5087_v0 = vsub.f32 -1e+30, %v5036_v52  ;;  %10560 = vmatpush3.bf16.msra.mxu1 %v12649_v32  ;;  %10608 = vmatpush3.bf16.msra.mxu0 %v10601_v45 }
 0x38b   : > { %10561 = vmatprep.subr.bf16.mxu1 %v11162_v11  ;;  %10609 = vmatprep.subr.bf16.mxu0 %v11162_v11 }
 0x38c   : > { %v5197_v14 = vmul.f32 1.442695, %v5085_v19  ;;  %v5199_v33 = vmul.f32 1.442695, %v5086_v53  ;;  %v5201_v8 = vmul.f32 1.442695, %v5087_v0  ;;  %v10673_v19 = vpack.c.bf16 %v12932_v27, %v12932_v27 }
 0x38e   : > { %11031 = vpow2.f32 %v5197_v14  ;;  %10563 = vmatpush3.bf16.msra.mxu1 %v12649_v32  ;;  %10611 = vmatpush3.bf16.msra.mxu0 %v10601_v45 }
 0x38f   : > { %11033 = vpow2.f32 %v5199_v33  ;;  %10564 = vmatprep.subr.bf16.mxu1 %v11162_v11  ;;  %10612 = vmatprep.subr.bf16.mxu0 %v11162_v11 }
 0x390   : > { %11035 = vpow2.f32 %v5201_v8  ;;  %v5265_v8 = vrot.slane %v12707_v47, 4 }
 0x392   : > { %10566 = vmatpush3.bf16.msra.mxu1 %v12649_v32  ;;  %10614 = vmatpush3.bf16.msra.mxu0 %v10601_v45 }
 0x393   : > { %10567 = vmatprep.subr.bf16.mxu1 %v11162_v11  ;;  %10615 = vmatprep.subr.bf16.mxu0 %v11162_v11 }
 0x396   : > { %10569 = vmatpush3.bf16.msra.mxu1 %v12649_v32  ;;  %10617 = vmatpush3.bf16.msra.mxu0 %v10601_v45 }
 0x397   : > { %10570 = vmatprep.subr.bf16.mxu1 %v11162_v11  ;;  %10618 = vmatprep.subr.bf16.mxu0 %v11162_v11 }
 0x398   : > { %v11032_v36 = vpop.eup %11031 }
 0x399   : > { %v11034_v30 = vpop.eup %11033  ;;  %v7237_v6 = vand.u32 4294901760, %v11032_v36 }
 0x39a   : > { %v12980_v2 = vpop.eup %11035  ;;  %v5292_v25 = vadd.f32 %v11034_v30, %v11032_v36  ;;  %10572 = vmatpush3.bf16.msra.mxu1 %v12649_v32  ;;  %10620 = vmatpush3.bf16.msra.mxu0 %v10601_v45  ;;  %v7240_v5 = vand.u32 4294901760, %v11034_v30 }
 0x39b   : > { %10621 = vmatprep.subr.bf16.mxu0 %v11162_v11  ;;  %10717 = vmatprep.subr.bf16.mxu1 %v11162_v11  ;;  %v12985_v9 = vsub.f32 %v11032_v36, %v7237_v6  ;;  %v7243_v37 = vand.u32 4294901760, %v12980_v2 }
 0x39c   : > { %v5293_v35 = vadd.f32 %v12980_v2, %v5292_v25  ;;  %v12989_v41 = vpack.c.bf16 %v7240_v5, %v7237_v6  ;;  %v12991_v20 = vsub.f32 %v11034_v30, %v7240_v5 }
 0x39d   : > { %9863 = vmatmul.mubr.f32.vlgmr.msra.gmra.mrb[172].mxu1 %v12671_v15  ;;  %9933 = vmatmul.mubr.f32.vlgmr.msra.gmra.mrb[174].mxu0 %v12904_v12  ;;  %v7330_v32 = vand.u32 4294901760, %v12985_v9  ;;  %v10625_v15 = vpack.c.bf16 %v12922_v63, %v12922_v63  ;;  %v13008_v18 = vpack.c.bf16 %v7243_v37, %v7243_v37  ;;  %v13045_v13 = vsub.f32 %v12980_v2, %v7243_v37 }
 0x39e   : > { %v5294_v21 = vadd.f32 %v12980_v2, %v5293_v35  ;;  %10623 = vmatpush3.bf16.msra.mxu0 %v10622_v10  ;;  %10719 = vmatpush3.bf16.msra.mxu1 %v12989_v41  ;;  %v7337_v34 = vand.u32 4294901760, %v12991_v20  ;;  %v10766_v31 = vpack.c.bf16 %v12991_v20, %v12985_v9  ;;  %v5286_v37 = vrot.slane %v12941_v48, 4 }
 0x39f   : > { %10624 = vmatprep.subr.bf16.mxu0 %v11162_v11  ;;  %10720 = vmatprep.subr.bf16.mxu1 %v11162_v11  ;;  %v7331_v59 = vsub.f32 %v12985_v9, %v7330_v32  ;;  %v13054_v49 = vand.u32 4294901760, %v13045_v13  ;;  %v10769_v53 = vpack.c.bf16 %v13045_v13, %v13045_v13 }
 0x3a0   : > { %v5295_v44 = vadd.f32 %v12980_v2, %v5294_v21  ;;  %9967 = vmatprep.mubr.msk.f32.mxu0 %vm11163_vm1, %v11164_v26  ;;  %10107 = vmatprep.mubr.msk.f32.mxu1 %vm11163_vm1, %v11164_v26  ;;  %v7338_v54 = vsub.f32 %v12991_v20, %v7337_v34  ;;  %v13017_v10 = vpack.c.bf16 %v7337_v34, %v7330_v32 }
 0x3a1   : > { %v7332_v38 = vand.u32 4294901760, %v7331_v59  ;;  %v7345_v29 = vsub.f32 %v13045_v13, %v13054_v49  ;;  %v5287_v35 = vadd.f32 %v5286_v37, %v12941_v48 }
 0x3a2   : > { %v5296_v63 = vadd.f32 %v12980_v2, %v5295_v44  ;;  %10626 = vmatpush3.bf16.msra.mxu0 %v10625_v15  ;;  %10722 = vmatpush3.bf16.msra.mxu1 %v13008_v18  ;;  %v7339_v1 = vand.u32 4294901760, %v7338_v54 }
 0x3a3   : > { %10627 = vmatprep.subr.bf16.mxu0 %v11162_v11  ;;  %10723 = vmatprep.subr.bf16.mxu1 %v11162_v11  ;;  %v7346_v55 = vand.u32 4294901760, %v7345_v29 }
 0x3a4   : > { %v10742_v4 = vpack.c.bf16 %v7339_v1, %v7332_v38  ;;  %v5297_v42 = vadd.f32 %v12980_v2, %v5296_v63 }
 0x3a5   : > { %v10745_v52 = vpack.c.bf16 %v7346_v55, %v7346_v55 }
 0x3a6   : > { %10629 = vmatpush3.bf16.msra.mxu0 %v10625_v15  ;;  %10725 = vmatpush3.bf16.msra.mxu1 %v13008_v18  ;;  %v5298_v43 = vadd.f32 %v12980_v2, %v5297_v42 }
 0x3a7   : > { %10630 = vmatprep.subr.bf16.mxu0 %v11162_v11  ;;  %10726 = vmatprep.subr.bf16.mxu1 %v11162_v11 }
 0x3a8   : > { %v5299_v23 = vadd.f32 %v12980_v2, %v5298_v43 }
 0x3aa   : > { %10632 = vmatpush3.bf16.msra.mxu0 %v10625_v15  ;;  %10728 = vmatpush3.bf16.msra.mxu1 %v13008_v18  ;;  %v5300_v50 = vadd.f32 %v12980_v2, %v5299_v23 }
 0x3ab   : > { %10633 = vmatprep.subr.bf16.mxu0 %v11162_v11  ;;  %10729 = vmatprep.subr.bf16.mxu1 %v11162_v11 }
 0x3ac   : > { %v5301_v62 = vadd.f32 %v12980_v2, %v5300_v50 }
 0x3ae   : > { %10635 = vmatpush3.bf16.msra.mxu0 %v10625_v15  ;;  %10731 = vmatpush3.bf16.msra.mxu1 %v13008_v18  ;;  %v5302_v22 = vadd.f32 %v12980_v2, %v5301_v62 }
 0x3af   : > { %10636 = vmatprep.subr.bf16.mxu0 %v11162_v11  ;;  %10732 = vmatprep.subr.bf16.mxu1 %v11162_v11 }
 0x3b0   : > { %v5303_v28 = vadd.f32 %v12980_v2, %v5302_v22 }
 0x3b2   : > { %10638 = vmatpush3.bf16.msra.mxu0 %v10625_v15  ;;  %10734 = vmatpush3.bf16.msra.mxu1 %v13008_v18  ;;  %v5304_v56 = vadd.f32 %v12980_v2, %v5303_v28 }
 0x3b3   : > { %10639 = vmatprep.subr.bf16.mxu0 %v11162_v11  ;;  %10735 = vmatprep.subr.bf16.mxu1 %v11162_v11 }
 0x3b4   : > { %v5305_v57 = vadd.f32 %v12980_v2, %v5304_v56 }
 0x3b6   : > { %10641 = vmatpush3.bf16.msra.mxu0 %v10625_v15  ;;  %10737 = vmatpush3.bf16.msra.mxu1 %v13008_v18  ;;  %v13062_v45 = vadd.f32 %v12980_v2, %v5305_v57 }
 0x3b7   : > { %10642 = vmatprep.subr.bf16.mxu0 %v11162_v11  ;;  %10738 = vmatprep.subr.bf16.mxu1 %v11162_v11 }
 0x3ba   : > { %10644 = vmatpush3.bf16.msra.mxu0 %v10625_v15  ;;  %10740 = vmatpush3.bf16.msra.mxu1 %v13008_v18 }
 0x3bb   : > { %10645 = vmatprep.subr.bf16.mxu0 %v11162_v11  ;;  %10741 = vmatprep.subr.bf16.mxu1 %v11162_v11 }
 0x3bd   : > { %9968 = vmatmul.mubr.f32.vlgmr.msra.gmra.mrb[174].mxu0 %v12913_v17  ;;  %10108 = vmatmul.mubr.f32.vlgmr.msra.gmra.mrb[174].mxu1 %v7321_v40 }
 0x3be   : > { %10647 = vmatpush3.bf16.msra.mxu0 %v12850_v61  ;;  %10743 = vmatpush3.bf16.msra.mxu1 %v10742_v4 }
 0x3bf   : > { %10648 = vmatprep.subr.bf16.mxu0 %v11162_v11  ;;  %10744 = vmatprep.subr.bf16.mxu1 %v11162_v11 }
 0x3c0   : > { %10002 = vmatprep.mubr.msk.f32.mxu0 %vm11163_vm1, %v11164_v26  ;;  %10142 = vmatprep.mubr.msk.f32.mxu1 %vm11163_vm1, %v11164_v26 }
 0x3c2   : > { %10650 = vmatpush3.bf16.msra.mxu0 %v12876_v58  ;;  %10746 = vmatpush3.bf16.msra.mxu1 %v10745_v52 }
 0x3c3   : > { %10651 = vmatprep.subr.bf16.mxu0 %v11162_v11  ;;  %10747 = vmatprep.subr.bf16.mxu1 %v11162_v11 }
 0x3c6   : > { %10653 = vmatpush3.bf16.msra.mxu0 %v12876_v58  ;;  %10749 = vmatpush3.bf16.msra.mxu1 %v10745_v52 }
 0x3c7   : > { %10654 = vmatprep.subr.bf16.mxu0 %v11162_v11  ;;  %10750 = vmatprep.subr.bf16.mxu1 %v11162_v11 }
 0x3ca   : > { %10656 = vmatpush3.bf16.msra.mxu0 %v12876_v58  ;;  %10752 = vmatpush3.bf16.msra.mxu1 %v10745_v52 }
 0x3cb   : > { %10657 = vmatprep.subr.bf16.mxu0 %v11162_v11  ;;  %10753 = vmatprep.subr.bf16.mxu1 %v11162_v11 }
 0x3ce   : > { %10659 = vmatpush3.bf16.msra.mxu0 %v12876_v58  ;;  %10755 = vmatpush3.bf16.msra.mxu1 %v10745_v52 }
 0x3cf   : > { %10660 = vmatprep.subr.bf16.mxu0 %v11162_v11  ;;  %10756 = vmatprep.subr.bf16.mxu1 %v11162_v11 }
 0x3d2   : > { %10662 = vmatpush3.bf16.msra.mxu0 %v12876_v58  ;;  %10758 = vmatpush3.bf16.msra.mxu1 %v10745_v52 }
 0x3d3   : > { %10663 = vmatprep.subr.bf16.mxu0 %v11162_v11  ;;  %10759 = vmatprep.subr.bf16.mxu1 %v11162_v11 }
 0x3d6   : > { %10665 = vmatpush3.bf16.msra.mxu0 %v12876_v58  ;;  %10761 = vmatpush3.bf16.msra.mxu1 %v10745_v52 }
 0x3d7   : > { %10666 = vmatprep.subr.bf16.mxu0 %v11162_v11  ;;  %10762 = vmatprep.subr.bf16.mxu1 %v11162_v11 }
 0x3da   : > { %10668 = vmatpush3.bf16.msra.mxu0 %v12876_v58  ;;  %10764 = vmatpush3.bf16.msra.mxu1 %v10745_v52 }
 0x3db   : > { %10669 = vmatprep.subr.bf16.mxu0 %v11162_v11  ;;  %10765 = vmatprep.subr.bf16.mxu1 %v11162_v11 }
 0x3dd   : > { %10003 = vmatmul.mubr.f32.vlgmr.msra.gmra.mrb[174].mxu0 %v6678_v46  ;;  %10143 = vmatmul.mubr.f32.vlgmr.msra.gmra.mrb[174].mxu1 %v13030_v16 }
 0x3de   : > { %10671 = vmatpush3.bf16.msra.mxu0 %v12887_v60  ;;  %10767 = vmatpush3.bf16.msra.mxu1 %v10766_v31 }
 0x3df   : > { %10672 = vmatprep.subr.bf16.mxu0 %v11162_v11  ;;  %10768 = vmatprep.subr.bf16.mxu1 %v11162_v11 }
 0x3e0   : > { %10037 = vmatprep.mubr.msk.f32.mxu0 %vm11163_vm1, %v11164_v26  ;;  %10177 = vmatprep.mubr.msk.f32.mxu1 %vm11163_vm1, %v11164_v26 }
 0x3e2   : > { %10674 = vmatpush3.bf16.msra.mxu0 %v10673_v19  ;;  %10770 = vmatpush3.bf16.msra.mxu1 %v10769_v53 }
 0x3e3   : > { %10675 = vmatprep.subr.bf16.mxu0 %v11162_v11  ;;  %10771 = vmatprep.subr.bf16.mxu1 %v11162_v11 }
 0x3e6   : > { %10677 = vmatpush3.bf16.msra.mxu0 %v10673_v19  ;;  %10773 = vmatpush3.bf16.msra.mxu1 %v10769_v53 }
 0x3e7   : > { %10678 = vmatprep.subr.bf16.mxu0 %v11162_v11  ;;  %10774 = vmatprep.subr.bf16.mxu1 %v11162_v11 }
 0x3ea   : > { %10680 = vmatpush3.bf16.msra.mxu0 %v10673_v19  ;;  %10776 = vmatpush3.bf16.msra.mxu1 %v10769_v53 }
 0x3eb   : > { %10681 = vmatprep.subr.bf16.mxu0 %v11162_v11  ;;  %10777 = vmatprep.subr.bf16.mxu1 %v11162_v11 }
 0x3ee   : > { %10683 = vmatpush3.bf16.msra.mxu0 %v10673_v19  ;;  %10779 = vmatpush3.bf16.msra.mxu1 %v10769_v53 }
 0x3ef   : > { %10684 = vmatprep.subr.bf16.mxu0 %v11162_v11  ;;  %10780 = vmatprep.subr.bf16.mxu1 %v11162_v11 }
 0x3f2   : > { %10686 = vmatpush3.bf16.msra.mxu0 %v10673_v19  ;;  %10782 = vmatpush3.bf16.msra.mxu1 %v10769_v53 }
 0x3f3   : > { %10687 = vmatprep.subr.bf16.mxu0 %v11162_v11  ;;  %10783 = vmatprep.subr.bf16.mxu1 %v11162_v11 }
 0x3f6   : > { %10689 = vmatpush3.bf16.msra.mxu0 %v10673_v19  ;;  %10785 = vmatpush3.bf16.msra.mxu1 %v10769_v53 }
 0x3f7   : > { %10690 = vmatprep.subr.bf16.mxu0 %v11162_v11  ;;  %10786 = vmatprep.subr.bf16.mxu1 %v11162_v11 }
 0x3fa   : > { %10692 = vmatpush3.bf16.msra.mxu0 %v10673_v19  ;;  %10788 = vmatpush3.bf16.msra.mxu1 %v10769_v53 }
 0x3fb   : > { %10693 = vmatprep.subr.bf16.mxu0 %v11162_v11  ;;  %10789 = vmatprep.subr.bf16.mxu1 %v11162_v11 }
 0x3fd   : > { %10038 = vmatmul.mubr.f32.vlgmr.msra.gmra.mrb[174].mxu0 %v12904_v12  ;;  %10178 = vmatmul.mubr.f32.vlgmr.msra.gmra.mrb[174].mxu1 %v13038_v7 }
 0x3fe   : > { %10695 = vmatpush3.bf16.msra.mxu0 %v12850_v61  ;;  %10791 = vmatpush3.bf16.msra.mxu1 %v12989_v41  ;;  %v5244_v61 = vrot.slane %v12601_v39, 4 }
 0x3ff   : > { %10696 = vmatprep.subr.bf16.mxu0 %v11162_v11  ;;  %10792 = vmatprep.subr.bf16.mxu1 %v11162_v11 }
 0x400   : > { %10072 = vmatprep.mubr.msk.f32.mxu0 %vm11163_vm1, %v11164_v26  ;;  %10212 = vmatprep.mubr.msk.f32.mxu1 %vm11163_vm1, %v11164_v26  ;;  %v5245_v60 = vadd.f32 %v5244_v61, %v12601_v39 }
 0x402   : > { %10698 = vmatpush3.bf16.msra.mxu0 %v12876_v58  ;;  %10794 = vmatpush3.bf16.msra.mxu1 %v13008_v18  ;;  %v5246_v17 = vrot.slane %v5245_v60, 2 }
 0x403   : > { %10699 = vmatprep.subr.bf16.mxu0 %v11162_v11  ;;  %10795 = vmatprep.subr.bf16.mxu1 %v11162_v11 }
 0x404   : > { %v5247_v46 = vadd.f32 %v5246_v17, %v5245_v60 }
 0x406   : > { %10701 = vmatpush3.bf16.msra.mxu0 %v12876_v58  ;;  %10797 = vmatpush3.bf16.msra.mxu1 %v13008_v18  ;;  %v5248_v39 = vrot.slane %v5247_v46, 1 }
 0x407   : > { %10702 = vmatprep.subr.bf16.mxu0 %v11162_v11  ;;  %10798 = vmatprep.subr.bf16.mxu1 %v11162_v11 }
 0x408   : > { %v5249_v27 = vadd.f32 %v5248_v39, %v5247_v46 }
 0x40a   : > { %10704 = vmatpush3.bf16.msra.mxu0 %v12876_v58  ;;  %10800 = vmatpush3.bf16.msra.mxu1 %v13008_v18  ;;  %11037 = vrcp.f32 %v5249_v27 }
 0x40b   : > { %10705 = vmatprep.subr.bf16.mxu0 %v11162_v11  ;;  %10801 = vmatprep.subr.bf16.mxu1 %v11162_v11 }
 0x40e   : > { %10707 = vmatpush3.bf16.msra.mxu0 %v12876_v58  ;;  %10803 = vmatpush3.bf16.msra.mxu1 %v13008_v18 }
 0x40f   : > { %10708 = vmatprep.subr.bf16.mxu0 %v11162_v11  ;;  %10804 = vmatprep.subr.bf16.mxu1 %v11162_v11 }
 0x412   : > { %10710 = vmatpush3.bf16.msra.mxu0 %v12876_v58  ;;  %10806 = vmatpush3.bf16.msra.mxu1 %v13008_v18 }
 0x413   : > { %10711 = vmatprep.subr.bf16.mxu0 %v11162_v11  ;;  %10807 = vmatprep.subr.bf16.mxu1 %v11162_v11 }
 0x416   : > { %10713 = vmatpush3.bf16.msra.mxu0 %v12876_v58  ;;  %10809 = vmatpush3.bf16.msra.mxu1 %v13008_v18 }
 0x417   : > { %10714 = vmatprep.subr.bf16.mxu0 %v11162_v11  ;;  %10810 = vmatprep.subr.bf16.mxu1 %v11162_v11 }
 0x41a   : > { %10716 = vmatpush3.bf16.msra.mxu0 %v12876_v58  ;;  %10812 = vmatpush3.bf16.msra.mxu1 %v13008_v18  ;;  %v10817_v58 = vpack.c.bf16 %v13054_v49, %v13054_v49 }
 0x41b   : > { %10813 = vmatprep.subr.bf16.mxu1 %v11162_v11 }
 0x41d   : > { %10073 = vmatmul.mubr.f32.vlgmr.msra.gmra.mrb[174].mxu0 %v12904_v12  ;;  %10213 = vmatmul.mubr.f32.vlgmr.msra.gmra.mrb[174].mxu1 %v7319_v3  ;;  %v11038_v12 = vpop.eup %11037 }
 0x41e   : > { %10815 = vmatpush3.bf16.msra.mxu1 %v13017_v10  ;;  %10247 = vmatprep.mubr.msk.f32.mxu1 %vm11163_vm1, %v11164_v26 }
 0x41f   : > { %10816 = vmatprep.subr.bf16.mxu1 %v11162_v11 }
 0x422   : > { %10818 = vmatpush3.bf16.msra.mxu1 %v10817_v58 }
 0x423   : > { %10819 = vmatprep.subr.bf16.mxu1 %v11162_v11 }
 0x426   : > { %10821 = vmatpush3.bf16.msra.mxu1 %v10817_v58 }
 0x427   : > { %10822 = vmatprep.subr.bf16.mxu1 %v11162_v11 }
 0x42a   : > { %10824 = vmatpush3.bf16.msra.mxu1 %v10817_v58 }
 0x42b   : > { %10825 = vmatprep.subr.bf16.mxu1 %v11162_v11 }
 0x42e   : > { %10827 = vmatpush3.bf16.msra.mxu1 %v10817_v58 }
 0x42f   : > { %10828 = vmatprep.subr.bf16.mxu1 %v11162_v11 }
 0x430   : > { %v5950_v0 = vpop.f32.mrb[172].mxu0 }
 0x431   : > { %v7878_v14 = vmul.f32 %v11038_v12, %v5950_v0  ;;  %v9654_v33 = vpop.f32.mrb[173].mxu0 }
 0x432   : > { %10830 = vmatpush3.bf16.msra.mxu1 %v10817_v58 }
 0x433   : > { %7885 = vst [vmem:[%s13184_s25] sm:$0xff] %v7878_v14  ;;  %10831 = vmatprep.subr.bf16.mxu1 %v11162_v11 }
 0x436   : > { %10833 = vmatpush3.bf16.msra.mxu1 %v10817_v58 }
 0x437   : > { %10834 = vmatprep.subr.bf16.mxu1 %v11162_v11 }
 0x43a   : > { %10836 = vmatpush3.bf16.msra.mxu1 %v10817_v58 }
 0x43b   : > { %10837 = vmatprep.subr.bf16.mxu1 %v11162_v11 }
 0x43d   : > { %10248 = vmatmul.mubr.f32.vlgmr.msra.gmra.mrb[174].mxu1 %v13030_v16 }
 0x43e   : > { %10839 = vmatpush3.bf16.msra.mxu1 %v12989_v41  ;;  %10282 = vmatprep.mubr.msk.f32.mxu1 %vm11163_vm1, %v11164_v26  ;;  %v5266_v26 = vadd.f32 %v5265_v8, %v12707_v47  ;;  %v5288_v41 = vrot.slane %v5287_v35, 2 }
 0x43f   : > { %10840 = vmatprep.subr.bf16.mxu1 %v11162_v11 }
 0x440   : > { %v5267_v36 = vrot.slane %v5266_v26, 2 }
 0x442   : > { %10842 = vmatpush3.bf16.msra.mxu1 %v13008_v18  ;;  %v5268_v30 = vadd.f32 %v5267_v36, %v5266_v26 }
 0x443   : > { %10843 = vmatprep.subr.bf16.mxu1 %v11162_v11 }
 0x444   : > { %v5269_v6 = vrot.slane %v5268_v30, 1 }
 0x446   : > { %10845 = vmatpush3.bf16.msra.mxu1 %v13008_v18  ;;  %v5270_v2 = vadd.f32 %v5269_v6, %v5268_v30 }
 0x447   : > { %10846 = vmatprep.subr.bf16.mxu1 %v11162_v11 }
 0x448   : > { %11039 = vrcp.f32 %v5270_v2 }
 0x44a   : > { %10848 = vmatpush3.bf16.msra.mxu1 %v13008_v18 }
 0x44b   : > { %10849 = vmatprep.subr.bf16.mxu1 %v11162_v11 }
 0x44e   : > { %10851 = vmatpush3.bf16.msra.mxu1 %v13008_v18 }
 0x44f   : > { %10852 = vmatprep.subr.bf16.mxu1 %v11162_v11 }
 0x452   : > { %10854 = vmatpush3.bf16.msra.mxu1 %v13008_v18  ;;  %v11040_v25 = vpop.eup %11039 }
 0x453   : > { %10855 = vmatprep.subr.bf16.mxu1 %v11162_v11 }
 0x456   : > { %10857 = vmatpush3.bf16.msra.mxu1 %v13008_v18 }
 0x457   : > { %10858 = vmatprep.subr.bf16.mxu1 %v11162_v11  ;;  %v5289_v11 = vadd.f32 %v5288_v41, %v5287_v35 }
 0x459   : > { %v5290_v20 = vrot.slane %v5289_v11, 1 }
 0x45a   : > { %10860 = vmatpush3.bf16.msra.mxu1 %v13008_v18  ;;  %v5307_v18 = vrot.slane %v13062_v45, 4 }
 0x45b   : > { %v5291_v32 = vadd.f32 %v5290_v20, %v5289_v11 }
 0x45c   : > { %v5308_v59 = vadd.f32 %v5307_v18, %v13062_v45 }
 0x45d   : > { %10283 = vmatmul.mubr.f32.vlgmr.msra.gmra.mrb[174].mxu1 %v13030_v16  ;;  %11041 = vrcp.f32 %v5291_v32 }
 0x45e   : > { %v5309_v44 = vrot.slane %v5308_v59, 2 }
 0x460   : > { %v5310_v48 = vadd.f32 %v5309_v44, %v5308_v59 }
 0x462   : > { %v5311_v54 = vrot.slane %v5310_v48, 1 }
 0x464   : > { %v5312_v10 = vadd.f32 %v5311_v54, %v5310_v48 }
 0x466   : > { %11043 = vrcp.f32 %v5312_v10 }
 0x467   : > { %v11042_v21 = vpop.eup %11041 }
 0x470   : > { %v6591_v5 = vpop.f32.mrb[172].mxu1  ;;  %v11044_v38 = vpop.eup %11043 }
 0x471   : > { %v7880_v9 = vmul.f32 %v11040_v25, %v6591_v5  ;;  %v9864_v47 = vpop.f32.mrb[173].mxu1 }
 0x473   : > { %7886 = vst [vmem:[%s13184_s25 + $0x8] sm:$0xff] %v7880_v9 }
 0x4f0   : > { %v7232_v34 = vpop.f32.mrb[174].mxu0 }
 0x4f1   : > { %v7882_v31 = vmul.f32 %v11042_v21, %v7232_v34  ;;  %v10074_v15 = vpop.f32.mrb[175].mxu0 }
 0x4f3   : > { %7887 = vst [vmem:[%s13184_s25 + $0x10] sm:$0xff] %v7882_v31 }
 0x530   : > { %v7873_v63 = vpop.f32.mrb[174].mxu1 }
 0x531   : > { %v7884_v1 = vmul.f32 %v11044_v38, %v7873_v63  ;;  %v10284_v4 = vpop.f32.mrb[175].mxu1 }
 0x533   : > { %7888 = vst [vmem:[%s13184_s25 + $0x18] sm:$0xff] %v7884_v1 }
 0x534   : > { %11088 = shalt.err (!%p11085_p4)
}
 0x535   : > { %s11089_s22 = scalar_lea.hbm %s13224_s12, 512  ;;  %s11093_s26 = scalar_lea.hbm %s13275_s1, 1024 }
 0x536   : > { %p11090_p6 = scmp.ne.s32.totalorder %s13224_s12, %s11089_s22  ;;  %p11094_p12 = scmp.lt.u32.totalorder %s13224_s12, %s13275_s1 }
 0x537   : > { %p11095_p1 = scmp.lt.u32.totalorder %s11093_s26, %s11089_s22  ;;  %p11097_p8 = scmp.lt.u32.totalorder %s11089_s22, %s13224_s12 }
 0x538   : > { %p11091_p7 = pnand %p11090_p6, %p13597_p9 }
 0x539   : > { %p11096_p3 = por %p11095_p1, %p11094_p12 }
 0x53a   : > { %p11092_p10 = pneg %p11091_p7 }
 0x53b   : > { %p11098_p11 = por %p11097_p8, %p11096_p3 }
 0x53d   : > { %p11099_p0 = pnand %p11098_p11, %p11092_p10 }
 0x53f   : > { %11102 = shalt.err (!%p11099_p0)
}
 0x540   : > { %s11166_s4 = smov 128   ;;  %s11167_s18 = smov 8  }
 0x541   : > { %10946 = dma.vmem_to_hbm [thread:$0]  (%p13597_p9), %s13219_s28, 512, %s13224_s12, %s7890_s13, %s11166_s4, %s11166_s4, %s11167_s18  }
 0x542 PF: > { %s7920_s25 = sand.u32 1, %s11137_s6   ;;  %p13598_p5 = scmp.ne.s32.totalorder %s13419_s21, 0 }
 0x543   : > { %p13599_p13 = scmp.ge.s32.totalorder %s11157_s11, 2  ;;  %s7921_s30 = scalar_lea.sflag [#allocation4], %s7920_s25 }
 0x545   : > { %p10953_p2 = pnand %p13599_p13, %p13598_p5 }
 0x547   : > { %11132 = dma.done.wait (!%p10953_p2), %s7921_s30, 512  }
 0x548   : > { %11134 = vsyncadd (!%p10953_p2), %s7921_s30, 4294966784  ;;  %s17_s11 = sadd.s32 1, %s11157_s11   ;;  %s13600_s6 = smov %s11141_s7 }
 0x549   : > { %p14_p4 = scmp.ge.s32.totalorder %s17_s11, 4   ;;  %s13601_s7 = smov %s11145_s8 }
 0x54a   : > { %s13602_s8 = smov %s11234_s20  ;;  %s13603_s9 = smov %s11153_s10 }
 0x54b   : > { %s13604_s10 = smov %s13606_s14  ;;  %16 = sbr.rel (!%p14_p4) target bundleno = 6 (0x6), region = 69 }
 0x552   :  { %7926 = vsyncpa [#allocation3], 1 }
 0x553   :  { %7928 = vsyncpa [#allocation3 + $0x1], 1 }
 0x554   :  { %7929 = vsyncpa [#allocation4], 1 }
 0x555   :  { %7931 = vsyncpa [#allocation4 + $0x1], 1 }

</bundles_post_ra>
